<compile_context>
chip_gen: v5e
topology: v5e:2x2
jax: 0.10.0
libtpu: 0.0.40
codegen_flags: <defaults>
</compile_context>

<pallas_src>
import functools

import jax
import jax.numpy as jnp
from jax.experimental import pallas as pl
from jax.experimental.pallas import tpu as pltpu

_COMPUTE_DTYPE = jnp.bfloat16


def _wide_mxu():
    try:
        kind = jax.devices()[0].device_kind.lower()
    except Exception:
        return False
    return ("v6" in kind) or ("v7" in kind)


_WIDE = _wide_mxu()
_TM_MAX = 512
_TN_MAX = 256                      # covers full Cout of real CycleGAN (<=256)
_TK_MAX = 256 if _WIDE else 128    # 256-deep contraction tiles for 2x256x256 MXU


def _round_up(v, m):
    return (v + m - 1) // m * m


# -----------------------------------------------------------------------------
# Pallas kernel: tiled bf16 matmul, f32 accumulation, fused shift/residual/act
# -----------------------------------------------------------------------------
def _fused_matmul_kernel(*refs, activation, has_residual):
    if has_residual:
        x_ref, w_ref, shift_ref, res_ref, o_ref, acc_ref = refs
    else:
        x_ref, w_ref, shift_ref, o_ref, acc_ref = refs
        res_ref = None

    k = pl.program_id(2)

    @pl.when(k == 0)
    def _():
        acc_ref[...] = jnp.zeros_like(acc_ref)

    acc_ref[...] += jnp.dot(x_ref[...], w_ref[...],
                            preferred_element_type=jnp.float32)

    @pl.when(k == pl.num_programs(2) - 1)
    def _():
        y = acc_ref[...] + shift_ref[...]
        if res_ref is not None:
            y = y + res_ref[...].astype(jnp.float32)
        if activation == "relu":
            y = jnp.maximum(y, 0.0)
        elif activation == "tanh":
            y = jnp.tanh(y)
        o_ref[...] = y.astype(o_ref.dtype)


def fused_matmul(x, prep, *, activation, residual=None, out_dtype=_COMPUTE_DTYPE):
    """y = act(x @ w_prescaled + shift [+ residual]) using pre-padded weights."""
    M, K = x.shape
    N, Kp, Np = prep["N"], prep["Kp"], prep["Np"]
    TK, TN = prep["TK"], prep["TN"]
    TM = min(_TM_MAX, _round_up(M, 16))      # 16: bf16 sublane packing
    Mp = _round_up(M, TM)

    xp = jnp.pad(x.astype(_COMPUTE_DTYPE), ((0, Mp - M), (0, Kp - K)))

    inputs = [xp, prep["w"], prep["shift"]]
    in_specs = [
        pl.BlockSpec((TM, TK), lambda i, j, k: (i, k)),   # patches (bf16)
        pl.BlockSpec((TK, TN), lambda i, j, k: (k, j)),   # weight (bf16, scale folded)
        pl.BlockSpec((1, TN), lambda i, j, k: (0, j)),    # shift (f32)
    ]
    has_residual = residual is not None
    if has_residual:
        rp = jnp.pad(residual.reshape(M, N), ((0, Mp - M), (0, Np - N)))
        inputs.append(rp)
        in_specs.append(pl.BlockSpec((TM, TN), lambda i, j, k: (i, j)))

    grid = (Mp // TM, Np // TN, Kp // TK)
    out = pl.pallas_call(
        functools.partial(_fused_matmul_kernel,
                          activation=activation, has_residual=has_residual),
        out_shape=jax.ShapeDtypeStruct((Mp, Np), out_dtype),
        grid_spec=pltpu.PrefetchScalarGridSpec(
            num_scalar_prefetch=0,
            grid=grid,
            in_specs=in_specs,
            out_specs=pl.BlockSpec((TM, TN), lambda i, j, k: (i, j)),
            scratch_shapes=[pltpu.VMEM((TM, TN), jnp.float32)],
        ),
        compiler_params=pltpu.CompilerParams(
            dimension_semantics=("parallel", "parallel", "arbitrary")),
    )(*inputs)
    return out[:M, :N]


# -----------------------------------------------------------------------------
# Plain-JAX glue: im2col, padding
# -----------------------------------------------------------------------------
def _im2col(x, kh, kw, stride):
    # x: (N, H, W, C), already padded
    n, h, w, c = x.shape
    oh = (h - kh) // stride + 1
    ow = (w - kw) // stride + 1
    cols = []
    for i in range(kh):
        for j in range(kw):
            cols.append(x[:, i:i + stride * oh:stride,
                          j:j + stride * ow:stride, :])
    patches = jnp.stack(cols, axis=3)                 # (N, oh, ow, kh*kw, C)
    return patches.reshape(n * oh * ow, kh * kw * c), oh, ow


def conv_bn_act(x, prep, *, stride, pad, pad_mode, activation,
                residual=None, out_dtype=_COMPUTE_DTYPE):
    kh, kw, cout = prep["kh"], prep["kw"], prep["cout"]
    if pad > 0:
        x = jnp.pad(x, ((0, 0), (pad, pad), (pad, pad), (0, 0)), mode=pad_mode)
    n = x.shape[0]
    cols, oh, ow = _im2col(x, kh, kw, stride)
    res = None if residual is None else residual.reshape(-1, cout)
    y = fused_matmul(cols, prep, activation=activation, residual=res,
                     out_dtype=out_dtype)
    return y.reshape(n, oh, ow, cout)


def convT_bn_act(x, prep, *, activation, out_dtype=_COMPUTE_DTYPE):
    # ConvTranspose2d(k=3, stride=2, padding=1, output_padding=1) as a dilated conv
    kh, kw, cout = prep["kh"], prep["kw"], prep["cout"]
    stride, pad, opad = 2, 1, 1
    n, h, wd, c = x.shape
    hd, wdd = (h - 1) * stride + 1, (wd - 1) * stride + 1
    xd = jnp.zeros((n, hd, wdd, c), x.dtype).at[:, ::stride, ::stride, :].set(x)
    p0 = kh - 1 - pad
    p1 = kh - 1 - pad + opad
    xp = jnp.pad(xd, ((0, 0), (p0, p1), (p0, p1), (0, 0)))
    cols, oh, ow = _im2col(xp, kh, kw, 1)
    y = fused_matmul(cols, prep, activation=activation, out_dtype=out_dtype)
    return y.reshape(n, oh, ow, cout)


# -----------------------------------------------------------------------------
# Parameter init (deterministic, synthetic) and one-time weight preparation
# -----------------------------------------------------------------------------
def _make_conv(key, w_shape, cout, *, bias, bn):
    k1, k2, k3, k4 = jax.random.split(key, 4)
    p = {"w": jax.random.normal(k1, w_shape, jnp.float32) * 0.05}
    p["b"] = (jax.random.normal(k2, (cout,), jnp.float32) * 0.05) if bias else None
    if bn:
        p["gamma"] = 1.0 + 0.1 * jax.random.normal(k3, (cout,), jnp.float32)
        p["beta"] = 0.1 * jax.random.normal(k4, (cout,), jnp.float32)
        p["rmean"] = jnp.zeros((cout,), jnp.float32)
        p["rvar"] = jnp.ones((cout,), jnp.float32)
    else:
        p["gamma"] = None
    return p


def _fold_affine(p, cout):
    """Conv bias + eval-mode BatchNorm -> per-channel (scale, shift)."""
    eps = 1e-5
    if p.get("gamma") is not None:
        scale = p["gamma"] / jnp.sqrt(p["rvar"] + eps)
        shift = p["beta"] - p["rmean"] * scale
    else:
        scale = jnp.ones((cout,), jnp.float32)
        shift = jnp.zeros((cout,), jnp.float32)
    if p.get("b") is not None:
        shift = shift + p["b"] * scale
    return scale, shift


def _prepare_conv(p, *, transpose=False):
    """Fold BN scale into weights, reshape to matmul layout, pad, cast to bf16."""
    w = p["w"]
    if transpose:
        cin, cout, kh, kw = w.shape                       # ConvTranspose2d layout
        w_mat = jnp.transpose(w[:, :, ::-1, ::-1],
                              (2, 3, 0, 1)).reshape(kh * kw * cin, cout)
    else:
        cout, cin, kh, kw = w.shape
        w_mat = jnp.transpose(w, (2, 3, 1, 0)).reshape(kh * kw * cin, cout)
    scale, shift = _fold_affine(p, cout)
    w_mat = w_mat * scale[None, :]                        # fold scale into weights
    K, N = w_mat.shape
    TK = min(_TK_MAX, _round_up(K, 128))
    TN = min(_TN_MAX, _round_up(N, 128))
    Kp = _round_up(K, TK)
    Np = _round_up(N, TN)
    w_pad = jnp.pad(w_mat, ((0, Kp - K), (0, Np - N))).astype(_COMPUTE_DTYPE)
    shift_pad = jnp.pad(shift.reshape(1, N),
                        ((0, 0), (0, Np - N))).astype(jnp.float32)
    return {"w": w_pad, "shift": shift_pad, "K": K, "N": N, "Kp": Kp, "Np": Np,
            "TK": TK, "TN": TN, "kh": kh, "kw": kw, "cin": cin, "cout": cout}


def init_params(key, input_nc, output_nc, ngf, n_blocks):
    # norm_layer = BatchNorm2d  ->  use_bias = False for all but the final conv
    keys = jax.random.split(key, 8 + 2 * n_blocks)
    ki = iter(keys)
    params = {}
    params["c_in"] = _make_conv(next(ki), (ngf, input_nc, 7, 7), ngf,
                                bias=False, bn=True)
    params["down0"] = _make_conv(next(ki), (ngf * 2, ngf, 3, 3), ngf * 2,
                                 bias=False, bn=True)
    params["down1"] = _make_conv(next(ki), (ngf * 4, ngf * 2, 3, 3), ngf * 4,
                                 bias=False, bn=True)
    dim = ngf * 4
    for b in range(n_blocks):
        params[f"blk{b}_0"] = _make_conv(next(ki), (dim, dim, 3, 3), dim,
                                         bias=False, bn=True)
        params[f"blk{b}_1"] = _make_conv(next(ki), (dim, dim, 3, 3), dim,
                                         bias=False, bn=True)
    # ConvTranspose2d weights have shape (Cin, Cout, kh, kw)
    params["up0"] = _make_conv(next(ki), (ngf * 4, ngf * 2, 3, 3), ngf * 2,
                               bias=False, bn=True)
    params["up1"] = _make_conv(next(ki), (ngf * 2, ngf, 3, 3), ngf,
                               bias=False, bn=True)
    params["c_out"] = _make_conv(next(ki), (output_nc, ngf, 7, 7), output_nc,
                                 bias=True, bn=False)
    return params


def prepare_params(params, n_blocks):
    prep = {}
    for name in ["c_in", "down0", "down1"]:
        prep[name] = _prepare_conv(params[name])
    for b in range(n_blocks):
        prep[f"blk{b}_0"] = _prepare_conv(params[f"blk{b}_0"])
        prep[f"blk{b}_1"] = _prepare_conv(params[f"blk{b}_1"])
    for name in ["up0", "up1"]:
        prep[name] = _prepare_conv(params[name], transpose=True)
    prep["c_out"] = _prepare_conv(params["c_out"])
    return prep


# -----------------------------------------------------------------------------
# Forward pass
# -----------------------------------------------------------------------------
def resnet_generator_forward(prep, x_nchw, n_blocks):
    # layout: accept NCHW (PyTorch convention), compute in NHWC/bf16, return NCHW f32.
    x = jnp.transpose(x_nchw, (0, 2, 3, 1)).astype(_COMPUTE_DTYPE)

    # ReflectionPad2d(3) + Conv2d(k=7) + BN + ReLU
    x = conv_bn_act(x, prep["c_in"], stride=1, pad=3,
                    pad_mode="reflect", activation="relu")
    # two stride-2 downsampling convs (zero padding=1) + BN + ReLU
    x = conv_bn_act(x, prep["down0"], stride=2, pad=1,
                    pad_mode="constant", activation="relu")
    x = conv_bn_act(x, prep["down1"], stride=2, pad=1,
                    pad_mode="constant", activation="relu")
    # Resnet blocks (reflect pad 1, conv3, BN, ReLU, reflect pad 1, conv3, BN) + skip
    for b in range(n_blocks):
        h = conv_bn_act(x, prep[f"blk{b}_0"], stride=1, pad=1,
                        pad_mode="reflect", activation="relu")
        x = conv_bn_act(h, prep[f"blk{b}_1"], stride=1, pad=1,
                        pad_mode="reflect", activation="none", residual=x)
    # two ConvTranspose2d upsampling layers + BN + ReLU
    x = convT_bn_act(x, prep["up0"], activation="relu")
    x = convT_bn_act(x, prep["up1"], activation="relu")
    # ReflectionPad2d(3) + Conv2d(k=7, bias=True) + Tanh
    x = conv_bn_act(x, prep["c_out"], stride=1, pad=3,
                    pad_mode="reflect", activation="tanh", out_dtype=jnp.float32)
    return jnp.transpose(x, (0, 3, 1, 2))


if __name__ == "__main__":
    key = jax.random.PRNGKey(0)
    kp, kx = jax.random.split(key)

    input_nc, output_nc, ngf, n_blocks = 3, 3, 8, 2
    batch, spatial = 1, 16

    params = init_params(kp, input_nc, output_nc, ngf, n_blocks)
    prepared = prepare_params(params, n_blocks)         # one-time weight prep
    x = jax.random.normal(kx, (batch, input_nc, spatial, spatial), jnp.float32)

    forward = jax.jit(lambda xx: resnet_generator_forward(prepared, xx, n_blocks))
    y = forward(x)
    y = jax.block_until_ready(y)
    assert y.shape == (batch, output_nc, spatial, spatial), y.shape
    assert bool(jnp.all(jnp.isfinite(y)))
    print("KERNEL_OK")
</pallas_src>

<mosaic_0001>
module attributes {stable_mosaic.version = 11 : i64} {
  func.func @_fused_matmul_kernel(%arg0: i32, %arg1: i32, %arg2: i32, %arg3: memref<256x128xbf16, #tpu.memory_space<vmem>>, %arg4: memref<128x128xbf16, #tpu.memory_space<vmem>>, %arg5: memref<1x128xf32, #tpu.memory_space<vmem>>, %arg6: memref<256x128xbf16, #tpu.memory_space<vmem>>, %arg7: memref<256x128xf32, #tpu.memory_space<vmem>>) attributes {dimension_semantics = [#tpu.dimension_semantics<parallel>, #tpu.dimension_semantics<parallel>, #tpu.dimension_semantics<arbitrary>], iteration_bounds = array<i64: 1, 1, 2>, scalar_prefetch = 0 : i64, scratch_operands = 1 : i64, tpu.core_type = #tpu.core_type<tc>, window_params = [{transform_indices = @transform_0, window_bounds = array<i64: 256, 128>}, {transform_indices = @transform_1, window_bounds = array<i64: 128, 128>}, {transform_indices = @transform_2, window_bounds = array<i64: 1, 128>}, {transform_indices = @transform_3, window_bounds = array<i64: 256, 128>}]} {
    %c0_i32 = arith.constant 0 : i32
    %0 = arith.cmpi eq, %arg2, %c0_i32 : i32
    %1 = arith.extui %0 : i1 to i32
    %c0_i32_0 = arith.constant 0 : i32
    %2 = arith.cmpi ne, %1, %c0_i32_0 : i32
    scf.if %2 {
      %cst_9 = arith.constant 0.000000e+00 : f32
      %12 = vector.broadcast %cst_9 : f32 to vector<256x128xf32>
      %c0_10 = arith.constant 0 : index
      %c0_11 = arith.constant 0 : index
      %13 = vector.load %arg7[%c0_10, %c0_11] : memref<256x128xf32, #tpu.memory_space<vmem>>, vector<256x128xf32>
      tpu.vector_store %arg7[%c0_10, %c0_11], %12 {strides = array<i32>} : memref<256x128xf32, #tpu.memory_space<vmem>>, vector<256x128xf32>,
    } else {
    }
    %c0 = arith.constant 0 : index
    %c0_1 = arith.constant 0 : index
    %3 = vector.load %arg7[%c0, %c0_1] : memref<256x128xf32, #tpu.memory_space<vmem>>, vector<256x128xf32>
    %c0_2 = arith.constant 0 : index
    %c0_3 = arith.constant 0 : index
    %4 = vector.load %arg3[%c0_2, %c0_3] : memref<256x128xbf16, #tpu.memory_space<vmem>>, vector<256x128xbf16>
    %c0_4 = arith.constant 0 : index
    %c0_5 = arith.constant 0 : index
    %5 = vector.load %arg4[%c0_4, %c0_5] : memref<128x128xbf16, #tpu.memory_space<vmem>>, vector<128x128xbf16>
    %cst = arith.constant dense<0.000000e+00> : vector<256x128xf32>
    %6 = tpu.matmul %4, %5, %cst {dimension_numbers = #tpu.dot_dimension_numbers<[1], [0], [0], [1], [0, 0, 1, 1], [], []>} : vector<256x128xbf16>, vector<128x128xbf16>, vector<256x128xf32> -> vector<256x128xf32>
    %7 = arith.addf %3, %6 : vector<256x128xf32>
    %c0_6 = arith.constant 0 : index
    %c0_7 = arith.constant 0 : index
    %8 = vector.load %arg7[%c0_6, %c0_7] : memref<256x128xf32, #tpu.memory_space<vmem>>, vector<256x128xf32>
    tpu.vector_store %arg7[%c0_6, %c0_7], %7 {strides = array<i32>} : memref<256x128xf32, #tpu.memory_space<vmem>>, vector<256x128xf32>,
    %c1_i32 = arith.constant 1 : i32
    %9 = arith.cmpi eq, %arg2, %c1_i32 : i32
    %10 = arith.extui %9 : i1 to i32
    %c0_i32_8 = arith.constant 0 : i32
    %11 = arith.cmpi ne, %10, %c0_i32_8 : i32
    scf.if %11 {
      %c0_9 = arith.constant 0 : index
      %c0_10 = arith.constant 0 : index
      %12 = vector.load %arg7[%c0_9, %c0_10] : memref<256x128xf32, #tpu.memory_space<vmem>>, vector<256x128xf32>
      %c0_11 = arith.constant 0 : index
      %c0_12 = arith.constant 0 : index
      %13 = vector.load %arg5[%c0_11, %c0_12] : memref<1x128xf32, #tpu.memory_space<vmem>>, vector<1x128xf32>
      %14 = vector.broadcast %13 : vector<1x128xf32> to vector<256x128xf32>
      %15 = arith.addf %12, %14 : vector<256x128xf32>
      %cst_13 = arith.constant 0.000000e+00 : f32
      %16 = vector.broadcast %cst_13 : f32 to vector<256x128xf32>
      %17 = arith.maximumf %15, %16 : vector<256x128xf32>
      %18 = arith.truncf %17 : vector<256x128xf32> to vector<256x128xbf16>
      %c0_14 = arith.constant 0 : index
      %c0_15 = arith.constant 0 : index
      %19 = vector.load %arg6[%c0_14, %c0_15] : memref<256x128xbf16, #tpu.memory_space<vmem>>, vector<256x128xbf16>
      tpu.vector_store %arg6[%c0_14, %c0_15], %18 {strides = array<i32>} : memref<256x128xbf16, #tpu.memory_space<vmem>>, vector<256x128xbf16>,
    } else {
    }
    return
  }
  func.func @transform_0(%arg0: i32, %arg1: i32, %arg2: i32) -> (i32, i32) {
    %c0_i32 = arith.constant 0 : i32
    return %arg0, %arg2 : i32, i32
  }
  func.func @transform_1(%arg0: i32, %arg1: i32, %arg2: i32) -> (i32, i32) {
    %c0_i32 = arith.constant 0 : i32
    return %arg2, %arg1 : i32, i32
  }
  func.func @transform_2(%arg0: i32, %arg1: i32, %arg2: i32) -> (i32, i32) {
    %c0_i32 = arith.constant 0 : i32
    %c0_i32_0 = arith.constant 0 : i32
    return %c0_i32, %arg1 : i32, i32
  }
  func.func @transform_3(%arg0: i32, %arg1: i32, %arg2: i32) -> (i32, i32) {
    %c0_i32 = arith.constant 0 : i32
    return %arg0, %arg1 : i32, i32
  }
}

module attributes {stable_mosaic.version = 11 : i64} {
  func.func @_fused_matmul_kernel(%arg0: i32, %arg1: i32, %arg2: i32, %arg3: memref<64x128xbf16, #tpu.memory_space<vmem>>, %arg4: memref<128x128xbf16, #tpu.memory_space<vmem>>, %arg5: memref<1x128xf32, #tpu.memory_space<vmem>>, %arg6: memref<64x128xbf16, #tpu.memory_space<vmem>>, %arg7: memref<64x128xf32, #tpu.memory_space<vmem>>) attributes {dimension_semantics = [#tpu.dimension_semantics<parallel>, #tpu.dimension_semantics<parallel>, #tpu.dimension_semantics<arbitrary>], iteration_bounds = array<i64: 1, 1, 1>, scalar_prefetch = 0 : i64, scratch_operands = 1 : i64, tpu.core_type = #tpu.core_type<tc>, window_params = [{transform_indices = @transform_0, window_bounds = array<i64: 64, 128>}, {transform_indices = @transform_1, window_bounds = array<i64: 128, 128>}, {transform_indices = @transform_2, window_bounds = array<i64: 1, 128>}, {transform_indices = @transform_3, window_bounds = array<i64: 64, 128>}]} {
    %c0_i32 = arith.constant 0 : i32
    %0 = arith.cmpi eq, %arg2, %c0_i32 : i32
    %1 = arith.extui %0 : i1 to i32
    %c0_i32_0 = arith.constant 0 : i32
    %2 = arith.cmpi ne, %1, %c0_i32_0 : i32
    scf.if %2 {
      %cst_10 = arith.constant 0.000000e+00 : f32
      %12 = vector.broadcast %cst_10 : f32 to vector<64x128xf32>
      %c0_11 = arith.constant 0 : index
      %c0_12 = arith.constant 0 : index
      %13 = vector.load %arg7[%c0_11, %c0_12] : memref<64x128xf32, #tpu.memory_space<vmem>>, vector<64x128xf32>
      tpu.vector_store %arg7[%c0_11, %c0_12], %12 {strides = array<i32>} : memref<64x128xf32, #tpu.memory_space<vmem>>, vector<64x128xf32>,
    } else {
    }
    %c0 = arith.constant 0 : index
    %c0_1 = arith.constant 0 : index
    %3 = vector.load %arg7[%c0, %c0_1] : memref<64x128xf32, #tpu.memory_space<vmem>>, vector<64x128xf32>
    %c0_2 = arith.constant 0 : index
    %c0_3 = arith.constant 0 : index
    %4 = vector.load %arg3[%c0_2, %c0_3] : memref<64x128xbf16, #tpu.memory_space<vmem>>, vector<64x128xbf16>
    %c0_4 = arith.constant 0 : index
    %c0_5 = arith.constant 0 : index
    %5 = vector.load %arg4[%c0_4, %c0_5] : memref<128x128xbf16, #tpu.memory_space<vmem>>, vector<128x128xbf16>
    %cst = arith.constant dense<0.000000e+00> : vector<64x128xf32>
    %6 = tpu.matmul %4, %5, %cst {dimension_numbers = #tpu.dot_dimension_numbers<[1], [0], [0], [1], [0, 0, 1, 1], [], []>} : vector<64x128xbf16>, vector<128x128xbf16>, vector<64x128xf32> -> vector<64x128xf32>
    %7 = arith.addf %3, %6 : vector<64x128xf32>
    %c0_6 = arith.constant 0 : index
    %c0_7 = arith.constant 0 : index
    %8 = vector.load %arg7[%c0_6, %c0_7] : memref<64x128xf32, #tpu.memory_space<vmem>>, vector<64x128xf32>
    tpu.vector_store %arg7[%c0_6, %c0_7], %7 {strides = array<i32>} : memref<64x128xf32, #tpu.memory_space<vmem>>, vector<64x128xf32>,
    %c0_i32_8 = arith.constant 0 : i32
    %9 = arith.cmpi eq, %arg2, %c0_i32_8 : i32
    %10 = arith.extui %9 : i1 to i32
    %c0_i32_9 = arith.constant 0 : i32
    %11 = arith.cmpi ne, %10, %c0_i32_9 : i32
    scf.if %11 {
      %c0_10 = arith.constant 0 : index
      %c0_11 = arith.constant 0 : index
      %12 = vector.load %arg7[%c0_10, %c0_11] : memref<64x128xf32, #tpu.memory_space<vmem>>, vector<64x128xf32>
      %c0_12 = arith.constant 0 : index
      %c0_13 = arith.constant 0 : index
      %13 = vector.load %arg5[%c0_12, %c0_13] : memref<1x128xf32, #tpu.memory_space<vmem>>, vector<1x128xf32>
      %14 = vector.broadcast %13 : vector<1x128xf32> to vector<64x128xf32>
      %15 = arith.addf %12, %14 : vector<64x128xf32>
      %cst_14 = arith.constant 0.000000e+00 : f32
      %16 = vector.broadcast %cst_14 : f32 to vector<64x128xf32>
      %17 = arith.maximumf %15, %16 : vector<64x128xf32>
      %18 = arith.truncf %17 : vector<64x128xf32> to vector<64x128xbf16>
      %c0_15 = arith.constant 0 : index
      %c0_16 = arith.constant 0 : index
      %19 = vector.load %arg6[%c0_15, %c0_16] : memref<64x128xbf16, #tpu.memory_space<vmem>>, vector<64x128xbf16>
      tpu.vector_store %arg6[%c0_15, %c0_16], %18 {strides = array<i32>} : memref<64x128xbf16, #tpu.memory_space<vmem>>, vector<64x128xbf16>,
    } else {
    }
    return
  }
  func.func @transform_0(%arg0: i32, %arg1: i32, %arg2: i32) -> (i32, i32) {
    %c0_i32 = arith.constant 0 : i32
    return %arg0, %arg2 : i32, i32
  }
  func.func @transform_1(%arg0: i32, %arg1: i32, %arg2: i32) -> (i32, i32) {
    %c0_i32 = arith.constant 0 : i32
    return %arg2, %arg1 : i32, i32
  }
  func.func @transform_2(%arg0: i32, %arg1: i32, %arg2: i32) -> (i32, i32) {
    %c0_i32 = arith.constant 0 : i32
    %c0_i32_0 = arith.constant 0 : i32
    return %c0_i32, %arg1 : i32, i32
  }
  func.func @transform_3(%arg0: i32, %arg1: i32, %arg2: i32) -> (i32, i32) {
    %c0_i32 = arith.constant 0 : i32
    return %arg0, %arg1 : i32, i32
  }
}

module attributes {stable_mosaic.version = 11 : i64} {
  func.func @_fused_matmul_kernel(%arg0: i32, %arg1: i32, %arg2: i32, %arg3: memref<16x128xbf16, #tpu.memory_space<vmem>>, %arg4: memref<128x128xbf16, #tpu.memory_space<vmem>>, %arg5: memref<1x128xf32, #tpu.memory_space<vmem>>, %arg6: memref<16x128xbf16, #tpu.memory_space<vmem>>, %arg7: memref<16x128xf32, #tpu.memory_space<vmem>>) attributes {dimension_semantics = [#tpu.dimension_semantics<parallel>, #tpu.dimension_semantics<parallel>, #tpu.dimension_semantics<arbitrary>], iteration_bounds = array<i64: 1, 1, 2>, scalar_prefetch = 0 : i64, scratch_operands = 1 : i64, tpu.core_type = #tpu.core_type<tc>, window_params = [{transform_indices = @transform_0, window_bounds = array<i64: 16, 128>}, {transform_indices = @transform_1, window_bounds = array<i64: 128, 128>}, {transform_indices = @transform_2, window_bounds = array<i64: 1, 128>}, {transform_indices = @transform_3, window_bounds = array<i64: 16, 128>}]} {
    %c0_i32 = arith.constant 0 : i32
    %0 = arith.cmpi eq, %arg2, %c0_i32 : i32
    %1 = arith.extui %0 : i1 to i32
    %c0_i32_0 = arith.constant 0 : i32
    %2 = arith.cmpi ne, %1, %c0_i32_0 : i32
    scf.if %2 {
      %cst_9 = arith.constant 0.000000e+00 : f32
      %12 = vector.broadcast %cst_9 : f32 to vector<16x128xf32>
      %c0_10 = arith.constant 0 : index
      %c0_11 = arith.constant 0 : index
      %13 = vector.load %arg7[%c0_10, %c0_11] : memref<16x128xf32, #tpu.memory_space<vmem>>, vector<16x128xf32>
      tpu.vector_store %arg7[%c0_10, %c0_11], %12 {strides = array<i32>} : memref<16x128xf32, #tpu.memory_space<vmem>>, vector<16x128xf32>,
    } else {
    }
    %c0 = arith.constant 0 : index
    %c0_1 = arith.constant 0 : index
    %3 = vector.load %arg7[%c0, %c0_1] : memref<16x128xf32, #tpu.memory_space<vmem>>, vector<16x128xf32>
    %c0_2 = arith.constant 0 : index
    %c0_3 = arith.constant 0 : index
    %4 = vector.load %arg3[%c0_2, %c0_3] : memref<16x128xbf16, #tpu.memory_space<vmem>>, vector<16x128xbf16>
    %c0_4 = arith.constant 0 : index
    %c0_5 = arith.constant 0 : index
    %5 = vector.load %arg4[%c0_4, %c0_5] : memref<128x128xbf16, #tpu.memory_space<vmem>>, vector<128x128xbf16>
    %cst = arith.constant dense<0.000000e+00> : vector<16x128xf32>
    %6 = tpu.matmul %4, %5, %cst {dimension_numbers = #tpu.dot_dimension_numbers<[1], [0], [0], [1], [0, 0, 1, 1], [], []>} : vector<16x128xbf16>, vector<128x128xbf16>, vector<16x128xf32> -> vector<16x128xf32>
    %7 = arith.addf %3, %6 : vector<16x128xf32>
    %c0_6 = arith.constant 0 : index
    %c0_7 = arith.constant 0 : index
    %8 = vector.load %arg7[%c0_6, %c0_7] : memref<16x128xf32, #tpu.memory_space<vmem>>, vector<16x128xf32>
    tpu.vector_store %arg7[%c0_6, %c0_7], %7 {strides = array<i32>} : memref<16x128xf32, #tpu.memory_space<vmem>>, vector<16x128xf32>,
    %c1_i32 = arith.constant 1 : i32
    %9 = arith.cmpi eq, %arg2, %c1_i32 : i32
    %10 = arith.extui %9 : i1 to i32
    %c0_i32_8 = arith.constant 0 : i32
    %11 = arith.cmpi ne, %10, %c0_i32_8 : i32
    scf.if %11 {
      %c0_9 = arith.constant 0 : index
      %c0_10 = arith.constant 0 : index
      %12 = vector.load %arg7[%c0_9, %c0_10] : memref<16x128xf32, #tpu.memory_space<vmem>>, vector<16x128xf32>
      %c0_11 = arith.constant 0 : index
      %c0_12 = arith.constant 0 : index
      %13 = vector.load %arg5[%c0_11, %c0_12] : memref<1x128xf32, #tpu.memory_space<vmem>>, vector<1x128xf32>
      %14 = vector.broadcast %13 : vector<1x128xf32> to vector<16x128xf32>
      %15 = arith.addf %12, %14 : vector<16x128xf32>
      %cst_13 = arith.constant 0.000000e+00 : f32
      %16 = vector.broadcast %cst_13 : f32 to vector<16x128xf32>
      %17 = arith.maximumf %15, %16 : vector<16x128xf32>
      %18 = arith.truncf %17 : vector<16x128xf32> to vector<16x128xbf16>
      %c0_14 = arith.constant 0 : index
      %c0_15 = arith.constant 0 : index
      %19 = vector.load %arg6[%c0_14, %c0_15] : memref<16x128xbf16, #tpu.memory_space<vmem>>, vector<16x128xbf16>
      tpu.vector_store %arg6[%c0_14, %c0_15], %18 {strides = array<i32>} : memref<16x128xbf16, #tpu.memory_space<vmem>>, vector<16x128xbf16>,
    } else {
    }
    return
  }
  func.func @transform_0(%arg0: i32, %arg1: i32, %arg2: i32) -> (i32, i32) {
    %c0_i32 = arith.constant 0 : i32
    return %arg0, %arg2 : i32, i32
  }
  func.func @transform_1(%arg0: i32, %arg1: i32, %arg2: i32) -> (i32, i32) {
    %c0_i32 = arith.constant 0 : i32
    return %arg2, %arg1 : i32, i32
  }
  func.func @transform_2(%arg0: i32, %arg1: i32, %arg2: i32) -> (i32, i32) {
    %c0_i32 = arith.constant 0 : i32
    %c0_i32_0 = arith.constant 0 : i32
    return %c0_i32, %arg1 : i32, i32
  }
  func.func @transform_3(%arg0: i32, %arg1: i32, %arg2: i32) -> (i32, i32) {
    %c0_i32 = arith.constant 0 : i32
    return %arg0, %arg1 : i32, i32
  }
}

module attributes {stable_mosaic.version = 11 : i64} {
  func.func @_fused_matmul_kernel(%arg0: i32, %arg1: i32, %arg2: i32, %arg3: memref<16x128xbf16, #tpu.memory_space<vmem>>, %arg4: memref<128x128xbf16, #tpu.memory_space<vmem>>, %arg5: memref<1x128xf32, #tpu.memory_space<vmem>>, %arg6: memref<16x128xbf16, #tpu.memory_space<vmem>>, %arg7: memref<16x128xbf16, #tpu.memory_space<vmem>>, %arg8: memref<16x128xf32, #tpu.memory_space<vmem>>) attributes {dimension_semantics = [#tpu.dimension_semantics<parallel>, #tpu.dimension_semantics<parallel>, #tpu.dimension_semantics<arbitrary>], iteration_bounds = array<i64: 1, 1, 3>, scalar_prefetch = 0 : i64, scratch_operands = 1 : i64, tpu.core_type = #tpu.core_type<tc>, window_params = [{transform_indices = @transform_0, window_bounds = array<i64: 16, 128>}, {transform_indices = @transform_1, window_bounds = array<i64: 128, 128>}, {transform_indices = @transform_2, window_bounds = array<i64: 1, 128>}, {transform_indices = @transform_3, window_bounds = array<i64: 16, 128>}, {transform_indices = @transform_4, window_bounds = array<i64: 16, 128>}]} {
    %c0_i32 = arith.constant 0 : i32
    %0 = arith.cmpi eq, %arg2, %c0_i32 : i32
    %1 = arith.extui %0 : i1 to i32
    %c0_i32_0 = arith.constant 0 : i32
    %2 = arith.cmpi ne, %1, %c0_i32_0 : i32
    scf.if %2 {
      %cst_9 = arith.constant 0.000000e+00 : f32
      %12 = vector.broadcast %cst_9 : f32 to vector<16x128xf32>
      %c0_10 = arith.constant 0 : index
      %c0_11 = arith.constant 0 : index
      %13 = vector.load %arg8[%c0_10, %c0_11] : memref<16x128xf32, #tpu.memory_space<vmem>>, vector<16x128xf32>
      tpu.vector_store %arg8[%c0_10, %c0_11], %12 {strides = array<i32>} : memref<16x128xf32, #tpu.memory_space<vmem>>, vector<16x128xf32>,
    } else {
    }
    %c0 = arith.constant 0 : index
    %c0_1 = arith.constant 0 : index
    %3 = vector.load %arg8[%c0, %c0_1] : memref<16x128xf32, #tpu.memory_space<vmem>>, vector<16x128xf32>
    %c0_2 = arith.constant 0 : index
    %c0_3 = arith.constant 0 : index
    %4 = vector.load %arg3[%c0_2, %c0_3] : memref<16x128xbf16, #tpu.memory_space<vmem>>, vector<16x128xbf16>
    %c0_4 = arith.constant 0 : index
    %c0_5 = arith.constant 0 : index
    %5 = vector.load %arg4[%c0_4, %c0_5] : memref<128x128xbf16, #tpu.memory_space<vmem>>, vector<128x128xbf16>
    %cst = arith.constant dense<0.000000e+00> : vector<16x128xf32>
    %6 = tpu.matmul %4, %5, %cst {dimension_numbers = #tpu.dot_dimension_numbers<[1], [0], [0], [1], [0, 0, 1, 1], [], []>} : vector<16x128xbf16>, vector<128x128xbf16>, vector<16x128xf32> -> vector<16x128xf32>
    %7 = arith.addf %3, %6 : vector<16x128xf32>
    %c0_6 = arith.constant 0 : index
    %c0_7 = arith.constant 0 : index
    %8 = vector.load %arg8[%c0_6, %c0_7] : memref<16x128xf32, #tpu.memory_space<vmem>>, vector<16x128xf32>
    tpu.vector_store %arg8[%c0_6, %c0_7], %7 {strides = array<i32>} : memref<16x128xf32, #tpu.memory_space<vmem>>, vector<16x128xf32>,
    %c2_i32 = arith.constant 2 : i32
    %9 = arith.cmpi eq, %arg2, %c2_i32 : i32
    %10 = arith.extui %9 : i1 to i32
    %c0_i32_8 = arith.constant 0 : i32
    %11 = arith.cmpi ne, %10, %c0_i32_8 : i32
    scf.if %11 {
      %c0_9 = arith.constant 0 : index
      %c0_10 = arith.constant 0 : index
      %12 = vector.load %arg8[%c0_9, %c0_10] : memref<16x128xf32, #tpu.memory_space<vmem>>, vector<16x128xf32>
      %c0_11 = arith.constant 0 : index
      %c0_12 = arith.constant 0 : index
      %13 = vector.load %arg5[%c0_11, %c0_12] : memref<1x128xf32, #tpu.memory_space<vmem>>, vector<1x128xf32>
      %14 = vector.broadcast %13 : vector<1x128xf32> to vector<16x128xf32>
      %15 = arith.addf %12, %14 : vector<16x128xf32>
      %c0_13 = arith.constant 0 : index
      %c0_14 = arith.constant 0 : index
      %16 = vector.load %arg6[%c0_13, %c0_14] : memref<16x128xbf16, #tpu.memory_space<vmem>>, vector<16x128xbf16>
      %17 = arith.extf %16 : vector<16x128xbf16> to vector<16x128xf32>
      %18 = arith.addf %15, %17 : vector<16x128xf32>
      %19 = arith.truncf %18 : vector<16x128xf32> to vector<16x128xbf16>
      %c0_15 = arith.constant 0 : index
      %c0_16 = arith.constant 0 : index
      %20 = vector.load %arg7[%c0_15, %c0_16] : memref<16x128xbf16, #tpu.memory_space<vmem>>, vector<16x128xbf16>
      tpu.vector_store %arg7[%c0_15, %c0_16], %19 {strides = array<i32>} : memref<16x128xbf16, #tpu.memory_space<vmem>>, vector<16x128xbf16>,
    } else {
    }
    return
  }
  func.func @transform_0(%arg0: i32, %arg1: i32, %arg2: i32) -> (i32, i32) {
    %c0_i32 = arith.constant 0 : i32
    return %arg0, %arg2 : i32, i32
  }
  func.func @transform_1(%arg0: i32, %arg1: i32, %arg2: i32) -> (i32, i32) {
    %c0_i32 = arith.constant 0 : i32
    return %arg2, %arg1 : i32, i32
  }
  func.func @transform_2(%arg0: i32, %arg1: i32, %arg2: i32) -> (i32, i32) {
    %c0_i32 = arith.constant 0 : i32
    %c0_i32_0 = arith.constant 0 : i32
    return %c0_i32, %arg1 : i32, i32
  }
  func.func @transform_3(%arg0: i32, %arg1: i32, %arg2: i32) -> (i32, i32) {
    %c0_i32 = arith.constant 0 : i32
    return %arg0, %arg1 : i32, i32
  }
  func.func @transform_4(%arg0: i32, %arg1: i32, %arg2: i32) -> (i32, i32) {
    %c0_i32 = arith.constant 0 : i32
    return %arg0, %arg1 : i32, i32
  }
}

module attributes {stable_mosaic.version = 11 : i64} {
  func.func @_fused_matmul_kernel(%arg0: i32, %arg1: i32, %arg2: i32, %arg3: memref<16x128xbf16, #tpu.memory_space<vmem>>, %arg4: memref<128x128xbf16, #tpu.memory_space<vmem>>, %arg5: memref<1x128xf32, #tpu.memory_space<vmem>>, %arg6: memref<16x128xbf16, #tpu.memory_space<vmem>>, %arg7: memref<16x128xf32, #tpu.memory_space<vmem>>) attributes {dimension_semantics = [#tpu.dimension_semantics<parallel>, #tpu.dimension_semantics<parallel>, #tpu.dimension_semantics<arbitrary>], iteration_bounds = array<i64: 1, 1, 3>, scalar_prefetch = 0 : i64, scratch_operands = 1 : i64, tpu.core_type = #tpu.core_type<tc>, window_params = [{transform_indices = @transform_0, window_bounds = array<i64: 16, 128>}, {transform_indices = @transform_1, window_bounds = array<i64: 128, 128>}, {transform_indices = @transform_2, window_bounds = array<i64: 1, 128>}, {transform_indices = @transform_3, window_bounds = array<i64: 16, 128>}]} {
    %c0_i32 = arith.constant 0 : i32
    %0 = arith.cmpi eq, %arg2, %c0_i32 : i32
    %1 = arith.extui %0 : i1 to i32
    %c0_i32_0 = arith.constant 0 : i32
    %2 = arith.cmpi ne, %1, %c0_i32_0 : i32
    scf.if %2 {
      %cst_9 = arith.constant 0.000000e+00 : f32
      %12 = vector.broadcast %cst_9 : f32 to vector<16x128xf32>
      %c0_10 = arith.constant 0 : index
      %c0_11 = arith.constant 0 : index
      %13 = vector.load %arg7[%c0_10, %c0_11] : memref<16x128xf32, #tpu.memory_space<vmem>>, vector<16x128xf32>
      tpu.vector_store %arg7[%c0_10, %c0_11], %12 {strides = array<i32>} : memref<16x128xf32, #tpu.memory_space<vmem>>, vector<16x128xf32>,
    } else {
    }
    %c0 = arith.constant 0 : index
    %c0_1 = arith.constant 0 : index
    %3 = vector.load %arg7[%c0, %c0_1] : memref<16x128xf32, #tpu.memory_space<vmem>>, vector<16x128xf32>
    %c0_2 = arith.constant 0 : index
    %c0_3 = arith.constant 0 : index
    %4 = vector.load %arg3[%c0_2, %c0_3] : memref<16x128xbf16, #tpu.memory_space<vmem>>, vector<16x128xbf16>
    %c0_4 = arith.constant 0 : index
    %c0_5 = arith.constant 0 : index
    %5 = vector.load %arg4[%c0_4, %c0_5] : memref<128x128xbf16, #tpu.memory_space<vmem>>, vector<128x128xbf16>
    %cst = arith.constant dense<0.000000e+00> : vector<16x128xf32>
    %6 = tpu.matmul %4, %5, %cst {dimension_numbers = #tpu.dot_dimension_numbers<[1], [0], [0], [1], [0, 0, 1, 1], [], []>} : vector<16x128xbf16>, vector<128x128xbf16>, vector<16x128xf32> -> vector<16x128xf32>
    %7 = arith.addf %3, %6 : vector<16x128xf32>
    %c0_6 = arith.constant 0 : index
    %c0_7 = arith.constant 0 : index
    %8 = vector.load %arg7[%c0_6, %c0_7] : memref<16x128xf32, #tpu.memory_space<vmem>>, vector<16x128xf32>
    tpu.vector_store %arg7[%c0_6, %c0_7], %7 {strides = array<i32>} : memref<16x128xf32, #tpu.memory_space<vmem>>, vector<16x128xf32>,
    %c2_i32 = arith.constant 2 : i32
    %9 = arith.cmpi eq, %arg2, %c2_i32 : i32
    %10 = arith.extui %9 : i1 to i32
    %c0_i32_8 = arith.constant 0 : i32
    %11 = arith.cmpi ne, %10, %c0_i32_8 : i32
    scf.if %11 {
      %c0_9 = arith.constant 0 : index
      %c0_10 = arith.constant 0 : index
      %12 = vector.load %arg7[%c0_9, %c0_10] : memref<16x128xf32, #tpu.memory_space<vmem>>, vector<16x128xf32>
      %c0_11 = arith.constant 0 : index
      %c0_12 = arith.constant 0 : index
      %13 = vector.load %arg5[%c0_11, %c0_12] : memref<1x128xf32, #tpu.memory_space<vmem>>, vector<1x128xf32>
      %14 = vector.broadcast %13 : vector<1x128xf32> to vector<16x128xf32>
      %15 = arith.addf %12, %14 : vector<16x128xf32>
      %cst_13 = arith.constant 0.000000e+00 : f32
      %16 = vector.broadcast %cst_13 : f32 to vector<16x128xf32>
      %17 = arith.maximumf %15, %16 : vector<16x128xf32>
      %18 = arith.truncf %17 : vector<16x128xf32> to vector<16x128xbf16>
      %c0_14 = arith.constant 0 : index
      %c0_15 = arith.constant 0 : index
      %19 = vector.load %arg6[%c0_14, %c0_15] : memref<16x128xbf16, #tpu.memory_space<vmem>>, vector<16x128xbf16>
      tpu.vector_store %arg6[%c0_14, %c0_15], %18 {strides = array<i32>} : memref<16x128xbf16, #tpu.memory_space<vmem>>, vector<16x128xbf16>,
    } else {
    }
    return
  }
  func.func @transform_0(%arg0: i32, %arg1: i32, %arg2: i32) -> (i32, i32) {
    %c0_i32 = arith.constant 0 : i32
    return %arg0, %arg2 : i32, i32
  }
  func.func @transform_1(%arg0: i32, %arg1: i32, %arg2: i32) -> (i32, i32) {
    %c0_i32 = arith.constant 0 : i32
    return %arg2, %arg1 : i32, i32
  }
  func.func @transform_2(%arg0: i32, %arg1: i32, %arg2: i32) -> (i32, i32) {
    %c0_i32 = arith.constant 0 : i32
    %c0_i32_0 = arith.constant 0 : i32
    return %c0_i32, %arg1 : i32, i32
  }
  func.func @transform_3(%arg0: i32, %arg1: i32, %arg2: i32) -> (i32, i32) {
    %c0_i32 = arith.constant 0 : i32
    return %arg0, %arg1 : i32, i32
  }
}

module attributes {stable_mosaic.version = 11 : i64} {
  func.func @_fused_matmul_kernel(%arg0: i32, %arg1: i32, %arg2: i32, %arg3: memref<64x128xbf16, #tpu.memory_space<vmem>>, %arg4: memref<128x128xbf16, #tpu.memory_space<vmem>>, %arg5: memref<1x128xf32, #tpu.memory_space<vmem>>, %arg6: memref<64x128xbf16, #tpu.memory_space<vmem>>, %arg7: memref<64x128xf32, #tpu.memory_space<vmem>>) attributes {dimension_semantics = [#tpu.dimension_semantics<parallel>, #tpu.dimension_semantics<parallel>, #tpu.dimension_semantics<arbitrary>], iteration_bounds = array<i64: 1, 1, 3>, scalar_prefetch = 0 : i64, scratch_operands = 1 : i64, tpu.core_type = #tpu.core_type<tc>, window_params = [{transform_indices = @transform_0, window_bounds = array<i64: 64, 128>}, {transform_indices = @transform_1, window_bounds = array<i64: 128, 128>}, {transform_indices = @transform_2, window_bounds = array<i64: 1, 128>}, {transform_indices = @transform_3, window_bounds = array<i64: 64, 128>}]} {
    %c0_i32 = arith.constant 0 : i32
    %0 = arith.cmpi eq, %arg2, %c0_i32 : i32
    %1 = arith.extui %0 : i1 to i32
    %c0_i32_0 = arith.constant 0 : i32
    %2 = arith.cmpi ne, %1, %c0_i32_0 : i32
    scf.if %2 {
      %cst_9 = arith.constant 0.000000e+00 : f32
      %12 = vector.broadcast %cst_9 : f32 to vector<64x128xf32>
      %c0_10 = arith.constant 0 : index
      %c0_11 = arith.constant 0 : index
      %13 = vector.load %arg7[%c0_10, %c0_11] : memref<64x128xf32, #tpu.memory_space<vmem>>, vector<64x128xf32>
      tpu.vector_store %arg7[%c0_10, %c0_11], %12 {strides = array<i32>} : memref<64x128xf32, #tpu.memory_space<vmem>>, vector<64x128xf32>,
    } else {
    }
    %c0 = arith.constant 0 : index
    %c0_1 = arith.constant 0 : index
    %3 = vector.load %arg7[%c0, %c0_1] : memref<64x128xf32, #tpu.memory_space<vmem>>, vector<64x128xf32>
    %c0_2 = arith.constant 0 : index
    %c0_3 = arith.constant 0 : index
    %4 = vector.load %arg3[%c0_2, %c0_3] : memref<64x128xbf16, #tpu.memory_space<vmem>>, vector<64x128xbf16>
    %c0_4 = arith.constant 0 : index
    %c0_5 = arith.constant 0 : index
    %5 = vector.load %arg4[%c0_4, %c0_5] : memref<128x128xbf16, #tpu.memory_space<vmem>>, vector<128x128xbf16>
    %cst = arith.constant dense<0.000000e+00> : vector<64x128xf32>
    %6 = tpu.matmul %4, %5, %cst {dimension_numbers = #tpu.dot_dimension_numbers<[1], [0], [0], [1], [0, 0, 1, 1], [], []>} : vector<64x128xbf16>, vector<128x128xbf16>, vector<64x128xf32> -> vector<64x128xf32>
    %7 = arith.addf %3, %6 : vector<64x128xf32>
    %c0_6 = arith.constant 0 : index
    %c0_7 = arith.constant 0 : index
    %8 = vector.load %arg7[%c0_6, %c0_7] : memref<64x128xf32, #tpu.memory_space<vmem>>, vector<64x128xf32>
    tpu.vector_store %arg7[%c0_6, %c0_7], %7 {strides = array<i32>} : memref<64x128xf32, #tpu.memory_space<vmem>>, vector<64x128xf32>,
    %c2_i32 = arith.constant 2 : i32
    %9 = arith.cmpi eq, %arg2, %c2_i32 : i32
    %10 = arith.extui %9 : i1 to i32
    %c0_i32_8 = arith.constant 0 : i32
    %11 = arith.cmpi ne, %10, %c0_i32_8 : i32
    scf.if %11 {
      %c0_9 = arith.constant 0 : index
      %c0_10 = arith.constant 0 : index
      %12 = vector.load %arg7[%c0_9, %c0_10] : memref<64x128xf32, #tpu.memory_space<vmem>>, vector<64x128xf32>
      %c0_11 = arith.constant 0 : index
      %c0_12 = arith.constant 0 : index
      %13 = vector.load %arg5[%c0_11, %c0_12] : memref<1x128xf32, #tpu.memory_space<vmem>>, vector<1x128xf32>
      %14 = vector.broadcast %13 : vector<1x128xf32> to vector<64x128xf32>
      %15 = arith.addf %12, %14 : vector<64x128xf32>
      %cst_13 = arith.constant 0.000000e+00 : f32
      %16 = vector.broadcast %cst_13 : f32 to vector<64x128xf32>
      %17 = arith.maximumf %15, %16 : vector<64x128xf32>
      %18 = arith.truncf %17 : vector<64x128xf32> to vector<64x128xbf16>
      %c0_14 = arith.constant 0 : index
      %c0_15 = arith.constant 0 : index
      %19 = vector.load %arg6[%c0_14, %c0_15] : memref<64x128xbf16, #tpu.memory_space<vmem>>, vector<64x128xbf16>
      tpu.vector_store %arg6[%c0_14, %c0_15], %18 {strides = array<i32>} : memref<64x128xbf16, #tpu.memory_space<vmem>>, vector<64x128xbf16>,
    } else {
    }
    return
  }
  func.func @transform_0(%arg0: i32, %arg1: i32, %arg2: i32) -> (i32, i32) {
    %c0_i32 = arith.constant 0 : i32
    return %arg0, %arg2 : i32, i32
  }
  func.func @transform_1(%arg0: i32, %arg1: i32, %arg2: i32) -> (i32, i32) {
    %c0_i32 = arith.constant 0 : i32
    return %arg2, %arg1 : i32, i32
  }
  func.func @transform_2(%arg0: i32, %arg1: i32, %arg2: i32) -> (i32, i32) {
    %c0_i32 = arith.constant 0 : i32
    %c0_i32_0 = arith.constant 0 : i32
    return %c0_i32, %arg1 : i32, i32
  }
  func.func @transform_3(%arg0: i32, %arg1: i32, %arg2: i32) -> (i32, i32) {
    %c0_i32 = arith.constant 0 : i32
    return %arg0, %arg1 : i32, i32
  }
}

module attributes {stable_mosaic.version = 11 : i64} {
  func.func @_fused_matmul_kernel(%arg0: i32, %arg1: i32, %arg2: i32, %arg3: memref<256x128xbf16, #tpu.memory_space<vmem>>, %arg4: memref<128x128xbf16, #tpu.memory_space<vmem>>, %arg5: memref<1x128xf32, #tpu.memory_space<vmem>>, %arg6: memref<256x128xf32, #tpu.memory_space<vmem>>, %arg7: memref<256x128xf32, #tpu.memory_space<vmem>>) attributes {dimension_semantics = [#tpu.dimension_semantics<parallel>, #tpu.dimension_semantics<parallel>, #tpu.dimension_semantics<arbitrary>], iteration_bounds = array<i64: 1, 1, 4>, scalar_prefetch = 0 : i64, scratch_operands = 1 : i64, tpu.core_type = #tpu.core_type<tc>, window_params = [{transform_indices = @transform_0, window_bounds = array<i64: 256, 128>}, {transform_indices = @transform_1, window_bounds = array<i64: 128, 128>}, {transform_indices = @transform_2, window_bounds = array<i64: 1, 128>}, {transform_indices = @transform_3, window_bounds = array<i64: 256, 128>}]} {
    %c0_i32 = arith.constant 0 : i32
    %0 = arith.cmpi eq, %arg2, %c0_i32 : i32
    %1 = arith.extui %0 : i1 to i32
    %c0_i32_0 = arith.constant 0 : i32
    %2 = arith.cmpi ne, %1, %c0_i32_0 : i32
    scf.if %2 {
      %cst_9 = arith.constant 0.000000e+00 : f32
      %12 = vector.broadcast %cst_9 : f32 to vector<256x128xf32>
      %c0_10 = arith.constant 0 : index
      %c0_11 = arith.constant 0 : index
      %13 = vector.load %arg7[%c0_10, %c0_11] : memref<256x128xf32, #tpu.memory_space<vmem>>, vector<256x128xf32>
      tpu.vector_store %arg7[%c0_10, %c0_11], %12 {strides = array<i32>} : memref<256x128xf32, #tpu.memory_space<vmem>>, vector<256x128xf32>,
    } else {
    }
    %c0 = arith.constant 0 : index
    %c0_1 = arith.constant 0 : index
    %3 = vector.load %arg7[%c0, %c0_1] : memref<256x128xf32, #tpu.memory_space<vmem>>, vector<256x128xf32>
    %c0_2 = arith.constant 0 : index
    %c0_3 = arith.constant 0 : index
    %4 = vector.load %arg3[%c0_2, %c0_3] : memref<256x128xbf16, #tpu.memory_space<vmem>>, vector<256x128xbf16>
    %c0_4 = arith.constant 0 : index
    %c0_5 = arith.constant 0 : index
    %5 = vector.load %arg4[%c0_4, %c0_5] : memref<128x128xbf16, #tpu.memory_space<vmem>>, vector<128x128xbf16>
    %cst = arith.constant dense<0.000000e+00> : vector<256x128xf32>
    %6 = tpu.matmul %4, %5, %cst {dimension_numbers = #tpu.dot_dimension_numbers<[1], [0], [0], [1], [0, 0, 1, 1], [], []>} : vector<256x128xbf16>, vector<128x128xbf16>, vector<256x128xf32> -> vector<256x128xf32>
    %7 = arith.addf %3, %6 : vector<256x128xf32>
    %c0_6 = arith.constant 0 : index
    %c0_7 = arith.constant 0 : index
    %8 = vector.load %arg7[%c0_6, %c0_7] : memref<256x128xf32, #tpu.memory_space<vmem>>, vector<256x128xf32>
    tpu.vector_store %arg7[%c0_6, %c0_7], %7 {strides = array<i32>} : memref<256x128xf32, #tpu.memory_space<vmem>>, vector<256x128xf32>,
    %c3_i32 = arith.constant 3 : i32
    %9 = arith.cmpi eq, %arg2, %c3_i32 : i32
    %10 = arith.extui %9 : i1 to i32
    %c0_i32_8 = arith.constant 0 : i32
    %11 = arith.cmpi ne, %10, %c0_i32_8 : i32
    scf.if %11 {
      %c0_9 = arith.constant 0 : index
      %c0_10 = arith.constant 0 : index
      %12 = vector.load %arg7[%c0_9, %c0_10] : memref<256x128xf32, #tpu.memory_space<vmem>>, vector<256x128xf32>
      %c0_11 = arith.constant 0 : index
      %c0_12 = arith.constant 0 : index
      %13 = vector.load %arg5[%c0_11, %c0_12] : memref<1x128xf32, #tpu.memory_space<vmem>>, vector<1x128xf32>
      %14 = vector.broadcast %13 : vector<1x128xf32> to vector<256x128xf32>
      %15 = arith.addf %12, %14 : vector<256x128xf32>
      %16 = math.tanh %15 : vector<256x128xf32>
      %c0_13 = arith.constant 0 : index
      %c0_14 = arith.constant 0 : index
      %17 = vector.load %arg6[%c0_13, %c0_14] : memref<256x128xf32, #tpu.memory_space<vmem>>, vector<256x128xf32>
      tpu.vector_store %arg6[%c0_13, %c0_14], %16 {strides = array<i32>} : memref<256x128xf32, #tpu.memory_space<vmem>>, vector<256x128xf32>,
    } else {
    }
    return
  }
  func.func @transform_0(%arg0: i32, %arg1: i32, %arg2: i32) -> (i32, i32) {
    %c0_i32 = arith.constant 0 : i32
    return %arg0, %arg2 : i32, i32
  }
  func.func @transform_1(%arg0: i32, %arg1: i32, %arg2: i32) -> (i32, i32) {
    %c0_i32 = arith.constant 0 : i32
    return %arg2, %arg1 : i32, i32
  }
  func.func @transform_2(%arg0: i32, %arg1: i32, %arg2: i32) -> (i32, i32) {
    %c0_i32 = arith.constant 0 : i32
    %c0_i32_0 = arith.constant 0 : i32
    return %c0_i32, %arg1 : i32, i32
  }
  func.func @transform_3(%arg0: i32, %arg1: i32, %arg2: i32) -> (i32, i32) {
    %c0_i32 = arith.constant 0 : i32
    return %arg0, %arg1 : i32, i32
  }
}

</mosaic_0001>

<bundles_post_ra>
// kernel: _lambda_.10
= control target key start
LH: loop header
LB: loop body
LE: loop exit
PB: predicated region body
PF: predicated region fallthrough
CT: control target
= control target key end

     0   :  { %s1468_s12 = smov 0   ;;  %s1470_s13 = smov 0   ;;  %s1716_s0 = inlined_call_operand.vmem [shape: bf16[256,256], index: 0, kind: input, shape index: {}]   ;;  %s1717_s1 = inlined_call_operand.vmem [shape: bf16[256,128], index: 1, kind: input, shape index: {}]   ;;  %s1718_s2 = inlined_call_operand.vmem [shape: f32[1,128], index: 2, kind: input, shape index: {}]   ;;  %s1719_s3 = inlined_call_operand.vmem [shape: bf16[256,128], index: 3, kind: output, shape index: {}]  }
   0x1   :  { %s1472_s14 = smov 0   ;;  %s1474_s15 = smov 0  }
   0x2   :  { %s1476_s16 = smov 0  }
   0x3 LB: > { %s25_s17 = sadd.s32 1, %s1441_s15  ;;  %p48_p1 = scmp.ne.s32.totalorder %s1433_s13, %s1429_s12  ;;  %s1445_s16 = sphi %s1476_s16, %s13_s16   ;;  %s1441_s15 = sphi %s1474_s15, %s1723_s15   ;;  %s1437_s14 = sphi %s1472_s14, %s1722_s14   ;;  %s1433_s13 = sphi %s1470_s13, %s1721_s13   ;;  %s1429_s12 = sphi %s1468_s12, %s1720_s12  }
   0x4   : > { %p26_p0 = scmp.ge.s32.totalorder %s25_s17, 2  ;;  %p49_p2 = scmp.eq.s32.totalorder %s1445_s16, 0 }
   0x5   : > { %s41_s19 = sadd.s32 1, %s1433_s13  ;;  %p1113_p5 = scmp.ge.s32.totalorder %s1445_s16, 2 }
   0x6   : > { %s1725_s17 = smov (%p26_p0, %s25_s17), 0  ;;  %p50_p3 = por %p49_p2, %p48_p1 }
   0x7   : > { %s37_s18 = ssub.s32 %s1441_s15, %s1725_s17  ;;  %162 = sbr.rel (%p1113_p5) target bundleno = 48 (0x30), region = 20 }
   0x8   : > { %p39_p4 = scmp.eq.s32.totalorder %s37_s18, 0 }
   0xa   : > { %s1503_s20 = scalar_select %p39_p4, %s1433_s13, %s41_s19  }
   0xc   : > { %165 = sbr.rel (!%p50_p3) target bundleno = 48 (0x30), region = 24  ;;  %s167_s21 = sand.u32 (%p50_p3), 1, %s1433_s13  }
   0xd   : > { %s1115_s22 = sshll.u32 (%p50_p3), %s1441_s15, 2  ;;  %s1114_s23 = sshll.u32 (%p50_p3), %s167_s21, 7 }
   0xe   : > { %s1511_s26 = scalar_lea.vmem (%p50_p3), %s1716_s0, %s1115_s22  ;;  %s1515_s27 = scalar_lea.vmem (%p50_p3), [#allocation3], %s1114_s23 }
   0xf   : > { %v191_v0 = vld [vmem:[%s1511_s26] sm:$0xf] (%p50_p3)  ;;  %v193_v1 = vld [vmem:[%s1511_s26 + $0x8] sm:$0xf] (%p50_p3)  ;;  %v195_v2 = vld [vmem:[%s1511_s26 + $0x10] sm:$0xf] (%p50_p3) }
  0x10   : > { %192 = vst [vmem:[%s1515_s27] sm:$0xf] (%p50_p3), %v191_v0  ;;  %v197_v3 = vld [vmem:[%s1511_s26 + $0x18] sm:$0xf] (%p50_p3)  ;;  %v199_v4 = vld [vmem:[%s1511_s26 + $0x20] sm:$0xf] (%p50_p3) }
  0x11   : > { %194 = vst [vmem:[%s1515_s27 + $0x4] sm:$0xf] %v193_v1  ;;  %v201_v5 = vld [vmem:[%s1511_s26 + $0x28] sm:$0xf]  ;;  %v203_v6 = vld [vmem:[%s1511_s26 + $0x30] sm:$0xf] }
  0x12   : > { %196 = vst [vmem:[%s1515_s27 + $0x8] sm:$0xf] %v195_v2  ;;  %v205_v7 = vld [vmem:[%s1511_s26 + $0x38] sm:$0xf]  ;;  %v207_v8 = vld [vmem:[%s1511_s26 + $0x40] sm:$0xf] }
  0x13   : > { %198 = vst [vmem:[%s1515_s27 + $0xc] sm:$0xf] %v197_v3  ;;  %v209_v9 = vld [vmem:[%s1511_s26 + $0x48] sm:$0xf]  ;;  %v211_v10 = vld [vmem:[%s1511_s26 + $0x50] sm:$0xf] }
  0x14   : > { %200 = vst [vmem:[%s1515_s27 + $0x10] sm:$0xf] %v199_v4  ;;  %v213_v11 = vld [vmem:[%s1511_s26 + $0x58] sm:$0xf]  ;;  %v215_v12 = vld [vmem:[%s1511_s26 + $0x60] sm:$0xf] }
  0x15   : > { %202 = vst [vmem:[%s1515_s27 + $0x14] sm:$0xf] %v201_v5  ;;  %v217_v13 = vld [vmem:[%s1511_s26 + $0x68] sm:$0xf]  ;;  %v219_v14 = vld [vmem:[%s1511_s26 + $0x70] sm:$0xf] }
  0x16   : > { %204 = vst [vmem:[%s1515_s27 + $0x18] sm:$0xf] %v203_v6  ;;  %v221_v15 = vld [vmem:[%s1511_s26 + $0x78] sm:$0xf]  ;;  %v223_v16 = vld [vmem:[%s1511_s26 + $0x80] sm:$0xf] }
  0x17   : > { %206 = vst [vmem:[%s1515_s27 + $0x1c] sm:$0xf] %v205_v7  ;;  %v225_v17 = vld [vmem:[%s1511_s26 + $0x88] sm:$0xf]  ;;  %v227_v18 = vld [vmem:[%s1511_s26 + $0x90] sm:$0xf] }
  0x18   : > { %208 = vst [vmem:[%s1515_s27 + $0x20] sm:$0xf] %v207_v8  ;;  %v229_v19 = vld [vmem:[%s1511_s26 + $0x98] sm:$0xf]  ;;  %v231_v20 = vld [vmem:[%s1511_s26 + $0xa0] sm:$0xf] }
  0x19   : > { %210 = vst [vmem:[%s1515_s27 + $0x24] sm:$0xf] %v209_v9  ;;  %v233_v21 = vld [vmem:[%s1511_s26 + $0xa8] sm:$0xf]  ;;  %v235_v22 = vld [vmem:[%s1511_s26 + $0xb0] sm:$0xf] }
  0x1a   : > { %212 = vst [vmem:[%s1515_s27 + $0x28] sm:$0xf] %v211_v10  ;;  %v237_v23 = vld [vmem:[%s1511_s26 + $0xb8] sm:$0xf]  ;;  %v239_v24 = vld [vmem:[%s1511_s26 + $0xc0] sm:$0xf] }
  0x1b   : > { %214 = vst [vmem:[%s1515_s27 + $0x2c] sm:$0xf] %v213_v11  ;;  %v241_v25 = vld [vmem:[%s1511_s26 + $0xc8] sm:$0xf]  ;;  %v243_v26 = vld [vmem:[%s1511_s26 + $0xd0] sm:$0xf] }
  0x1c   : > { %216 = vst [vmem:[%s1515_s27 + $0x30] sm:$0xf] %v215_v12  ;;  %v245_v27 = vld [vmem:[%s1511_s26 + $0xd8] sm:$0xf]  ;;  %v247_v28 = vld [vmem:[%s1511_s26 + $0xe0] sm:$0xf] }
  0x1d   : > { %218 = vst [vmem:[%s1515_s27 + $0x34] sm:$0xf] %v217_v13  ;;  %v249_v29 = vld [vmem:[%s1511_s26 + $0xe8] sm:$0xf]  ;;  %v251_v30 = vld [vmem:[%s1511_s26 + $0xf0] sm:$0xf] }
  0x1e   : > { %220 = vst [vmem:[%s1515_s27 + $0x38] sm:$0xf] %v219_v14  ;;  %v253_v31 = vld [vmem:[%s1511_s26 + $0xf8] sm:$0xf] }
  0x1f   : > { %222 = vst [vmem:[%s1515_s27 + $0x3c] sm:$0xf] %v221_v15 }
  0x20   : > { %224 = vst [vmem:[%s1515_s27 + $0x40] sm:$0xf] %v223_v16 }
  0x21   : > { %226 = vst [vmem:[%s1515_s27 + $0x44] sm:$0xf] %v225_v17 }
  0x22   : > { %228 = vst [vmem:[%s1515_s27 + $0x48] sm:$0xf] %v227_v18 }
  0x23   : > { %230 = vst [vmem:[%s1515_s27 + $0x4c] sm:$0xf] %v229_v19 }
  0x24   : > { %232 = vst [vmem:[%s1515_s27 + $0x50] sm:$0xf] %v231_v20 }
  0x25   : > { %234 = vst [vmem:[%s1515_s27 + $0x54] sm:$0xf] %v233_v21 }
  0x26   : > { %236 = vst [vmem:[%s1515_s27 + $0x58] sm:$0xf] %v235_v22 }
  0x27   : > { %238 = vst [vmem:[%s1515_s27 + $0x5c] sm:$0xf] %v237_v23 }
  0x28   : > { %240 = vst [vmem:[%s1515_s27 + $0x60] sm:$0xf] %v239_v24 }
  0x29   : > { %242 = vst [vmem:[%s1515_s27 + $0x64] sm:$0xf] %v241_v25 }
  0x2a   : > { %244 = vst [vmem:[%s1515_s27 + $0x68] sm:$0xf] %v243_v26 }
  0x2b   : > { %246 = vst [vmem:[%s1515_s27 + $0x6c] sm:$0xf] %v245_v27 }
  0x2c   : > { %248 = vst [vmem:[%s1515_s27 + $0x70] sm:$0xf] %v247_v28 }
  0x2d   : > { %250 = vst [vmem:[%s1515_s27 + $0x74] sm:$0xf] %v249_v29 }
  0x2e   : > { %252 = vst [vmem:[%s1515_s27 + $0x78] sm:$0xf] %v251_v30 }
  0x2f   : > { %254 = vst [vmem:[%s1515_s27 + $0x7c] sm:$0xf] %v253_v31 }
  0x30 PF: > { %p1116_p6 = scmp.ge.s32.totalorder %s1445_s16, 1  ;;  %p353_p7 = scmp.lt.s32.totalorder %s1445_s16, 3 }
  0x32   : > { %p354_p8 = pnand %p1116_p6, %p353_p7 }
  0x33   : > { %s360_s28 = sand.u32 (!%p354_p8), 1, %s1429_s12   ;;  %s1118_s29 = sshll.u32 (!%p354_p8), %s1437_s14, 4 }
  0x34   : > { %357 = sbr.rel (%p354_p8) target bundleno = 346 (0x15a), region = 69  ;;  %s1117_s30 = sshll.u32 (!%p354_p8), %s360_s28, 7 }
  0x35   : > { %p399_p9 = scmp.lt.s32.totalorder (!%p354_p8), %s1118_s29, 31  ;;  %s1588_s8 = scalar_lea.vmem (!%p354_p8), [#allocation3], %s1117_s30 }
  0x36   : > { %p1120_p10 = scmp.ne.s32.totalorder (!%p354_p8), %s1437_s14, 0 }
  0x39   : > { %s1727_s29 = smov (!%p399_p9, %s1118_s29), 31  ;;  %422 = sbr.rel (%p1120_p10) target bundleno = 95 (0x5f), region = 77 }
  0x3a   : > { %s1119_s4 = sshll.u32 %s1727_s29, 2 }
  0x3b   : > { %s1586_s7 = scalar_lea.vmem %s1717_s1, %s1119_s4 }
  0x3e   : > { %v1447_v32 = vmov 0.0  }
  0x3f   : > { %423 = vst [vmem:[#allocation2 + $0xb0] sm:$0xff] %v1447_v32 }
  0x40   : > { %424 = vst [vmem:[#allocation2] sm:$0xff] %v1447_v32 }
  0x41   : > { %425 = vst [vmem:[#allocation2 + $0xd8] sm:$0xff] %v1447_v32 }
  0x42   : > { %426 = vst [vmem:[#allocation2 + $0x18] sm:$0xff] %v1447_v32 }
  0x43   : > { %427 = vst [vmem:[#allocation2 + $0x50] sm:$0xff] %v1447_v32 }
  0x44   : > { %428 = vst [vmem:[#allocation2 + $0x68] sm:$0xff] %v1447_v32 }
  0x45   : > { %429 = vst [vmem:[#allocation2 + $0x30] sm:$0xff] %v1447_v32 }
  0x46   : > { %430 = vst [vmem:[#allocation2 + $0x48] sm:$0xff] %v1447_v32 }
  0x47   : > { %431 = vst [vmem:[#allocation2 + $0x80] sm:$0xff] %v1447_v32 }
  0x48   : > { %432 = vst [vmem:[#allocation2 + $0x88] sm:$0xff] %v1447_v32 }
  0x49   : > { %433 = vst [vmem:[#allocation2 + $0xe8] sm:$0xff] %v1447_v32 }
  0x4a   : > { %434 = vst [vmem:[#allocation2 + $0xb8] sm:$0xff] %v1447_v32 }
  0x4b   : > { %435 = vst [vmem:[#allocation2 + $0x60] sm:$0xff] %v1447_v32 }
  0x4c   : > { %436 = vst [vmem:[#allocation2 + $0xf0] sm:$0xff] %v1447_v32 }
  0x4d   : > { %437 = vst [vmem:[#allocation2 + $0x8] sm:$0xff] %v1447_v32 }
  0x4e   : > { %438 = vst [vmem:[#allocation2 + $0x78] sm:$0xff] %v1447_v32 }
  0x4f   : > { %439 = vst [vmem:[#allocation2 + $0x38] sm:$0xff] %v1447_v32 }
  0x50   : > { %440 = vst [vmem:[#allocation2 + $0x58] sm:$0xff] %v1447_v32 }
  0x51   : > { %441 = vst [vmem:[#allocation2 + $0x40] sm:$0xff] %v1447_v32 }
  0x52   : > { %442 = vst [vmem:[#allocation2 + $0xc8] sm:$0xff] %v1447_v32 }
  0x53   : > { %443 = vst [vmem:[#allocation2 + $0xe0] sm:$0xff] %v1447_v32 }
  0x54   : > { %444 = vst [vmem:[#allocation2 + $0x90] sm:$0xff] %v1447_v32 }
  0x55   : > { %445 = vst [vmem:[#allocation2 + $0x70] sm:$0xff] %v1447_v32 }
  0x56   : > { %446 = vst [vmem:[#allocation2 + $0xc0] sm:$0xff] %v1447_v32 }
  0x57   : > { %447 = vst [vmem:[#allocation2 + $0xa8] sm:$0xff] %v1447_v32 }
  0x58   : > { %448 = vst [vmem:[#allocation2 + $0xd0] sm:$0xff] %v1447_v32 }
  0x59   : > { %449 = vst [vmem:[#allocation2 + $0x10] sm:$0xff] %v1447_v32 }
  0x5a   : > { %450 = vst [vmem:[#allocation2 + $0x28] sm:$0xff] %v1447_v32 }
  0x5b   : > { %451 = vst [vmem:[#allocation2 + $0xa0] sm:$0xff] %v1447_v32 }
  0x5c   : > { %452 = vst [vmem:[#allocation2 + $0xf8] sm:$0xff] %v1447_v32 }
  0x5d   : > { %453 = vst [vmem:[#allocation2 + $0x20] sm:$0xff] %v1447_v32 }
  0x5e   : > { %454 = vst [vmem:[#allocation2 + $0x98] sm:$0xff] %v1447_v32 }
  0x5f PF: > { %v1245_v33 = vld [vmem:[%s1586_s7 + $0x38] sm:$0xff]  ;;  %v1244_v34 = vld [vmem:[%s1586_s7 + $0x30] sm:$0xff]  ;;  %v1243_v35 = vld [vmem:[%s1586_s7 + $0x28] sm:$0xff]  ;;  %p1217_p11 = scmp.ne.s32.totalorder %s1437_s14, 1 }
  0x60   : > { %679 = vmatpush.bf16.msra.mxu0 %v1245_v33  ;;  %1341 = vmatpush.bf16.msra.mxu1 %v1245_v33  ;;  %v1242_v36 = vld [vmem:[%s1586_s7 + $0x20] sm:$0xff]  ;;  %v1241_v37 = vld [vmem:[%s1586_s7 + $0x18] sm:$0xff]  ;;  %v1240_v38 = vld [vmem:[%s1586_s7 + $0x10] sm:$0xff] }
  0x61   : > { %1342 = vmatpush.bf16.msra.mxu2 %v1245_v33  ;;  %1343 = vmatpush.bf16.msra.mxu3 %v1245_v33  ;;  %v1239_v39 = vld [vmem:[%s1586_s7 + $0x8] sm:$0xff]  ;;  %v1238_v40 = vld [vmem:[%s1586_s7] sm:$0xff]  ;;  %v1224_v49 = vld [vmem:[%s1588_s8 + $0x10] sm:$0xff] }
  0x62   : > { %v1222_v41 = vld [vmem:[%s1588_s8] sm:$0xff]  ;;  %v1223_v45 = vld [vmem:[%s1588_s8 + $0x8] sm:$0xff]  ;;  %v1228_v50 = vld [vmem:[%s1588_s8 + $0x30] sm:$0xff] }
  0x63   : > { %v1226_v42 = vld [vmem:[%s1588_s8 + $0x20] sm:$0xff]  ;;  %v1227_v46 = vld [vmem:[%s1588_s8 + $0x28] sm:$0xff]  ;;  %v1232_v51 = vld [vmem:[%s1588_s8 + $0x50] sm:$0xff] }
  0x64   : > { %680 = vmatpush.bf16.msra.mxu0 %v1244_v34  ;;  %1344 = vmatpush.bf16.msra.mxu1 %v1244_v34  ;;  %v1230_v43 = vld [vmem:[%s1588_s8 + $0x40] sm:$0xff]  ;;  %v1231_v47 = vld [vmem:[%s1588_s8 + $0x48] sm:$0xff]  ;;  %v1236_v52 = vld [vmem:[%s1588_s8 + $0x70] sm:$0xff] }
  0x65   : > { %1345 = vmatpush.bf16.msra.mxu2 %v1244_v34  ;;  %1346 = vmatpush.bf16.msra.mxu3 %v1244_v34  ;;  %v1234_v44 = vld [vmem:[%s1588_s8 + $0x60] sm:$0xff]  ;;  %v1235_v48 = vld [vmem:[%s1588_s8 + $0x68] sm:$0xff]  ;;  %v1225_v53 = vld [vmem:[%s1588_s8 + $0x18] sm:$0xff] }
  0x66   : > { %v1229_v54 = vld [vmem:[%s1588_s8 + $0x38] sm:$0xff]  ;;  %v455_v57 = vld [vmem:[#allocation2 + $0xb0] sm:$0xff]  ;;  %v463_v58 = vld [vmem:[#allocation2 + $0x80] sm:$0xff] }
  0x67   : > { %v1233_v55 = vld [vmem:[%s1588_s8 + $0x58] sm:$0xff]  ;;  %v479_v0 = vld [vmem:[#allocation2 + $0xa8] sm:$0xff]  ;;  %v456_v1 = vld [vmem:[#allocation2] sm:$0xff] }
  0x68   : > { %681 = vmatpush.bf16.msra.mxu0 %v1243_v35  ;;  %1347 = vmatpush.bf16.msra.mxu1 %v1243_v35  ;;  %v1237_v56 = vld [vmem:[%s1588_s8 + $0x78] sm:$0xff]  ;;  %v464_v2 = vld [vmem:[#allocation2 + $0x88] sm:$0xff]  ;;  %v480_v12 = vld [vmem:[#allocation2 + $0xd0] sm:$0xff] }
  0x69   : > { %1348 = vmatpush.bf16.msra.mxu2 %v1243_v35  ;;  %1349 = vmatpush.bf16.msra.mxu3 %v1243_v35  ;;  %v471_v63 = vld [vmem:[#allocation2 + $0x38] sm:$0xff]  ;;  %v465_v14 = vld [vmem:[#allocation2 + $0xe8] sm:$0xff]  ;;  %v473_v23 = vld [vmem:[#allocation2 + $0x40] sm:$0xff] }
  0x6a   : > { %v472_v11 = vld [vmem:[#allocation2 + $0x58] sm:$0xff]  ;;  %v481_v24 = vld [vmem:[#allocation2 + $0x10] sm:$0xff]  ;;  %v474_v35 = vld [vmem:[#allocation2 + $0xc8] sm:$0xff] }
  0x6b   : > { %v457_v13 = vld [vmem:[#allocation2 + $0xd8] sm:$0xff] }
  0x6c   : > { %682 = vmatpush.bf16.msra.mxu0 %v1242_v36  ;;  %1350 = vmatpush.bf16.msra.mxu1 %v1242_v36  ;;  %v458_v25 = vld [vmem:[#allocation2 + $0x18] sm:$0xff] }
  0x6d   : > { %1351 = vmatpush.bf16.msra.mxu2 %v1242_v36  ;;  %1352 = vmatpush.bf16.msra.mxu3 %v1242_v36  ;;  %v466_v26 = vld [vmem:[#allocation2 + $0xb8] sm:$0xff]  ;;  %v482_v36 = vld [vmem:[#allocation2 + $0x28] sm:$0xff] }
  0x70   : > { %683 = vmatpush.bf16.msra.mxu0 %v1241_v37  ;;  %1353 = vmatpush.bf16.msra.mxu1 %v1241_v37 }
  0x71   : > { %1354 = vmatpush.bf16.msra.mxu2 %v1241_v37  ;;  %1355 = vmatpush.bf16.msra.mxu3 %v1241_v37  ;;  %v459_v37 = vld [vmem:[#allocation2 + $0x50] sm:$0xff] }
  0x74   : > { %684 = vmatpush.bf16.msra.mxu0 %v1240_v38  ;;  %1356 = vmatpush.bf16.msra.mxu1 %v1240_v38 }
  0x75   : > { %1357 = vmatpush.bf16.msra.mxu2 %v1240_v38  ;;  %1358 = vmatpush.bf16.msra.mxu3 %v1240_v38  ;;  %v467_v38 = vld [vmem:[#allocation2 + $0x60] sm:$0xff] }
  0x78   : > { %685 = vmatpush.bf16.msra.mxu0 %v1239_v39  ;;  %1359 = vmatpush.bf16.msra.mxu1 %v1239_v39 }
  0x79   : > { %1360 = vmatpush.bf16.msra.mxu2 %v1239_v39  ;;  %1361 = vmatpush.bf16.msra.mxu3 %v1239_v39 }
  0x7c   : > { %686 = vmatpush.bf16.msra.mxu0 %v1238_v40  ;;  %1362 = vmatpush.bf16.msra.mxu1 %v1238_v40 }
  0x7d   : > { %1363 = vmatpush.bf16.msra.mxu2 %v1238_v40  ;;  %1364 = vmatpush.bf16.msra.mxu3 %v1238_v40 }
  0x7f   : > { %687 = vmatmul.bf16.vlgmr.msra.gmra.mxu0 %v1222_v41  ;;  %707 = vmatmul.bf16.vlgmr.msra.gmra.mxu1 %v1226_v42 }
  0x80   : > { %727 = vmatmul.bf16.vlgmr.msra.gmra.mxu2 %v1230_v43  ;;  %747 = vmatmul.bf16.vlgmr.msra.gmra.mxu3 %v1234_v44 }
  0x8f   : > { %692 = vmatmul.bf16.gmra.mxu0 %v1223_v45  ;;  %712 = vmatmul.bf16.gmra.mxu1 %v1227_v46 }
  0x90   : > { %732 = vmatmul.bf16.gmra.mxu2 %v1231_v47  ;;  %752 = vmatmul.bf16.gmra.mxu3 %v1235_v48  ;;  %v475_v47 = vld [vmem:[#allocation2 + $0xe0] sm:$0xff] }
  0x91   : > { %v483_v48 = vld [vmem:[#allocation2 + $0xa0] sm:$0xff] }
  0x9f   : > { %697 = vmatmul.bf16.gmra.mxu0 %v1224_v49  ;;  %717 = vmatmul.bf16.gmra.mxu1 %v1228_v50  ;;  %v460_v49 = vld [vmem:[#allocation2 + $0x68] sm:$0xff]  ;;  %v468_v50 = vld [vmem:[#allocation2 + $0xf0] sm:$0xff] }
  0xa0   : > { %737 = vmatmul.bf16.gmra.mxu2 %v1232_v51  ;;  %757 = vmatmul.bf16.gmra.mxu3 %v1236_v52 }
  0xaf   : > { %702 = vmatmul.bf16.gmra.mxu0 %v1225_v53  ;;  %722 = vmatmul.bf16.gmra.mxu1 %v1229_v54 }
  0xb0   : > { %742 = vmatmul.bf16.gmra.mxu2 %v1233_v55  ;;  %762 = vmatmul.bf16.gmra.mxu3 %v1237_v56 }
  0xfc   : > { %v688_v59 = vpop.f32.mrf.mxu0  ;;  %v708_v60 = vpop.f32.mrf.mxu1 }
  0xfd   : > { %v768_v61 = vadd.f32 %v688_v59, %v455_v57  ;;  %v776_v62 = vadd.f32 %v708_v60, %v463_v58  ;;  %v476_v59 = vld [vmem:[#allocation2 + $0x90] sm:$0xff]  ;;  %v484_v60 = vld [vmem:[#allocation2 + $0xf8] sm:$0xff] }
  0xff   : > { %800 = vst [vmem:[#allocation2 + $0xb0] sm:$0xff] %v768_v61  ;;  %v461_v61 = vld [vmem:[#allocation2 + $0x30] sm:$0xff] }
 0x100   : > { %808 = vst [vmem:[#allocation2 + $0x80] sm:$0xff] %v776_v62  ;;  %v469_v62 = vld [vmem:[#allocation2 + $0x8] sm:$0xff] }
 0x103   : > { %v728_v3 = vpop.f32.mrf.mxu2  ;;  %v748_v4 = vpop.f32.mrf.mxu3 }
 0x104   : > { %v784_v5 = vadd.f32 %v728_v3, %v471_v63  ;;  %v792_v6 = vadd.f32 %v748_v4, %v479_v0  ;;  %v690_v7 = vpop.f32.mrf.mxu0  ;;  %v710_v8 = vpop.f32.mrf.mxu1 }
 0x105   : > { %v769_v9 = vadd.f32 %v690_v7, %v456_v1  ;;  %v777_v10 = vadd.f32 %v710_v8, %v464_v2  ;;  %v477_v7 = vld [vmem:[#allocation2 + $0x70] sm:$0xff]  ;;  %v485_v8 = vld [vmem:[#allocation2 + $0x20] sm:$0xff] }
 0x106   : > { %816 = vst [vmem:[#allocation2 + $0x38] sm:$0xff] %v784_v5 }
 0x107   : > { %824 = vst [vmem:[#allocation2 + $0xa8] sm:$0xff] %v792_v6 }
 0x108   : > { %801 = vst [vmem:[#allocation2] sm:$0xff] %v769_v9  ;;  %v462_v9 = vld [vmem:[#allocation2 + $0x48] sm:$0xff] }
 0x109   : > { %809 = vst [vmem:[#allocation2 + $0x88] sm:$0xff] %v777_v10  ;;  %v470_v10 = vld [vmem:[#allocation2 + $0x78] sm:$0xff] }
 0x10b   : > { %v730_v15 = vpop.f32.mrf.mxu2  ;;  %v750_v16 = vpop.f32.mrf.mxu3 }
 0x10c   : > { %v785_v17 = vadd.f32 %v730_v15, %v472_v11  ;;  %v793_v18 = vadd.f32 %v750_v16, %v480_v12  ;;  %v693_v19 = vpop.f32.mrf.mxu0  ;;  %v713_v20 = vpop.f32.mrf.mxu1 }
 0x10d   : > { %v770_v21 = vadd.f32 %v693_v19, %v457_v13  ;;  %v778_v22 = vadd.f32 %v713_v20, %v465_v14  ;;  %v478_v19 = vld [vmem:[#allocation2 + $0xc0] sm:$0xff]  ;;  %v486_v20 = vld [vmem:[#allocation2 + $0x98] sm:$0xff] }
 0x10e   : > { %817 = vst [vmem:[#allocation2 + $0x58] sm:$0xff] %v785_v17 }
 0x10f   : > { %825 = vst [vmem:[#allocation2 + $0xd0] sm:$0xff] %v793_v18 }
 0x110   : > { %802 = vst [vmem:[#allocation2 + $0xd8] sm:$0xff] %v770_v21 }
 0x111   : > { %810 = vst [vmem:[#allocation2 + $0xe8] sm:$0xff] %v778_v22 }
 0x113   : > { %v733_v27 = vpop.f32.mrf.mxu2  ;;  %v753_v28 = vpop.f32.mrf.mxu3 }
 0x114   : > { %v786_v29 = vadd.f32 %v733_v27, %v473_v23  ;;  %v794_v30 = vadd.f32 %v753_v28, %v481_v24  ;;  %v695_v31 = vpop.f32.mrf.mxu0  ;;  %v715_v32 = vpop.f32.mrf.mxu1 }
 0x115   : > { %v771_v33 = vadd.f32 %v695_v31, %v458_v25  ;;  %v779_v34 = vadd.f32 %v715_v32, %v466_v26 }
 0x116   : > { %818 = vst [vmem:[#allocation2 + $0x40] sm:$0xff] %v786_v29 }
 0x117   : > { %826 = vst [vmem:[#allocation2 + $0x10] sm:$0xff] %v794_v30 }
 0x118   : > { %803 = vst [vmem:[#allocation2 + $0x18] sm:$0xff] %v771_v33 }
 0x119   : > { %811 = vst [vmem:[#allocation2 + $0xb8] sm:$0xff] %v779_v34 }
 0x11b   : > { %v735_v39 = vpop.f32.mrf.mxu2  ;;  %v755_v40 = vpop.f32.mrf.mxu3 }
 0x11c   : > { %v787_v41 = vadd.f32 %v735_v39, %v474_v35  ;;  %v795_v42 = vadd.f32 %v755_v40, %v482_v36  ;;  %v698_v43 = vpop.f32.mrf.mxu0  ;;  %v718_v44 = vpop.f32.mrf.mxu1 }
 0x11d   : > { %v772_v45 = vadd.f32 %v698_v43, %v459_v37  ;;  %v780_v46 = vadd.f32 %v718_v44, %v467_v38 }
 0x11e   : > { %819 = vst [vmem:[#allocation2 + $0xc8] sm:$0xff] %v787_v41 }
 0x11f   : > { %827 = vst [vmem:[#allocation2 + $0x28] sm:$0xff] %v795_v42 }
 0x120   : > { %804 = vst [vmem:[#allocation2 + $0x50] sm:$0xff] %v772_v45 }
 0x121   : > { %812 = vst [vmem:[#allocation2 + $0x60] sm:$0xff] %v780_v46 }
 0x123   : > { %v738_v51 = vpop.f32.mrf.mxu2  ;;  %v758_v52 = vpop.f32.mrf.mxu3 }
 0x124   : > { %v788_v53 = vadd.f32 %v738_v51, %v475_v47  ;;  %v796_v54 = vadd.f32 %v758_v52, %v483_v48  ;;  %v700_v55 = vpop.f32.mrf.mxu0  ;;  %v720_v56 = vpop.f32.mrf.mxu1 }
 0x125   : > { %v773_v57 = vadd.f32 %v700_v55, %v460_v49  ;;  %v781_v58 = vadd.f32 %v720_v56, %v468_v50 }
 0x126   : > { %820 = vst [vmem:[#allocation2 + $0xe0] sm:$0xff] %v788_v53 }
 0x127   : > { %828 = vst [vmem:[#allocation2 + $0xa0] sm:$0xff] %v796_v54 }
 0x128   : > { %805 = vst [vmem:[#allocation2 + $0x68] sm:$0xff] %v773_v57 }
 0x129   : > { %813 = vst [vmem:[#allocation2 + $0xf0] sm:$0xff] %v781_v58 }
 0x12b   : > { %v740_v63 = vpop.f32.mrf.mxu2  ;;  %v760_v0 = vpop.f32.mrf.mxu3 }
 0x12c   : > { %v789_v1 = vadd.f32 %v740_v63, %v476_v59  ;;  %v797_v2 = vadd.f32 %v760_v0, %v484_v60  ;;  %v703_v3 = vpop.f32.mrf.mxu0  ;;  %v723_v4 = vpop.f32.mrf.mxu1 }
 0x12d   : > { %v774_v5 = vadd.f32 %v703_v3, %v461_v61  ;;  %v782_v6 = vadd.f32 %v723_v4, %v469_v62 }
 0x12e   : > { %821 = vst [vmem:[#allocation2 + $0x90] sm:$0xff] %v789_v1 }
 0x12f   : > { %829 = vst [vmem:[#allocation2 + $0xf8] sm:$0xff] %v797_v2 }
 0x130   : > { %806 = vst [vmem:[#allocation2 + $0x30] sm:$0xff] %v774_v5 }
 0x131   : > { %814 = vst [vmem:[#allocation2 + $0x8] sm:$0xff] %v782_v6 }
 0x133   : > { %v743_v11 = vpop.f32.mrf.mxu2  ;;  %v763_v12 = vpop.f32.mrf.mxu3 }
 0x134   : > { %v790_v13 = vadd.f32 %v743_v11, %v477_v7  ;;  %v798_v14 = vadd.f32 %v763_v12, %v485_v8  ;;  %v705_v15 = vpop.f32.mrf.mxu0  ;;  %v725_v16 = vpop.f32.mrf.mxu1 }
 0x135   : > { %v775_v17 = vadd.f32 %v705_v15, %v462_v9  ;;  %v783_v18 = vadd.f32 %v725_v16, %v470_v10 }
 0x136   : > { %822 = vst [vmem:[#allocation2 + $0x70] sm:$0xff] %v790_v13 }
 0x137   : > { %830 = vst [vmem:[#allocation2 + $0x20] sm:$0xff] %v798_v14 }
 0x138   : > { %807 = vst [vmem:[#allocation2 + $0x48] sm:$0xff] %v775_v17 }
 0x139   : > { %815 = vst [vmem:[#allocation2 + $0x78] sm:$0xff] %v783_v18 }
 0x13b   : > { %v745_v21 = vpop.f32.mrf.mxu2  ;;  %v765_v22 = vpop.f32.mrf.mxu3  ;;  %835 = sbr.rel (%p1217_p11) target bundleno = 346 (0x15a), region = 81 }
 0x13c   : > { %v791_v23 = vadd.f32 %v745_v21, %v478_v19  ;;  %v799_v24 = vadd.f32 %v765_v22, %v486_v20 }
 0x13e   : > { %823 = vst [vmem:[#allocation2 + $0xc0] sm:$0xff] %v791_v23 }
 0x13f   : > { %831 = vst [vmem:[#allocation2 + $0x98] sm:$0xff] %v799_v24 }
 0x140   : > { %v836_v25 = vld [vmem:[#allocation2 + $0xb0] sm:$0xff]  ;;  %v837_v26 = vld [vmem:[#allocation2] sm:$0xff]  ;;  %v838_v28 = vld [vmem:[#allocation2 + $0xd8] sm:$0xff] }
 0x141   : > { %v1619_v27 = vld [vmem:[%s1718_s2] ss:$0 sm:$0xff]  ;;  %v839_v29 = vld [vmem:[#allocation2 + $0x18] sm:$0xff]  ;;  %v840_v30 = vld [vmem:[#allocation2 + $0x50] sm:$0xff] }
 0x142   : > { %v841_v31 = vld [vmem:[#allocation2 + $0x68] sm:$0xff]  ;;  %v842_v32 = vld [vmem:[#allocation2 + $0x30] sm:$0xff]  ;;  %v872_v33 = vadd.f32 %v1619_v27, %v836_v25  ;;  %v873_v34 = vadd.f32 %v1619_v27, %v837_v26  ;;  %v874_v35 = vadd.f32 %v1619_v27, %v838_v28  ;;  %v875_v36 = vadd.f32 %v1619_v27, %v839_v29  ;;  %v844_v42 = vld [vmem:[#allocation2 + $0x80] sm:$0xff] }
 0x143   : > { %v843_v37 = vld [vmem:[#allocation2 + $0x48] sm:$0xff]  ;;  %v876_v38 = vadd.f32 %v1619_v27, %v840_v30  ;;  %v877_v39 = vadd.f32 %v1619_v27, %v841_v31  ;;  %v878_v40 = vadd.f32 %v1619_v27, %v842_v32  ;;  %v847_v49 = vld [vmem:[#allocation2 + $0xb8] sm:$0xff]  ;;  %v848_v54 = vld [vmem:[#allocation2 + $0x60] sm:$0xff]  ;;  %v880_v58 = vadd.f32 %v1619_v27, %v844_v42 }
 0x144   : > { %v879_v41 = vadd.f32 %v1619_v27, %v843_v37  ;;  %v845_v43 = vld [vmem:[#allocation2 + $0x88] sm:$0xff]  ;;  %v904_v44 = vmax.f32 %v872_v33, 0.0  ;;  %v905_v45 = vmax.f32 %v873_v34, 0.0  ;;  %v906_v46 = vmax.f32 %v874_v35, 0.0  ;;  %v849_v55 = vld [vmem:[#allocation2 + $0xf0] sm:$0xff]  ;;  %v851_v61 = vld [vmem:[#allocation2 + $0x78] sm:$0xff] }
 0x145   : > { %v907_v47 = vmax.f32 %v875_v36, 0.0  ;;  %v846_v48 = vld [vmem:[#allocation2 + $0xe8] sm:$0xff]  ;;  %v908_v50 = vmax.f32 %v876_v38, 0.0  ;;  %v909_v51 = vmax.f32 %v877_v39, 0.0  ;;  %v910_v52 = vmax.f32 %v878_v40, 0.0  ;;  %v852_v2 = vld [vmem:[#allocation2 + $0x38] sm:$0xff] }
 0x146   : > { %v911_v53 = vmax.f32 %v879_v41, 0.0  ;;  %v1249_v56 = vpack.c.bf16 %v905_v45, %v904_v44  ;;  %v881_v59 = vadd.f32 %v1619_v27, %v845_v43  ;;  %v850_v60 = vld [vmem:[#allocation2 + $0x8] sm:$0xff]  ;;  %v882_v0 = vadd.f32 %v1619_v27, %v846_v48  ;;  %v853_v7 = vld [vmem:[#allocation2 + $0x58] sm:$0xff]  ;;  %v854_v12 = vld [vmem:[#allocation2 + $0x40] sm:$0xff] }
 0x147   : > { %v1254_v57 = vpack.c.bf16 %v907_v47, %v906_v46  ;;  %v1259_v62 = vpack.c.bf16 %v909_v51, %v908_v50  ;;  %v883_v1 = vadd.f32 %v1619_v27, %v847_v49  ;;  %v912_v3 = vmax.f32 %v880_v58, 0.0  ;;  %v855_v13 = vld [vmem:[#allocation2 + $0xc8] sm:$0xff]  ;;  %v856_v18 = vld [vmem:[#allocation2 + $0xe0] sm:$0xff]  ;;  %v857_v19 = vld [vmem:[#allocation2 + $0x90] sm:$0xff] }
 0x148   : > { %v1264_v63 = vpack.c.bf16 %v911_v53, %v910_v52  ;;  %1250 = vst [vmem:[%s1719_s3] sm:$0xff] %v1249_v56   ;;  %v913_v4 = vmax.f32 %v881_v59, 0.0  ;;  %v884_v5 = vadd.f32 %v1619_v27, %v848_v54  ;;  %v885_v6 = vadd.f32 %v1619_v27, %v849_v55  ;;  %v858_v24 = vld [vmem:[#allocation2 + $0x70] sm:$0xff]  ;;  %v859_v25 = vld [vmem:[#allocation2 + $0xc0] sm:$0xff]  ;;  %v860_v31 = vld [vmem:[#allocation2 + $0xa8] sm:$0xff] }
 0x149   : > { %1326 = vst [vmem:[%s1719_s3 + $0x8] sm:$0xff] %v1254_v57   ;;  %v914_v8 = vmax.f32 %v882_v0, 0.0  ;;  %v915_v9 = vmax.f32 %v883_v1, 0.0  ;;  %v886_v10 = vadd.f32 %v1619_v27, %v850_v60  ;;  %v887_v11 = vadd.f32 %v1619_v27, %v851_v61  ;;  %v861_v36 = vld [vmem:[#allocation2 + $0xd0] sm:$0xff]  ;;  %v863_v42 = vld [vmem:[#allocation2 + $0x28] sm:$0xff]  ;;  %v864_v47 = vld [vmem:[#allocation2 + $0xa0] sm:$0xff] }
 0x14a   : > { %1327 = vst [vmem:[%s1719_s3 + $0x10] sm:$0xff] %v1259_v62   ;;  %v1269_v14 = vpack.c.bf16 %v913_v4, %v912_v3  ;;  %v916_v15 = vmax.f32 %v884_v5, 0.0  ;;  %v917_v16 = vmax.f32 %v885_v6, 0.0  ;;  %v888_v17 = vadd.f32 %v1619_v27, %v852_v2  ;;  %v862_v41 = vld [vmem:[#allocation2 + $0x10] sm:$0xff]  ;;  %v865_v48 = vld [vmem:[#allocation2 + $0xf8] sm:$0xff]  ;;  %v866_v53 = vld [vmem:[#allocation2 + $0x20] sm:$0xff] }
 0x14b   : > { %1328 = vst [vmem:[%s1719_s3 + $0x18] sm:$0xff] %v1264_v63   ;;  %v1274_v20 = vpack.c.bf16 %v915_v9, %v914_v8  ;;  %v918_v21 = vmax.f32 %v886_v10, 0.0  ;;  %v919_v22 = vmax.f32 %v887_v11, 0.0  ;;  %v889_v23 = vadd.f32 %v1619_v27, %v853_v7  ;;  %v867_v54 = vld [vmem:[#allocation2 + $0x98] sm:$0xff] }
 0x14c   : > { %1329 = vst [vmem:[%s1719_s3 + $0x20] sm:$0xff] %v1269_v14   ;;  %v1279_v26 = vpack.c.bf16 %v917_v16, %v916_v15  ;;  %v920_v28 = vmax.f32 %v888_v17, 0.0  ;;  %v890_v29 = vadd.f32 %v1619_v27, %v854_v12  ;;  %v891_v30 = vadd.f32 %v1619_v27, %v855_v13 }
 0x14d   : > { %1330 = vst [vmem:[%s1719_s3 + $0x28] sm:$0xff] %v1274_v20   ;;  %v1284_v32 = vpack.c.bf16 %v919_v22, %v918_v21  ;;  %v921_v33 = vmax.f32 %v889_v23, 0.0  ;;  %v892_v34 = vadd.f32 %v1619_v27, %v856_v18  ;;  %v893_v35 = vadd.f32 %v1619_v27, %v857_v19 }
 0x14e   : > { %1331 = vst [vmem:[%s1719_s3 + $0x30] sm:$0xff] %v1279_v26   ;;  %v922_v37 = vmax.f32 %v890_v29, 0.0  ;;  %v923_v38 = vmax.f32 %v891_v30, 0.0  ;;  %v894_v39 = vadd.f32 %v1619_v27, %v858_v24  ;;  %v895_v40 = vadd.f32 %v1619_v27, %v859_v25 }
 0x14f   : > { %1332 = vst [vmem:[%s1719_s3 + $0x38] sm:$0xff] %v1284_v32   ;;  %v1289_v43 = vpack.c.bf16 %v921_v33, %v920_v28  ;;  %v924_v44 = vmax.f32 %v892_v34, 0.0  ;;  %v925_v45 = vmax.f32 %v893_v35, 0.0  ;;  %v896_v46 = vadd.f32 %v1619_v27, %v860_v31 }
 0x150   : > { %v1294_v49 = vpack.c.bf16 %v923_v38, %v922_v37  ;;  %v926_v50 = vmax.f32 %v894_v39, 0.0  ;;  %v927_v51 = vmax.f32 %v895_v40, 0.0  ;;  %v897_v52 = vadd.f32 %v1619_v27, %v861_v36 }
 0x151   : > { %1333 = vst [vmem:[%s1719_s3 + $0x40] sm:$0xff] %v1289_v43   ;;  %v1299_v55 = vpack.c.bf16 %v925_v45, %v924_v44  ;;  %v928_v56 = vmax.f32 %v896_v46, 0.0  ;;  %v898_v57 = vadd.f32 %v1619_v27, %v862_v41  ;;  %v899_v58 = vadd.f32 %v1619_v27, %v863_v42 }
 0x152   : > { %1334 = vst [vmem:[%s1719_s3 + $0x48] sm:$0xff] %v1294_v49   ;;  %v1304_v59 = vpack.c.bf16 %v927_v51, %v926_v50  ;;  %v929_v60 = vmax.f32 %v897_v52, 0.0  ;;  %v900_v61 = vadd.f32 %v1619_v27, %v864_v47  ;;  %v901_v62 = vadd.f32 %v1619_v27, %v865_v48 }
 0x153   : > { %1335 = vst [vmem:[%s1719_s3 + $0x50] sm:$0xff] %v1299_v55   ;;  %v930_v63 = vmax.f32 %v898_v57, 0.0  ;;  %v931_v0 = vmax.f32 %v899_v58, 0.0  ;;  %v902_v1 = vadd.f32 %v1619_v27, %v866_v53  ;;  %v903_v2 = vadd.f32 %v1619_v27, %v867_v54 }
 0x154   : > { %1336 = vst [vmem:[%s1719_s3 + $0x58] sm:$0xff] %v1304_v59   ;;  %v1309_v3 = vpack.c.bf16 %v929_v60, %v928_v56  ;;  %v932_v4 = vmax.f32 %v900_v61, 0.0  ;;  %v933_v5 = vmax.f32 %v901_v62, 0.0 }
 0x155   : > { %v1314_v6 = vpack.c.bf16 %v931_v0, %v930_v63  ;;  %v934_v7 = vmax.f32 %v902_v1, 0.0  ;;  %v935_v8 = vmax.f32 %v903_v2, 0.0 }
 0x156   : > { %1337 = vst [vmem:[%s1719_s3 + $0x60] sm:$0xff] %v1309_v3   ;;  %v1319_v9 = vpack.c.bf16 %v933_v5, %v932_v4 }
 0x157   : > { %1338 = vst [vmem:[%s1719_s3 + $0x68] sm:$0xff] %v1314_v6   ;;  %v1324_v27 = vpack.c.bf16 %v935_v8, %v934_v7 }
 0x158   : > { %1339 = vst [vmem:[%s1719_s3 + $0x70] sm:$0xff] %v1319_v9  }
 0x159   : > { %1340 = vst [vmem:[%s1719_s3 + $0x78] sm:$0xff] %v1324_v27  }
 0x15a PF: > { %s13_s16 = sadd.s32 1, %s1445_s16   ;;  %s1720_s12 = smov %s1433_s13 }
 0x15b   : > { %p10_p12 = scmp.ge.s32.totalorder %s13_s16, 4   ;;  %s1721_s13 = smov %s1503_s20 }
 0x15c   : > { %s1722_s14 = smov %s1441_s15  ;;  %s1723_s15 = smov %s1725_s17 }
 0x15d   :  { %12 = sbr.rel (!%p10_p12) target bundleno = 3 (0x3), region = 122 }

// kernel: _lambda_.11
= control target key start
LH: loop header
LB: loop body
LE: loop exit
PB: predicated region body
PF: predicated region fallthrough
CT: control target
= control target key end

     0   :  { %s405_s1 = inlined_call_operand.vmem [shape: bf16[128,128], index: 1, kind: input, shape index: {}]   ;;  %s406_s2 = inlined_call_operand.vmem [shape: f32[1,128], index: 2, kind: input, shape index: {}]   ;;  %s407_s0 = inlined_call_operand.vmem [shape: bf16[64,128], index: 0, kind: input, shape index: {}]   ;;  %s408_s3 = inlined_call_operand.vmem [shape: bf16[64,128], index: 3, kind: output, shape index: {}]  }
   0x1   :  { %v285_v0 = vld [vmem:[%s405_s1 + $0x38] sm:$0xff]  ;;  %v284_v1 = vld [vmem:[%s405_s1 + $0x30] sm:$0xff]  ;;  %v283_v2 = vld [vmem:[%s405_s1 + $0x28] sm:$0xff] }
   0x2   :  { %130 = vmatpush.bf16.msra.mxu0 %v285_v0  ;;  %309 = vmatpush.bf16.msra.mxu1 %v285_v0  ;;  %v282_v3 = vld [vmem:[%s405_s1 + $0x20] sm:$0xff]  ;;  %v281_v4 = vld [vmem:[%s405_s1 + $0x18] sm:$0xff]  ;;  %v280_v5 = vld [vmem:[%s405_s1 + $0x10] sm:$0xff] }
   0x3   :  { %310 = vmatpush.bf16.msra.mxu2 %v285_v0  ;;  %311 = vmatpush.bf16.msra.mxu3 %v285_v0  ;;  %v279_v6 = vld [vmem:[%s405_s1 + $0x8] sm:$0xff]  ;;  %v278_v7 = vld [vmem:[%s405_s1] sm:$0xff]  ;;  %v276_v10 = vld [vmem:[%s407_s0 + $0x10] sm:$0xff] }
   0x4   :  { %v274_v8 = vld [vmem:[%s407_s0] sm:$0xff]  ;;  %v275_v9 = vld [vmem:[%s407_s0 + $0x8] sm:$0xff]  ;;  %v277_v11 = vld [vmem:[%s407_s0 + $0x18] sm:$0xff] }
   0x5   :  { %v333_v14 = vld [vmem:[%s406_s2] ss:$0 sm:$0xff] }
   0x6   :  { %131 = vmatpush.bf16.msra.mxu0 %v284_v1  ;;  %312 = vmatpush.bf16.msra.mxu1 %v284_v1 }
   0x7   :  { %313 = vmatpush.bf16.msra.mxu2 %v284_v1  ;;  %314 = vmatpush.bf16.msra.mxu3 %v284_v1 }
   0xa   :  { %132 = vmatpush.bf16.msra.mxu0 %v283_v2  ;;  %315 = vmatpush.bf16.msra.mxu1 %v283_v2 }
   0xb   :  { %316 = vmatpush.bf16.msra.mxu2 %v283_v2  ;;  %317 = vmatpush.bf16.msra.mxu3 %v283_v2 }
   0xe   :  { %133 = vmatpush.bf16.msra.mxu0 %v282_v3  ;;  %318 = vmatpush.bf16.msra.mxu1 %v282_v3 }
   0xf   :  { %319 = vmatpush.bf16.msra.mxu2 %v282_v3  ;;  %320 = vmatpush.bf16.msra.mxu3 %v282_v3 }
  0x12   :  { %134 = vmatpush.bf16.msra.mxu0 %v281_v4  ;;  %321 = vmatpush.bf16.msra.mxu1 %v281_v4 }
  0x13   :  { %322 = vmatpush.bf16.msra.mxu2 %v281_v4  ;;  %323 = vmatpush.bf16.msra.mxu3 %v281_v4 }
  0x16   :  { %135 = vmatpush.bf16.msra.mxu0 %v280_v5  ;;  %324 = vmatpush.bf16.msra.mxu1 %v280_v5 }
  0x17   :  { %325 = vmatpush.bf16.msra.mxu2 %v280_v5  ;;  %326 = vmatpush.bf16.msra.mxu3 %v280_v5 }
  0x1a   :  { %136 = vmatpush.bf16.msra.mxu0 %v279_v6  ;;  %327 = vmatpush.bf16.msra.mxu1 %v279_v6 }
  0x1b   :  { %328 = vmatpush.bf16.msra.mxu2 %v279_v6  ;;  %329 = vmatpush.bf16.msra.mxu3 %v279_v6 }
  0x1e   :  { %137 = vmatpush.bf16.msra.mxu0 %v278_v7  ;;  %330 = vmatpush.bf16.msra.mxu1 %v278_v7 }
  0x1f   :  { %331 = vmatpush.bf16.msra.mxu2 %v278_v7  ;;  %332 = vmatpush.bf16.msra.mxu3 %v278_v7 }
  0x21   :  { %138 = vmatmul.bf16.vlgmr.msra.gmra.mxu0 %v274_v8  ;;  %143 = vmatmul.bf16.vlgmr.msra.gmra.mxu1 %v275_v9 }
  0x22   :  { %148 = vmatmul.bf16.vlgmr.msra.gmra.mxu2 %v276_v10  ;;  %153 = vmatmul.bf16.vlgmr.msra.gmra.mxu3 %v277_v11 }
  0x9e   :  { %v139_v12 = vpop.f32.mrf.mxu0  ;;  %v144_v13 = vpop.f32.mrf.mxu1 }
  0x9f   :  { %v190_v15 = vadd.f32 %v333_v14, %v139_v12  ;;  %v192_v16 = vadd.f32 %v333_v14, %v144_v13 }
  0xa1   :  { %v198_v23 = vmax.f32 %v190_v15, 0.0  ;;  %v200_v24 = vmax.f32 %v192_v16, 0.0 }
  0xa5   :  { %v149_v17 = vpop.f32.mrf.mxu2  ;;  %v154_v18 = vpop.f32.mrf.mxu3 }
  0xa6   :  { %v141_v19 = vpop.f32.mrf.mxu0  ;;  %v146_v20 = vpop.f32.mrf.mxu1  ;;  %v194_v29 = vadd.f32 %v333_v14, %v149_v17  ;;  %v196_v30 = vadd.f32 %v333_v14, %v154_v18 }
  0xa7   :  { %v191_v21 = vadd.f32 %v333_v14, %v141_v19  ;;  %v193_v22 = vadd.f32 %v333_v14, %v146_v20 }
  0xa8   :  { %v202_v35 = vmax.f32 %v194_v29, 0.0  ;;  %v204_v36 = vmax.f32 %v196_v30, 0.0 }
  0xa9   :  { %v199_v25 = vmax.f32 %v191_v21, 0.0  ;;  %v201_v26 = vmax.f32 %v193_v22, 0.0 }
  0xab   :  { %v289_v27 = vpack.c.bf16 %v199_v25, %v198_v23  ;;  %v294_v28 = vpack.c.bf16 %v201_v26, %v200_v24 }
  0xad   :  { %290 = vst [vmem:[%s408_s3] sm:$0xff] %v289_v27   ;;  %v151_v31 = vpop.f32.mrf.mxu2  ;;  %v156_v32 = vpop.f32.mrf.mxu3 }
  0xae   :  { %306 = vst [vmem:[%s408_s3 + $0x8] sm:$0xff] %v294_v28   ;;  %v195_v33 = vadd.f32 %v333_v14, %v151_v31  ;;  %v197_v34 = vadd.f32 %v333_v14, %v156_v32 }
  0xb0   :  { %v203_v37 = vmax.f32 %v195_v33, 0.0  ;;  %v205_v38 = vmax.f32 %v197_v34, 0.0 }
  0xb2   :  { %v299_v39 = vpack.c.bf16 %v203_v37, %v202_v35  ;;  %v304_v40 = vpack.c.bf16 %v205_v38, %v204_v36 }
  0xb4   :  { %307 = vst [vmem:[%s408_s3 + $0x10] sm:$0xff] %v299_v39  }
  0xb5   :  { %308 = vst [vmem:[%s408_s3 + $0x18] sm:$0xff] %v304_v40  }

// kernel: _lambda_.12
= control target key start
LH: loop header
LB: loop body
LE: loop exit
PB: predicated region body
PF: predicated region fallthrough
CT: control target
= control target key end

     0   :  { %s694_s12 = smov 0   ;;  %s696_s13 = smov 0   ;;  %s767_s0 = inlined_call_operand.vmem [shape: bf16[16,256], index: 0, kind: input, shape index: {}]   ;;  %s768_s1 = inlined_call_operand.vmem [shape: bf16[256,128], index: 1, kind: input, shape index: {}]   ;;  %s769_s2 = inlined_call_operand.vmem [shape: f32[1,128], index: 2, kind: input, shape index: {}]   ;;  %s770_s3 = inlined_call_operand.vmem [shape: bf16[16,128], index: 3, kind: output, shape index: {}]  }
   0x1   :  { %s698_s14 = smov 0   ;;  %s700_s15 = smov 0  }
   0x2   :  { %s702_s16 = smov 0  }
   0x3 LB: > { %s25_s17 = sadd.s32 1, %s667_s15  ;;  %p48_p1 = scmp.ne.s32.totalorder %s659_s13, %s655_s12  ;;  %s671_s16 = sphi %s702_s16, %s13_s16   ;;  %s667_s15 = sphi %s700_s15, %s774_s15   ;;  %s663_s14 = sphi %s698_s14, %s773_s14   ;;  %s659_s13 = sphi %s696_s13, %s772_s13   ;;  %s655_s12 = sphi %s694_s12, %s771_s12  }
   0x4   : > { %p26_p0 = scmp.ge.s32.totalorder %s25_s17, 2  ;;  %p49_p2 = scmp.eq.s32.totalorder %s671_s16, 0 }
   0x5   : > { %s41_s19 = sadd.s32 1, %s659_s13  ;;  %p528_p5 = scmp.ge.s32.totalorder %s671_s16, 2 }
   0x6   : > { %s776_s17 = smov (%p26_p0, %s25_s17), 0  ;;  %p50_p3 = por %p49_p2, %p48_p1 }
   0x7   : > { %s37_s18 = ssub.s32 %s667_s15, %s776_s17  ;;  %162 = sbr.rel (%p528_p5) target bundleno = 18 (0x12), region = 20 }
   0x8   : > { %p39_p4 = scmp.eq.s32.totalorder %s37_s18, 0 }
   0xa   : > { %s729_s20 = scalar_select %p39_p4, %s659_s13, %s41_s19  }
   0xc   : > { %165 = sbr.rel (!%p50_p3) target bundleno = 18 (0x12), region = 24  ;;  %s167_s21 = sand.u32 (%p50_p3), 1, %s659_s13  }
   0xd   : > { %s530_s22 = sshll.u32 (%p50_p3), %s667_s15, 2  ;;  %s529_s23 = sshll.u32 (%p50_p3), %s167_s21, 3 }
   0xe   : > { %s174_s26 = scalar_lea.vmem (%p50_p3), %s767_s0, %s530_s22  ;;  %s169_s27 = scalar_lea.vmem (%p50_p3), [#allocation3], %s529_s23 }
   0xf   : > { %v191_v0 = vld [vmem:[%s174_s26] sm:$0xf] (%p50_p3)  ;;  %v193_v1 = vld [vmem:[%s174_s26 + $0x8] sm:$0xf] (%p50_p3) }
  0x10   : > { %192 = vst [vmem:[%s169_s27] sm:$0xf] (%p50_p3), %v191_v0 }
  0x11   : > { %194 = vst [vmem:[%s169_s27 + $0x4] sm:$0xf] %v193_v1 }
  0x12 PF: > { %p531_p6 = scmp.ge.s32.totalorder %s671_s16, 1  ;;  %p233_p7 = scmp.lt.s32.totalorder %s671_s16, 3 }
  0x14   : > { %p234_p8 = pnand %p531_p6, %p233_p7 }
  0x15   : > { %s240_s28 = sand.u32 (!%p234_p8), 1, %s655_s12   ;;  %s533_s29 = sshll.u32 (!%p234_p8), %s663_s14, 4 }
  0x16   : > { %237 = sbr.rel (%p234_p8) target bundleno = 218 (0xda), region = 69  ;;  %s532_s30 = sshll.u32 (!%p234_p8), %s240_s28, 3 }
  0x17   : > { %p279_p9 = scmp.lt.s32.totalorder (!%p234_p8), %s533_s29, 31  ;;  %s242_s8 = scalar_lea.vmem (!%p234_p8), [#allocation3], %s532_s30 }
  0x18   : > { %p535_p10 = scmp.ne.s32.totalorder (!%p234_p8), %s663_s14, 0 }
  0x1b   : > { %s778_s29 = smov (!%p279_p9, %s533_s29), 31  ;;  %302 = sbr.rel (%p535_p10) target bundleno = 35 (0x23), region = 77 }
  0x1c   : > { %s534_s4 = sshll.u32 %s778_s29, 2 }
  0x1d   : > { %s285_s7 = scalar_lea.vmem %s768_s1, %s534_s4 }
  0x20   : > { %v673_v2 = vmov 0.0  }
  0x21   : > { %303 = vst [vmem:[#allocation2] sm:$0xff] %v673_v2 }
  0x22   : > { %304 = vst [vmem:[#allocation2 + $0x8] sm:$0xff] %v673_v2 }
  0x23 PF: > { %v585_v3 = vld [vmem:[%s285_s7 + $0x38] sm:$0xff]  ;;  %v584_v4 = vld [vmem:[%s285_s7 + $0x30] sm:$0xff]  ;;  %v583_v5 = vld [vmem:[%s285_s7 + $0x28] sm:$0xff]  ;;  %p572_p11 = scmp.ne.s32.totalorder %s663_s14, 1 }
  0x24   : > { %379 = vmatpush.bf16.msra.mxu0 %v585_v3  ;;  %v582_v6 = vld [vmem:[%s285_s7 + $0x20] sm:$0xff]  ;;  %v581_v7 = vld [vmem:[%s285_s7 + $0x18] sm:$0xff]  ;;  %v580_v8 = vld [vmem:[%s285_s7 + $0x10] sm:$0xff] }
  0x25   : > { %v579_v9 = vld [vmem:[%s285_s7 + $0x8] sm:$0xff]  ;;  %v578_v10 = vld [vmem:[%s285_s7] sm:$0xff]  ;;  %v577_v11 = vld [vmem:[%s242_s8] sm:$0xff] }
  0x28   : > { %380 = vmatpush.bf16.msra.mxu0 %v584_v4  ;;  %v305_v12 = vld [vmem:[#allocation2] sm:$0xff] }
  0x29   : > { %v306_v15 = vld [vmem:[#allocation2 + $0x8] sm:$0xff] }
  0x2c   : > { %381 = vmatpush.bf16.msra.mxu0 %v583_v5 }
  0x30   : > { %382 = vmatpush.bf16.msra.mxu0 %v582_v6 }
  0x34   : > { %383 = vmatpush.bf16.msra.mxu0 %v581_v7 }
  0x38   : > { %384 = vmatpush.bf16.msra.mxu0 %v580_v8 }
  0x3c   : > { %385 = vmatpush.bf16.msra.mxu0 %v579_v9 }
  0x40   : > { %386 = vmatpush.bf16.msra.mxu0 %v578_v10 }
  0x43   : > { %387 = vmatmul.bf16.vlgmr.msra.gmra.mxu0 %v577_v11 }
  0xc0   : > { %v388_v13 = vpop.f32.mrf.mxu0 }
  0xc1   : > { %v393_v14 = vadd.f32 %v388_v13, %v305_v12 }
  0xc3   : > { %395 = vst [vmem:[#allocation2] sm:$0xff] %v393_v14 }
  0xc7   : > { %400 = sbr.rel (%p572_p11) target bundleno = 218 (0xda), region = 81 }
  0xc8   : > { %v390_v16 = vpop.f32.mrf.mxu0 }
  0xc9   : > { %v394_v17 = vadd.f32 %v390_v16, %v306_v15 }
  0xcb   : > { %396 = vst [vmem:[#allocation2 + $0x8] sm:$0xff] %v394_v17 }
  0xcc   : > { %v401_v18 = vld [vmem:[#allocation2] sm:$0xff] }
  0xcd   : > { %v632_v20 = vld [vmem:[%s769_s2] ss:$0 sm:$0xff] }
  0xce   : > { %v407_v21 = vadd.f32 %v632_v20, %v401_v18 }
  0xd0   : > { %v409_v23 = vmax.f32 %v407_v21, 0.0 }
  0xd2   : > { %v402_v19 = vld [vmem:[#allocation2 + $0x8] sm:$0xff] }
  0xd3   : > { %v408_v22 = vadd.f32 %v632_v20, %v402_v19 }
  0xd5   : > { %v410_v24 = vmax.f32 %v408_v22, 0.0 }
  0xd7   : > { %v589_v25 = vpack.c.bf16 %v410_v24, %v409_v23 }
  0xd9   : > { %590 = vst [vmem:[%s770_s3] sm:$0xff] %v589_v25  }
  0xda PF: > { %s13_s16 = sadd.s32 1, %s671_s16   ;;  %s771_s12 = smov %s659_s13 }
  0xdb   : > { %p10_p12 = scmp.ge.s32.totalorder %s13_s16, 4   ;;  %s772_s13 = smov %s729_s20 }
  0xdc   : > { %s773_s14 = smov %s667_s15  ;;  %s774_s15 = smov %s776_s17 }
  0xdd   :  { %12 = sbr.rel (!%p10_p12) target bundleno = 3 (0x3), region = 122 }

// kernel: _lambda_.14
= control target key start
LH: loop header
LB: loop body
LE: loop exit
PB: predicated region body
PF: predicated region fallthrough
CT: control target
= control target key end

     0   :  { %s786_s15 = smov 0   ;;  %s788_s16 = smov 0   ;;  %s862_s0 = inlined_call_operand.vmem [shape: bf16[16,384], index: 0, kind: input, shape index: {}]   ;;  %s863_s1 = inlined_call_operand.vmem [shape: bf16[384,128], index: 1, kind: input, shape index: {}]   ;;  %s864_s2 = inlined_call_operand.vmem [shape: f32[1,128], index: 2, kind: input, shape index: {}]   ;;  %s865_s3 = inlined_call_operand.vmem [shape: bf16[16,128], index: 3, kind: input, shape index: {}]   ;;  %s866_s4 = inlined_call_operand.vmem [shape: bf16[16,128], index: 4, kind: output, shape index: {}]  }
   0x1   :  { %s790_s17 = smov 0   ;;  %s792_s18 = smov 0  }
   0x2   :  { %s794_s19 = smov 0  }
   0x3 LB: > { %s26_s20 = sadd.s32 1, %s754_s18  ;;  %p49_p1 = scmp.ne.s32.totalorder %s746_s16, %s742_s15  ;;  %s758_s19 = sphi %s794_s19, %s14_s19   ;;  %s754_s18 = sphi %s792_s18, %s870_s18   ;;  %s750_s17 = sphi %s790_s17, %s869_s17   ;;  %s746_s16 = sphi %s788_s16, %s868_s16   ;;  %s742_s15 = sphi %s786_s15, %s867_s15  }
   0x4   : > { %p27_p0 = scmp.ge.s32.totalorder %s26_s20, 3  ;;  %p50_p2 = scmp.eq.s32.totalorder %s758_s19, 0 }
   0x5   : > { %s42_s22 = sadd.s32 1, %s746_s16  ;;  %p611_p5 = scmp.ge.s32.totalorder %s758_s19, 3 }
   0x6   : > { %s872_s20 = smov (%p27_p0, %s26_s20), 0  ;;  %p51_p3 = por %p50_p2, %p49_p1 }
   0x7   : > { %s38_s21 = ssub.s32 %s754_s18, %s872_s20  ;;  %203 = sbr.rel (%p611_p5) target bundleno = 18 (0x12), region = 24 }
   0x8   : > { %p40_p4 = scmp.eq.s32.totalorder %s38_s21, 0 }
   0xa   : > { %s821_s23 = scalar_select %p40_p4, %s746_s16, %s42_s22  }
   0xc   : > { %206 = sbr.rel (!%p51_p3) target bundleno = 18 (0x12), region = 28  ;;  %s208_s24 = sand.u32 (%p51_p3), 1, %s746_s16  }
   0xd   : > { %s613_s25 = sshll.u32 (%p51_p3), %s754_s18, 2  ;;  %s612_s26 = sshll.u32 (%p51_p3), %s208_s24, 3 }
   0xe   : > { %s215_s29 = scalar_lea.vmem (%p51_p3), %s862_s0, %s613_s25  ;;  %s210_s30 = scalar_lea.vmem (%p51_p3), [#allocation3], %s612_s26 }
   0xf   : > { %v232_v0 = vld [vmem:[%s215_s29] sm:$0xf] (%p51_p3)  ;;  %v234_v1 = vld [vmem:[%s215_s29 + $0xc] sm:$0xf] (%p51_p3) }
  0x10   : > { %233 = vst [vmem:[%s210_s30] sm:$0xf] (%p51_p3), %v232_v0 }
  0x11   : > { %235 = vst [vmem:[%s210_s30 + $0x4] sm:$0xf] %v234_v1 }
  0x12 PF: > { %p614_p6 = scmp.ge.s32.totalorder %s758_s19, 1  ;;  %p274_p7 = scmp.lt.s32.totalorder %s758_s19, 4 }
  0x14   : > { %p275_p8 = pnand %p614_p6, %p274_p7 }
  0x15   : > { %s281_s5 = sand.u32 (!%p275_p8), 1, %s742_s15   ;;  %s616_s6 = sshll.u32 (!%p275_p8), %s750_s17, 4 }
  0x16   : > { %278 = sbr.rel (%p275_p8) target bundleno = 218 (0xda), region = 73  ;;  %s615_s7 = sshll.u32 (!%p275_p8), %s281_s5, 3 }
  0x17   : > { %p330_p9 = scmp.lt.s32.totalorder (!%p275_p8), %s616_s6, 47  ;;  %s283_s12 = scalar_lea.vmem (!%p275_p8), [#allocation3], %s615_s7 }
  0x18   : > { %p618_p10 = scmp.ne.s32.totalorder (!%p275_p8), %s750_s17, 0 }
  0x1b   : > { %s874_s6 = smov (!%p330_p9, %s616_s6), 47  ;;  %362 = sbr.rel (%p618_p10) target bundleno = 35 (0x23), region = 81 }
  0x1c   : > { %s617_s8 = sshll.u32 %s874_s6, 2 }
  0x1d   : > { %s336_s11 = scalar_lea.vmem %s863_s1, %s617_s8 }
  0x20   : > { %v760_v2 = vmov 0.0  }
  0x21   : > { %363 = vst [vmem:[#allocation2] sm:$0xff] %v760_v2 }
  0x22   : > { %364 = vst [vmem:[#allocation2 + $0x8] sm:$0xff] %v760_v2 }
  0x23 PF: > { %v668_v3 = vld [vmem:[%s336_s11 + $0x38] sm:$0xff]  ;;  %v667_v4 = vld [vmem:[%s336_s11 + $0x30] sm:$0xff]  ;;  %v666_v5 = vld [vmem:[%s336_s11 + $0x28] sm:$0xff]  ;;  %p655_p11 = scmp.ne.s32.totalorder %s750_s17, 2 }
  0x24   : > { %439 = vmatpush.bf16.msra.mxu0 %v668_v3  ;;  %v665_v6 = vld [vmem:[%s336_s11 + $0x20] sm:$0xff]  ;;  %v664_v7 = vld [vmem:[%s336_s11 + $0x18] sm:$0xff]  ;;  %v663_v8 = vld [vmem:[%s336_s11 + $0x10] sm:$0xff] }
  0x25   : > { %v662_v9 = vld [vmem:[%s336_s11 + $0x8] sm:$0xff]  ;;  %v661_v10 = vld [vmem:[%s336_s11] sm:$0xff]  ;;  %v660_v11 = vld [vmem:[%s283_s12] sm:$0xff] }
  0x28   : > { %440 = vmatpush.bf16.msra.mxu0 %v667_v4  ;;  %v365_v12 = vld [vmem:[#allocation2] sm:$0xff] }
  0x29   : > { %v366_v15 = vld [vmem:[#allocation2 + $0x8] sm:$0xff] }
  0x2c   : > { %441 = vmatpush.bf16.msra.mxu0 %v666_v5 }
  0x30   : > { %442 = vmatpush.bf16.msra.mxu0 %v665_v6 }
  0x34   : > { %443 = vmatpush.bf16.msra.mxu0 %v664_v7 }
  0x38   : > { %444 = vmatpush.bf16.msra.mxu0 %v663_v8 }
  0x3c   : > { %445 = vmatpush.bf16.msra.mxu0 %v662_v9 }
  0x40   : > { %446 = vmatpush.bf16.msra.mxu0 %v661_v10 }
  0x43   : > { %447 = vmatmul.bf16.vlgmr.msra.gmra.mxu0 %v660_v11 }
  0xc0   : > { %v448_v13 = vpop.f32.mrf.mxu0 }
  0xc1   : > { %v453_v14 = vadd.f32 %v448_v13, %v365_v12 }
  0xc3   : > { %455 = vst [vmem:[#allocation2] sm:$0xff] %v453_v14 }
  0xc7   : > { %460 = sbr.rel (%p655_p11) target bundleno = 218 (0xda), region = 85 }
  0xc8   : > { %v450_v16 = vpop.f32.mrf.mxu0 }
  0xc9   : > { %v454_v17 = vadd.f32 %v450_v16, %v366_v15 }
  0xcb   : > { %456 = vst [vmem:[#allocation2 + $0x8] sm:$0xff] %v454_v17 }
  0xcc   : > { %v461_v18 = vld [vmem:[#allocation2] sm:$0xff] }
  0xcd   : > { %v719_v20 = vld [vmem:[%s864_s2] ss:$0 sm:$0xff] }
  0xce   : > { %v670_v21 = vld [vmem:[%s865_s3] sm:$0xff]   ;;  %v467_v24 = vadd.f32 %v719_v20, %v461_v18 }
  0xcf   : > { %v671_v22 = vunpack.c.l.bf16 %v670_v21  ;;  %v672_v23 = vunpack.c.h.bf16 %v670_v21 }
  0xd1   : > { %v473_v26 = vadd.f32 %v671_v22, %v467_v24 }
  0xd2   : > { %v462_v19 = vld [vmem:[#allocation2 + $0x8] sm:$0xff] }
  0xd3   : > { %v468_v25 = vadd.f32 %v719_v20, %v462_v19 }
  0xd5   : > { %v474_v27 = vadd.f32 %v672_v23, %v468_v25 }
  0xd7   : > { %v676_v28 = vpack.c.bf16 %v474_v27, %v473_v26 }
  0xd9   : > { %677 = vst [vmem:[%s866_s4] sm:$0xff] %v676_v28  }
  0xda PF: > { %s14_s19 = sadd.s32 1, %s758_s19   ;;  %s867_s15 = smov %s746_s16 }
  0xdb   : > { %p11_p12 = scmp.ge.s32.totalorder %s14_s19, 5   ;;  %s868_s16 = smov %s821_s23 }
  0xdc   : > { %s869_s17 = smov %s754_s18  ;;  %s870_s18 = smov %s872_s20 }
  0xdd   :  { %13 = sbr.rel (!%p11_p12) target bundleno = 3 (0x3), region = 129 }

// kernel: _lambda_.13
= control target key start
LH: loop header
LB: loop body
LE: loop exit
PB: predicated region body
PF: predicated region fallthrough
CT: control target
= control target key end

     0   :  { %s694_s12 = smov 0   ;;  %s696_s13 = smov 0   ;;  %s767_s0 = inlined_call_operand.vmem [shape: bf16[16,384], index: 0, kind: input, shape index: {}]   ;;  %s768_s1 = inlined_call_operand.vmem [shape: bf16[384,128], index: 1, kind: input, shape index: {}]   ;;  %s769_s2 = inlined_call_operand.vmem [shape: f32[1,128], index: 2, kind: input, shape index: {}]   ;;  %s770_s3 = inlined_call_operand.vmem [shape: bf16[16,128], index: 3, kind: output, shape index: {}]  }
   0x1   :  { %s698_s14 = smov 0   ;;  %s700_s15 = smov 0  }
   0x2   :  { %s702_s16 = smov 0  }
   0x3 LB: > { %s25_s17 = sadd.s32 1, %s667_s15  ;;  %p48_p1 = scmp.ne.s32.totalorder %s659_s13, %s655_s12  ;;  %s671_s16 = sphi %s702_s16, %s13_s16   ;;  %s667_s15 = sphi %s700_s15, %s774_s15   ;;  %s663_s14 = sphi %s698_s14, %s773_s14   ;;  %s659_s13 = sphi %s696_s13, %s772_s13   ;;  %s655_s12 = sphi %s694_s12, %s771_s12  }
   0x4   : > { %p26_p0 = scmp.ge.s32.totalorder %s25_s17, 3  ;;  %p49_p2 = scmp.eq.s32.totalorder %s671_s16, 0 }
   0x5   : > { %s41_s19 = sadd.s32 1, %s659_s13  ;;  %p528_p5 = scmp.ge.s32.totalorder %s671_s16, 3 }
   0x6   : > { %s776_s17 = smov (%p26_p0, %s25_s17), 0  ;;  %p50_p3 = por %p49_p2, %p48_p1 }
   0x7   : > { %s37_s18 = ssub.s32 %s667_s15, %s776_s17  ;;  %162 = sbr.rel (%p528_p5) target bundleno = 18 (0x12), region = 20 }
   0x8   : > { %p39_p4 = scmp.eq.s32.totalorder %s37_s18, 0 }
   0xa   : > { %s729_s20 = scalar_select %p39_p4, %s659_s13, %s41_s19  }
   0xc   : > { %165 = sbr.rel (!%p50_p3) target bundleno = 18 (0x12), region = 24  ;;  %s167_s21 = sand.u32 (%p50_p3), 1, %s659_s13  }
   0xd   : > { %s530_s22 = sshll.u32 (%p50_p3), %s667_s15, 2  ;;  %s529_s23 = sshll.u32 (%p50_p3), %s167_s21, 3 }
   0xe   : > { %s174_s26 = scalar_lea.vmem (%p50_p3), %s767_s0, %s530_s22  ;;  %s169_s27 = scalar_lea.vmem (%p50_p3), [#allocation3], %s529_s23 }
   0xf   : > { %v191_v0 = vld [vmem:[%s174_s26] sm:$0xf] (%p50_p3)  ;;  %v193_v1 = vld [vmem:[%s174_s26 + $0xc] sm:$0xf] (%p50_p3) }
  0x10   : > { %192 = vst [vmem:[%s169_s27] sm:$0xf] (%p50_p3), %v191_v0 }
  0x11   : > { %194 = vst [vmem:[%s169_s27 + $0x4] sm:$0xf] %v193_v1 }
  0x12 PF: > { %p531_p6 = scmp.ge.s32.totalorder %s671_s16, 1  ;;  %p233_p7 = scmp.lt.s32.totalorder %s671_s16, 4 }
  0x14   : > { %p234_p8 = pnand %p531_p6, %p233_p7 }
  0x15   : > { %s240_s28 = sand.u32 (!%p234_p8), 1, %s655_s12   ;;  %s533_s29 = sshll.u32 (!%p234_p8), %s663_s14, 4 }
  0x16   : > { %237 = sbr.rel (%p234_p8) target bundleno = 218 (0xda), region = 69  ;;  %s532_s30 = sshll.u32 (!%p234_p8), %s240_s28, 3 }
  0x17   : > { %p279_p9 = scmp.lt.s32.totalorder (!%p234_p8), %s533_s29, 47  ;;  %s242_s8 = scalar_lea.vmem (!%p234_p8), [#allocation3], %s532_s30 }
  0x18   : > { %p535_p10 = scmp.ne.s32.totalorder (!%p234_p8), %s663_s14, 0 }
  0x1b   : > { %s778_s29 = smov (!%p279_p9, %s533_s29), 47  ;;  %302 = sbr.rel (%p535_p10) target bundleno = 35 (0x23), region = 77 }
  0x1c   : > { %s534_s4 = sshll.u32 %s778_s29, 2 }
  0x1d   : > { %s285_s7 = scalar_lea.vmem %s768_s1, %s534_s4 }
  0x20   : > { %v673_v2 = vmov 0.0  }
  0x21   : > { %303 = vst [vmem:[#allocation2] sm:$0xff] %v673_v2 }
  0x22   : > { %304 = vst [vmem:[#allocation2 + $0x8] sm:$0xff] %v673_v2 }
  0x23 PF: > { %v585_v3 = vld [vmem:[%s285_s7 + $0x38] sm:$0xff]  ;;  %v584_v4 = vld [vmem:[%s285_s7 + $0x30] sm:$0xff]  ;;  %v583_v5 = vld [vmem:[%s285_s7 + $0x28] sm:$0xff]  ;;  %p572_p11 = scmp.ne.s32.totalorder %s663_s14, 2 }
  0x24   : > { %379 = vmatpush.bf16.msra.mxu0 %v585_v3  ;;  %v582_v6 = vld [vmem:[%s285_s7 + $0x20] sm:$0xff]  ;;  %v581_v7 = vld [vmem:[%s285_s7 + $0x18] sm:$0xff]  ;;  %v580_v8 = vld [vmem:[%s285_s7 + $0x10] sm:$0xff] }
  0x25   : > { %v579_v9 = vld [vmem:[%s285_s7 + $0x8] sm:$0xff]  ;;  %v578_v10 = vld [vmem:[%s285_s7] sm:$0xff]  ;;  %v577_v11 = vld [vmem:[%s242_s8] sm:$0xff] }
  0x28   : > { %380 = vmatpush.bf16.msra.mxu0 %v584_v4  ;;  %v305_v12 = vld [vmem:[#allocation2] sm:$0xff] }
  0x29   : > { %v306_v15 = vld [vmem:[#allocation2 + $0x8] sm:$0xff] }
  0x2c   : > { %381 = vmatpush.bf16.msra.mxu0 %v583_v5 }
  0x30   : > { %382 = vmatpush.bf16.msra.mxu0 %v582_v6 }
  0x34   : > { %383 = vmatpush.bf16.msra.mxu0 %v581_v7 }
  0x38   : > { %384 = vmatpush.bf16.msra.mxu0 %v580_v8 }
  0x3c   : > { %385 = vmatpush.bf16.msra.mxu0 %v579_v9 }
  0x40   : > { %386 = vmatpush.bf16.msra.mxu0 %v578_v10 }
  0x43   : > { %387 = vmatmul.bf16.vlgmr.msra.gmra.mxu0 %v577_v11 }
  0xc0   : > { %v388_v13 = vpop.f32.mrf.mxu0 }
  0xc1   : > { %v393_v14 = vadd.f32 %v388_v13, %v305_v12 }
  0xc3   : > { %395 = vst [vmem:[#allocation2] sm:$0xff] %v393_v14 }
  0xc7   : > { %400 = sbr.rel (%p572_p11) target bundleno = 218 (0xda), region = 81 }
  0xc8   : > { %v390_v16 = vpop.f32.mrf.mxu0 }
  0xc9   : > { %v394_v17 = vadd.f32 %v390_v16, %v306_v15 }
  0xcb   : > { %396 = vst [vmem:[#allocation2 + $0x8] sm:$0xff] %v394_v17 }
  0xcc   : > { %v401_v18 = vld [vmem:[#allocation2] sm:$0xff] }
  0xcd   : > { %v632_v20 = vld [vmem:[%s769_s2] ss:$0 sm:$0xff] }
  0xce   : > { %v407_v21 = vadd.f32 %v632_v20, %v401_v18 }
  0xd0   : > { %v409_v23 = vmax.f32 %v407_v21, 0.0 }
  0xd2   : > { %v402_v19 = vld [vmem:[#allocation2 + $0x8] sm:$0xff] }
  0xd3   : > { %v408_v22 = vadd.f32 %v632_v20, %v402_v19 }
  0xd5   : > { %v410_v24 = vmax.f32 %v408_v22, 0.0 }
  0xd7   : > { %v589_v25 = vpack.c.bf16 %v410_v24, %v409_v23 }
  0xd9   : > { %590 = vst [vmem:[%s770_s3] sm:$0xff] %v589_v25  }
  0xda PF: > { %s13_s16 = sadd.s32 1, %s671_s16   ;;  %s771_s12 = smov %s659_s13 }
  0xdb   : > { %p10_p12 = scmp.ge.s32.totalorder %s13_s16, 5   ;;  %s772_s13 = smov %s729_s20 }
  0xdc   : > { %s773_s14 = smov %s667_s15  ;;  %s774_s15 = smov %s776_s17 }
  0xdd   :  { %12 = sbr.rel (!%p10_p12) target bundleno = 3 (0x3), region = 122 }

// kernel: _lambda_.17
= control target key start
LH: loop header
LB: loop body
LE: loop exit
PB: predicated region body
PF: predicated region fallthrough
CT: control target
= control target key end

     0   :  { %s868_s12 = smov 0   ;;  %s870_s13 = smov 0   ;;  %s966_s0 = inlined_call_operand.vmem [shape: bf16[64,384], index: 0, kind: input, shape index: {}]   ;;  %s967_s1 = inlined_call_operand.vmem [shape: bf16[384,128], index: 1, kind: input, shape index: {}]   ;;  %s968_s2 = inlined_call_operand.vmem [shape: f32[1,128], index: 2, kind: input, shape index: {}]   ;;  %s969_s3 = inlined_call_operand.vmem [shape: bf16[64,128], index: 3, kind: output, shape index: {}]  }
   0x1   :  { %s872_s14 = smov 0   ;;  %s874_s15 = smov 0  }
   0x2   :  { %s876_s16 = smov 0  }
   0x3 LB: > { %s25_s17 = sadd.s32 1, %s841_s15  ;;  %p48_p1 = scmp.ne.s32.totalorder %s833_s13, %s829_s12  ;;  %s845_s16 = sphi %s876_s16, %s13_s16   ;;  %s841_s15 = sphi %s874_s15, %s973_s15   ;;  %s837_s14 = sphi %s872_s14, %s972_s14   ;;  %s833_s13 = sphi %s870_s13, %s971_s13   ;;  %s829_s12 = sphi %s868_s12, %s970_s12  }
   0x4   : > { %p26_p0 = scmp.ge.s32.totalorder %s25_s17, 3  ;;  %p49_p2 = scmp.eq.s32.totalorder %s845_s16, 0 }
   0x5   : > { %s41_s19 = sadd.s32 1, %s833_s13  ;;  %p645_p5 = scmp.ge.s32.totalorder %s845_s16, 3 }
   0x6   : > { %s975_s17 = smov (%p26_p0, %s25_s17), 0  ;;  %p50_p3 = por %p49_p2, %p48_p1 }
   0x7   : > { %s37_s18 = ssub.s32 %s841_s15, %s975_s17  ;;  %162 = sbr.rel (%p645_p5) target bundleno = 24 (0x18), region = 20 }
   0x8   : > { %p39_p4 = scmp.eq.s32.totalorder %s37_s18, 0 }
   0xa   : > { %s903_s20 = scalar_select %p39_p4, %s833_s13, %s41_s19  }
   0xc   : > { %165 = sbr.rel (!%p50_p3) target bundleno = 24 (0x18), region = 24  ;;  %s167_s21 = sand.u32 (%p50_p3), 1, %s833_s13  }
   0xd   : > { %s647_s22 = sshll.u32 (%p50_p3), %s841_s15, 2  ;;  %s646_s23 = sshll.u32 (%p50_p3), %s167_s21, 5 }
   0xe   : > { %s174_s26 = scalar_lea.vmem (%p50_p3), %s966_s0, %s647_s22  ;;  %s169_s27 = scalar_lea.vmem (%p50_p3), [#allocation3], %s646_s23 }
   0xf   : > { %v191_v0 = vld [vmem:[%s174_s26] sm:$0xf] (%p50_p3)  ;;  %v193_v1 = vld [vmem:[%s174_s26 + $0xc] sm:$0xf] (%p50_p3)  ;;  %v195_v2 = vld [vmem:[%s174_s26 + $0x18] sm:$0xf] (%p50_p3) }
  0x10   : > { %192 = vst [vmem:[%s169_s27] sm:$0xf] (%p50_p3), %v191_v0  ;;  %v197_v3 = vld [vmem:[%s174_s26 + $0x24] sm:$0xf] (%p50_p3)  ;;  %v199_v4 = vld [vmem:[%s174_s26 + $0x30] sm:$0xf] (%p50_p3) }
  0x11   : > { %194 = vst [vmem:[%s169_s27 + $0x4] sm:$0xf] %v193_v1  ;;  %v201_v5 = vld [vmem:[%s174_s26 + $0x3c] sm:$0xf]  ;;  %v203_v6 = vld [vmem:[%s174_s26 + $0x48] sm:$0xf] }
  0x12   : > { %196 = vst [vmem:[%s169_s27 + $0x8] sm:$0xf] %v195_v2  ;;  %v205_v7 = vld [vmem:[%s174_s26 + $0x54] sm:$0xf] }
  0x13   : > { %198 = vst [vmem:[%s169_s27 + $0xc] sm:$0xf] %v197_v3 }
  0x14   : > { %200 = vst [vmem:[%s169_s27 + $0x10] sm:$0xf] %v199_v4 }
  0x15   : > { %202 = vst [vmem:[%s169_s27 + $0x14] sm:$0xf] %v201_v5 }
  0x16   : > { %204 = vst [vmem:[%s169_s27 + $0x18] sm:$0xf] %v203_v6 }
  0x17   : > { %206 = vst [vmem:[%s169_s27 + $0x1c] sm:$0xf] %v205_v7 }
  0x18 PF: > { %p648_p6 = scmp.ge.s32.totalorder %s845_s16, 1  ;;  %p257_p7 = scmp.lt.s32.totalorder %s845_s16, 4 }
  0x1a   : > { %p258_p8 = pnand %p648_p6, %p257_p7 }
  0x1b   : > { %s264_s28 = sand.u32 (!%p258_p8), 1, %s829_s12   ;;  %s650_s29 = sshll.u32 (!%p258_p8), %s837_s14, 4 }
  0x1c   : > { %261 = sbr.rel (%p258_p8) target bundleno = 238 (0xee), region = 69  ;;  %s649_s30 = sshll.u32 (!%p258_p8), %s264_s28, 5 }
  0x1d   : > { %p303_p9 = scmp.lt.s32.totalorder (!%p258_p8), %s650_s29, 47  ;;  %s920_s8 = scalar_lea.vmem (!%p258_p8), [#allocation3], %s649_s30 }
  0x1e   : > { %p652_p10 = scmp.ne.s32.totalorder (!%p258_p8), %s837_s14, 0 }
  0x21   : > { %s977_s29 = smov (!%p303_p9, %s650_s29), 47  ;;  %326 = sbr.rel (%p652_p10) target bundleno = 47 (0x2f), region = 77 }
  0x22   : > { %s651_s4 = sshll.u32 %s977_s29, 2 }
  0x23   : > { %s918_s7 = scalar_lea.vmem %s967_s1, %s651_s4 }
  0x26   : > { %v847_v8 = vmov 0.0  }
  0x27   : > { %327 = vst [vmem:[#allocation2 + $0x30] sm:$0xff] %v847_v8 }
  0x28   : > { %328 = vst [vmem:[#allocation2] sm:$0xff] %v847_v8 }
  0x29   : > { %329 = vst [vmem:[#allocation2 + $0x18] sm:$0xff] %v847_v8 }
  0x2a   : > { %330 = vst [vmem:[#allocation2 + $0x10] sm:$0xff] %v847_v8 }
  0x2b   : > { %331 = vst [vmem:[#allocation2 + $0x8] sm:$0xff] %v847_v8 }
  0x2c   : > { %332 = vst [vmem:[#allocation2 + $0x20] sm:$0xff] %v847_v8 }
  0x2d   : > { %333 = vst [vmem:[#allocation2 + $0x28] sm:$0xff] %v847_v8 }
  0x2e   : > { %334 = vst [vmem:[#allocation2 + $0x38] sm:$0xff] %v847_v8 }
  0x2f PF: > { %v717_v9 = vld [vmem:[%s918_s7 + $0x38] sm:$0xff]  ;;  %v716_v10 = vld [vmem:[%s918_s7 + $0x30] sm:$0xff]  ;;  %v715_v11 = vld [vmem:[%s918_s7 + $0x28] sm:$0xff]  ;;  %p701_p11 = scmp.ne.s32.totalorder %s837_s14, 2 }
  0x30   : > { %439 = vmatpush.bf16.msra.mxu0 %v717_v9  ;;  %741 = vmatpush.bf16.msra.mxu1 %v717_v9  ;;  %v714_v12 = vld [vmem:[%s918_s7 + $0x20] sm:$0xff]  ;;  %v713_v13 = vld [vmem:[%s918_s7 + $0x18] sm:$0xff]  ;;  %v712_v14 = vld [vmem:[%s918_s7 + $0x10] sm:$0xff] }
  0x31   : > { %742 = vmatpush.bf16.msra.mxu2 %v717_v9  ;;  %743 = vmatpush.bf16.msra.mxu3 %v717_v9  ;;  %v711_v15 = vld [vmem:[%s918_s7 + $0x8] sm:$0xff]  ;;  %v710_v16 = vld [vmem:[%s918_s7] sm:$0xff]  ;;  %v708_v19 = vld [vmem:[%s920_s8 + $0x10] sm:$0xff] }
  0x32   : > { %v706_v17 = vld [vmem:[%s920_s8] sm:$0xff]  ;;  %v707_v18 = vld [vmem:[%s920_s8 + $0x8] sm:$0xff]  ;;  %v709_v20 = vld [vmem:[%s920_s8 + $0x18] sm:$0xff] }
  0x33   : > { %v335_v21 = vld [vmem:[#allocation2 + $0x30] sm:$0xff]  ;;  %v337_v22 = vld [vmem:[#allocation2 + $0x18] sm:$0xff]  ;;  %v339_v27 = vld [vmem:[#allocation2 + $0x8] sm:$0xff] }
  0x34   : > { %440 = vmatpush.bf16.msra.mxu0 %v716_v10  ;;  %744 = vmatpush.bf16.msra.mxu1 %v716_v10  ;;  %v341_v28 = vld [vmem:[#allocation2 + $0x28] sm:$0xff]  ;;  %v336_v29 = vld [vmem:[#allocation2] sm:$0xff]  ;;  %v338_v30 = vld [vmem:[#allocation2 + $0x10] sm:$0xff] }
  0x35   : > { %745 = vmatpush.bf16.msra.mxu2 %v716_v10  ;;  %746 = vmatpush.bf16.msra.mxu3 %v716_v10  ;;  %v340_v39 = vld [vmem:[#allocation2 + $0x20] sm:$0xff]  ;;  %v342_v40 = vld [vmem:[#allocation2 + $0x38] sm:$0xff] }
  0x38   : > { %441 = vmatpush.bf16.msra.mxu0 %v715_v11  ;;  %747 = vmatpush.bf16.msra.mxu1 %v715_v11 }
  0x39   : > { %748 = vmatpush.bf16.msra.mxu2 %v715_v11  ;;  %749 = vmatpush.bf16.msra.mxu3 %v715_v11 }
  0x3c   : > { %442 = vmatpush.bf16.msra.mxu0 %v714_v12  ;;  %750 = vmatpush.bf16.msra.mxu1 %v714_v12 }
  0x3d   : > { %751 = vmatpush.bf16.msra.mxu2 %v714_v12  ;;  %752 = vmatpush.bf16.msra.mxu3 %v714_v12 }
  0x40   : > { %443 = vmatpush.bf16.msra.mxu0 %v713_v13  ;;  %753 = vmatpush.bf16.msra.mxu1 %v713_v13 }
  0x41   : > { %754 = vmatpush.bf16.msra.mxu2 %v713_v13  ;;  %755 = vmatpush.bf16.msra.mxu3 %v713_v13 }
  0x44   : > { %444 = vmatpush.bf16.msra.mxu0 %v712_v14  ;;  %756 = vmatpush.bf16.msra.mxu1 %v712_v14 }
  0x45   : > { %757 = vmatpush.bf16.msra.mxu2 %v712_v14  ;;  %758 = vmatpush.bf16.msra.mxu3 %v712_v14 }
  0x48   : > { %445 = vmatpush.bf16.msra.mxu0 %v711_v15  ;;  %759 = vmatpush.bf16.msra.mxu1 %v711_v15 }
  0x49   : > { %760 = vmatpush.bf16.msra.mxu2 %v711_v15  ;;  %761 = vmatpush.bf16.msra.mxu3 %v711_v15 }
  0x4c   : > { %446 = vmatpush.bf16.msra.mxu0 %v710_v16  ;;  %762 = vmatpush.bf16.msra.mxu1 %v710_v16 }
  0x4d   : > { %763 = vmatpush.bf16.msra.mxu2 %v710_v16  ;;  %764 = vmatpush.bf16.msra.mxu3 %v710_v16 }
  0x4f   : > { %447 = vmatmul.bf16.vlgmr.msra.gmra.mxu0 %v706_v17  ;;  %452 = vmatmul.bf16.vlgmr.msra.gmra.mxu1 %v707_v18 }
  0x50   : > { %457 = vmatmul.bf16.vlgmr.msra.gmra.mxu2 %v708_v19  ;;  %462 = vmatmul.bf16.vlgmr.msra.gmra.mxu3 %v709_v20 }
  0xcc   : > { %v448_v23 = vpop.f32.mrf.mxu0  ;;  %v453_v24 = vpop.f32.mrf.mxu1 }
  0xcd   : > { %v468_v25 = vadd.f32 %v448_v23, %v335_v21  ;;  %v470_v26 = vadd.f32 %v453_v24, %v337_v22 }
  0xcf   : > { %476 = vst [vmem:[#allocation2 + $0x30] sm:$0xff] %v468_v25 }
  0xd0   : > { %478 = vst [vmem:[#allocation2 + $0x18] sm:$0xff] %v470_v26 }
  0xd3   : > { %v458_v31 = vpop.f32.mrf.mxu2  ;;  %v463_v32 = vpop.f32.mrf.mxu3 }
  0xd4   : > { %v472_v33 = vadd.f32 %v458_v31, %v339_v27  ;;  %v474_v34 = vadd.f32 %v463_v32, %v341_v28  ;;  %v450_v35 = vpop.f32.mrf.mxu0  ;;  %v455_v36 = vpop.f32.mrf.mxu1 }
  0xd5   : > { %v469_v37 = vadd.f32 %v450_v35, %v336_v29  ;;  %v471_v38 = vadd.f32 %v455_v36, %v338_v30 }
  0xd6   : > { %480 = vst [vmem:[#allocation2 + $0x8] sm:$0xff] %v472_v33 }
  0xd7   : > { %482 = vst [vmem:[#allocation2 + $0x28] sm:$0xff] %v474_v34 }
  0xd8   : > { %477 = vst [vmem:[#allocation2] sm:$0xff] %v469_v37 }
  0xd9   : > { %479 = vst [vmem:[#allocation2 + $0x10] sm:$0xff] %v471_v38 }
  0xdb   : > { %v460_v41 = vpop.f32.mrf.mxu2  ;;  %v465_v42 = vpop.f32.mrf.mxu3  ;;  %487 = sbr.rel (%p701_p11) target bundleno = 238 (0xee), region = 81 }
  0xdc   : > { %v473_v43 = vadd.f32 %v460_v41, %v340_v39  ;;  %v475_v44 = vadd.f32 %v465_v42, %v342_v40 }
  0xde   : > { %481 = vst [vmem:[#allocation2 + $0x20] sm:$0xff] %v473_v43 }
  0xdf   : > { %483 = vst [vmem:[#allocation2 + $0x38] sm:$0xff] %v475_v44 }
  0xe0   : > { %v488_v45 = vld [vmem:[#allocation2 + $0x30] sm:$0xff]  ;;  %v489_v46 = vld [vmem:[#allocation2] sm:$0xff]  ;;  %v490_v48 = vld [vmem:[#allocation2 + $0x18] sm:$0xff] }
  0xe1   : > { %v806_v47 = vld [vmem:[%s968_s2] ss:$0 sm:$0xff]  ;;  %v491_v49 = vld [vmem:[#allocation2 + $0x10] sm:$0xff]  ;;  %v492_v50 = vld [vmem:[#allocation2 + $0x8] sm:$0xff] }
  0xe2   : > { %v494_v52 = vld [vmem:[#allocation2 + $0x28] sm:$0xff]  ;;  %v500_v53 = vadd.f32 %v806_v47, %v488_v45  ;;  %v501_v54 = vadd.f32 %v806_v47, %v489_v46  ;;  %v502_v55 = vadd.f32 %v806_v47, %v490_v48  ;;  %v503_v56 = vadd.f32 %v806_v47, %v491_v49 }
  0xe3   : > { %v504_v58 = vadd.f32 %v806_v47, %v492_v50  ;;  %v506_v60 = vadd.f32 %v806_v47, %v494_v52 }
  0xe4   : > { %v508_v62 = vmax.f32 %v500_v53, 0.0  ;;  %v509_v63 = vmax.f32 %v501_v54, 0.0  ;;  %v510_v0 = vmax.f32 %v502_v55, 0.0  ;;  %v511_v1 = vmax.f32 %v503_v56, 0.0 }
  0xe5   : > { %v493_v51 = vld [vmem:[#allocation2 + $0x20] sm:$0xff]  ;;  %v512_v2 = vmax.f32 %v504_v58, 0.0  ;;  %v514_v4 = vmax.f32 %v506_v60, 0.0 }
  0xe6   : > { %v495_v57 = vld [vmem:[#allocation2 + $0x38] sm:$0xff]  ;;  %v505_v59 = vadd.f32 %v806_v47, %v493_v51  ;;  %v721_v6 = vpack.c.bf16 %v509_v63, %v508_v62  ;;  %v726_v7 = vpack.c.bf16 %v511_v1, %v510_v0 }
  0xe7   : > { %v507_v61 = vadd.f32 %v806_v47, %v495_v57 }
  0xe8   : > { %v513_v3 = vmax.f32 %v505_v59, 0.0  ;;  %722 = vst [vmem:[%s969_s3] sm:$0xff] %v721_v6  }
  0xe9   : > { %v515_v5 = vmax.f32 %v507_v61, 0.0  ;;  %738 = vst [vmem:[%s969_s3 + $0x8] sm:$0xff] %v726_v7  }
  0xea   : > { %v731_v8 = vpack.c.bf16 %v513_v3, %v512_v2 }
  0xeb   : > { %v736_v9 = vpack.c.bf16 %v515_v5, %v514_v4 }
  0xec   : > { %739 = vst [vmem:[%s969_s3 + $0x10] sm:$0xff] %v731_v8  }
  0xed   : > { %740 = vst [vmem:[%s969_s3 + $0x18] sm:$0xff] %v736_v9  }
  0xee PF: > { %s13_s16 = sadd.s32 1, %s845_s16   ;;  %s970_s12 = smov %s833_s13 }
  0xef   : > { %p10_p12 = scmp.ge.s32.totalorder %s13_s16, 5   ;;  %s971_s13 = smov %s903_s20 }
  0xf0   : > { %s972_s14 = smov %s841_s15  ;;  %s973_s15 = smov %s975_s17 }
  0xf1   :  { %12 = sbr.rel (!%p10_p12) target bundleno = 3 (0x3), region = 122 }

// kernel: _lambda_.19
= control target key start
LH: loop header
LB: loop body
LE: loop exit
PB: predicated region body
PF: predicated region fallthrough
CT: control target
= control target key end

     0   :  { %s1405_s12 = smov 0   ;;  %s1407_s13 = smov 0   ;;  %s1701_s0 = inlined_call_operand.vmem [shape: bf16[256,512], index: 0, kind: input, shape index: {}]   ;;  %s1702_s1 = inlined_call_operand.vmem [shape: bf16[512,128], index: 1, kind: input, shape index: {}]   ;;  %s1703_s2 = inlined_call_operand.vmem [shape: f32[1,128], index: 2, kind: input, shape index: {}]   ;;  %s1704_s3 = inlined_call_operand.vmem [shape: f32[256,128], index: 3, kind: output, shape index: {}]  }
   0x1   :  { %s1409_s14 = smov 0   ;;  %s1411_s15 = smov 0  }
   0x2   :  { %s1413_s16 = smov 0  }
   0x3 LB: > { %s25_s17 = sadd.s32 1, %s1378_s15  ;;  %p48_p1 = scmp.ne.s32.totalorder %s1370_s13, %s1366_s12  ;;  %s1382_s16 = sphi %s1413_s16, %s13_s16   ;;  %s1378_s15 = sphi %s1411_s15, %s1708_s15   ;;  %s1374_s14 = sphi %s1409_s14, %s1707_s14   ;;  %s1370_s13 = sphi %s1407_s13, %s1706_s13   ;;  %s1366_s12 = sphi %s1405_s12, %s1705_s12  }
   0x4   : > { %p26_p0 = scmp.ge.s32.totalorder %s25_s17, 4  ;;  %p49_p2 = scmp.eq.s32.totalorder %s1382_s16, 0 }
   0x5   : > { %s41_s19 = sadd.s32 1, %s1370_s13  ;;  %p1081_p5 = scmp.ge.s32.totalorder %s1382_s16, 4 }
   0x6   : > { %s1710_s17 = smov (%p26_p0, %s25_s17), 0  ;;  %p50_p3 = por %p49_p2, %p48_p1 }
   0x7   : > { %s37_s18 = ssub.s32 %s1378_s15, %s1710_s17  ;;  %162 = sbr.rel (%p1081_p5) target bundleno = 48 (0x30), region = 20 }
   0x8   : > { %p39_p4 = scmp.eq.s32.totalorder %s37_s18, 0 }
   0xa   : > { %s1440_s20 = scalar_select %p39_p4, %s1370_s13, %s41_s19  }
   0xc   : > { %165 = sbr.rel (!%p50_p3) target bundleno = 48 (0x30), region = 24  ;;  %s167_s21 = sand.u32 (%p50_p3), 1, %s1370_s13  }
   0xd   : > { %s1083_s22 = sshll.u32 (%p50_p3), %s1378_s15, 2  ;;  %s1082_s23 = sshll.u32 (%p50_p3), %s167_s21, 7 }
   0xe   : > { %s1448_s26 = scalar_lea.vmem (%p50_p3), %s1701_s0, %s1083_s22  ;;  %s1452_s27 = scalar_lea.vmem (%p50_p3), [#allocation3], %s1082_s23 }
   0xf   : > { %v191_v0 = vld [vmem:[%s1448_s26] sm:$0xf] (%p50_p3)  ;;  %v193_v1 = vld [vmem:[%s1448_s26 + $0x10] sm:$0xf] (%p50_p3) }
  0x10   : > { %192 = vst [vmem:[%s1452_s27] sm:$0xf] (%p50_p3), %v191_v0  ;;  %v195_v2 = vld [vmem:[%s1448_s26 + $0x20] sm:$0xf] (%p50_p3)  ;;  %v197_v3 = vld [vmem:[%s1448_s26 + $0x30] sm:$0xf] (%p50_p3) }
  0x11   : > { %194 = vst [vmem:[%s1452_s27 + $0x4] sm:$0xf] %v193_v1  ;;  %v199_v4 = vld [vmem:[%s1448_s26 + $0x40] sm:$0xf]  ;;  %v201_v5 = vld [vmem:[%s1448_s26 + $0x50] sm:$0xf] }
  0x12   : > { %196 = vst [vmem:[%s1452_s27 + $0x8] sm:$0xf] %v195_v2  ;;  %v203_v6 = vld [vmem:[%s1448_s26 + $0x60] sm:$0xf]  ;;  %v205_v7 = vld [vmem:[%s1448_s26 + $0x70] sm:$0xf] }
  0x13   : > { %198 = vst [vmem:[%s1452_s27 + $0xc] sm:$0xf] %v197_v3  ;;  %v207_v8 = vld [vmem:[%s1448_s26 + $0x80] sm:$0xf]  ;;  %v209_v9 = vld [vmem:[%s1448_s26 + $0x90] sm:$0xf] }
  0x14   : > { %200 = vst [vmem:[%s1452_s27 + $0x10] sm:$0xf] %v199_v4  ;;  %v211_v10 = vld [vmem:[%s1448_s26 + $0xa0] sm:$0xf]  ;;  %v213_v11 = vld [vmem:[%s1448_s26 + $0xb0] sm:$0xf] }
  0x15   : > { %202 = vst [vmem:[%s1452_s27 + $0x14] sm:$0xf] %v201_v5  ;;  %v215_v12 = vld [vmem:[%s1448_s26 + $0xc0] sm:$0xf]  ;;  %v217_v13 = vld [vmem:[%s1448_s26 + $0xd0] sm:$0xf] }
  0x16   : > { %204 = vst [vmem:[%s1452_s27 + $0x18] sm:$0xf] %v203_v6  ;;  %v219_v14 = vld [vmem:[%s1448_s26 + $0xe0] sm:$0xf]  ;;  %v221_v15 = vld [vmem:[%s1448_s26 + $0xf0] sm:$0xf] }
  0x17   : > { %206 = vst [vmem:[%s1452_s27 + $0x1c] sm:$0xf] %v205_v7  ;;  %v223_v16 = vld [vmem:[%s1448_s26 + $0x100] sm:$0xf]  ;;  %v225_v17 = vld [vmem:[%s1448_s26 + $0x110] sm:$0xf] }
  0x18   : > { %208 = vst [vmem:[%s1452_s27 + $0x20] sm:$0xf] %v207_v8  ;;  %v227_v18 = vld [vmem:[%s1448_s26 + $0x120] sm:$0xf]  ;;  %v229_v19 = vld [vmem:[%s1448_s26 + $0x130] sm:$0xf] }
  0x19   : > { %210 = vst [vmem:[%s1452_s27 + $0x24] sm:$0xf] %v209_v9  ;;  %v231_v20 = vld [vmem:[%s1448_s26 + $0x140] sm:$0xf]  ;;  %v233_v21 = vld [vmem:[%s1448_s26 + $0x150] sm:$0xf] }
  0x1a   : > { %212 = vst [vmem:[%s1452_s27 + $0x28] sm:$0xf] %v211_v10  ;;  %v235_v22 = vld [vmem:[%s1448_s26 + $0x160] sm:$0xf]  ;;  %v237_v23 = vld [vmem:[%s1448_s26 + $0x170] sm:$0xf] }
  0x1b   : > { %214 = vst [vmem:[%s1452_s27 + $0x2c] sm:$0xf] %v213_v11  ;;  %v239_v24 = vld [vmem:[%s1448_s26 + $0x180] sm:$0xf]  ;;  %v241_v25 = vld [vmem:[%s1448_s26 + $0x190] sm:$0xf] }
  0x1c   : > { %216 = vst [vmem:[%s1452_s27 + $0x30] sm:$0xf] %v215_v12  ;;  %v243_v26 = vld [vmem:[%s1448_s26 + $0x1a0] sm:$0xf]  ;;  %v245_v27 = vld [vmem:[%s1448_s26 + $0x1b0] sm:$0xf] }
  0x1d   : > { %218 = vst [vmem:[%s1452_s27 + $0x34] sm:$0xf] %v217_v13  ;;  %v247_v28 = vld [vmem:[%s1448_s26 + $0x1c0] sm:$0xf]  ;;  %v249_v29 = vld [vmem:[%s1448_s26 + $0x1d0] sm:$0xf] }
  0x1e   : > { %220 = vst [vmem:[%s1452_s27 + $0x38] sm:$0xf] %v219_v14  ;;  %v251_v30 = vld [vmem:[%s1448_s26 + $0x1e0] sm:$0xf]  ;;  %v253_v31 = vld [vmem:[%s1448_s26 + $0x1f0] sm:$0xf] }
  0x1f   : > { %222 = vst [vmem:[%s1452_s27 + $0x3c] sm:$0xf] %v221_v15 }
  0x20   : > { %224 = vst [vmem:[%s1452_s27 + $0x40] sm:$0xf] %v223_v16 }
  0x21   : > { %226 = vst [vmem:[%s1452_s27 + $0x44] sm:$0xf] %v225_v17 }
  0x22   : > { %228 = vst [vmem:[%s1452_s27 + $0x48] sm:$0xf] %v227_v18 }
  0x23   : > { %230 = vst [vmem:[%s1452_s27 + $0x4c] sm:$0xf] %v229_v19 }
  0x24   : > { %232 = vst [vmem:[%s1452_s27 + $0x50] sm:$0xf] %v231_v20 }
  0x25   : > { %234 = vst [vmem:[%s1452_s27 + $0x54] sm:$0xf] %v233_v21 }
  0x26   : > { %236 = vst [vmem:[%s1452_s27 + $0x58] sm:$0xf] %v235_v22 }
  0x27   : > { %238 = vst [vmem:[%s1452_s27 + $0x5c] sm:$0xf] %v237_v23 }
  0x28   : > { %240 = vst [vmem:[%s1452_s27 + $0x60] sm:$0xf] %v239_v24 }
  0x29   : > { %242 = vst [vmem:[%s1452_s27 + $0x64] sm:$0xf] %v241_v25 }
  0x2a   : > { %244 = vst [vmem:[%s1452_s27 + $0x68] sm:$0xf] %v243_v26 }
  0x2b   : > { %246 = vst [vmem:[%s1452_s27 + $0x6c] sm:$0xf] %v245_v27 }
  0x2c   : > { %248 = vst [vmem:[%s1452_s27 + $0x70] sm:$0xf] %v247_v28 }
  0x2d   : > { %250 = vst [vmem:[%s1452_s27 + $0x74] sm:$0xf] %v249_v29 }
  0x2e   : > { %252 = vst [vmem:[%s1452_s27 + $0x78] sm:$0xf] %v251_v30 }
  0x2f   : > { %254 = vst [vmem:[%s1452_s27 + $0x7c] sm:$0xf] %v253_v31 }
  0x30 PF: > { %p1084_p6 = scmp.ge.s32.totalorder %s1382_s16, 1  ;;  %p353_p7 = scmp.lt.s32.totalorder %s1382_s16, 5 }
  0x32   : > { %p354_p8 = pnand %p1084_p6, %p353_p7 }
  0x33   : > { %s360_s28 = sand.u32 (!%p354_p8), 1, %s1366_s12   ;;  %s1086_s29 = sshll.u32 (!%p354_p8), %s1374_s14, 4 }
  0x34   : > { %357 = sbr.rel (%p354_p8) target bundleno = 362 (0x16a), region = 69  ;;  %s1085_s30 = sshll.u32 (!%p354_p8), %s360_s28, 7 }
  0x35   : > { %p399_p9 = scmp.lt.s32.totalorder (!%p354_p8), %s1086_s29, 63  ;;  %s1525_s8 = scalar_lea.vmem (!%p354_p8), [#allocation3], %s1085_s30 }
  0x36   : > { %p1088_p10 = scmp.ne.s32.totalorder (!%p354_p8), %s1374_s14, 0 }
  0x39   : > { %s1712_s29 = smov (!%p399_p9, %s1086_s29), 63  ;;  %422 = sbr.rel (%p1088_p10) target bundleno = 95 (0x5f), region = 77 }
  0x3a   : > { %s1087_s4 = sshll.u32 %s1712_s29, 2 }
  0x3b   : > { %s1523_s7 = scalar_lea.vmem %s1702_s1, %s1087_s4 }
  0x3e   : > { %v1384_v32 = vmov 0.0  }
  0x3f   : > { %423 = vst [vmem:[#allocation2 + $0xb0] sm:$0xff] %v1384_v32 }
  0x40   : > { %424 = vst [vmem:[#allocation2] sm:$0xff] %v1384_v32 }
  0x41   : > { %425 = vst [vmem:[#allocation2 + $0xd8] sm:$0xff] %v1384_v32 }
  0x42   : > { %426 = vst [vmem:[#allocation2 + $0x18] sm:$0xff] %v1384_v32 }
  0x43   : > { %427 = vst [vmem:[#allocation2 + $0x50] sm:$0xff] %v1384_v32 }
  0x44   : > { %428 = vst [vmem:[#allocation2 + $0x68] sm:$0xff] %v1384_v32 }
  0x45   : > { %429 = vst [vmem:[#allocation2 + $0x30] sm:$0xff] %v1384_v32 }
  0x46   : > { %430 = vst [vmem:[#allocation2 + $0x48] sm:$0xff] %v1384_v32 }
  0x47   : > { %431 = vst [vmem:[#allocation2 + $0x80] sm:$0xff] %v1384_v32 }
  0x48   : > { %432 = vst [vmem:[#allocation2 + $0x88] sm:$0xff] %v1384_v32 }
  0x49   : > { %433 = vst [vmem:[#allocation2 + $0xe8] sm:$0xff] %v1384_v32 }
  0x4a   : > { %434 = vst [vmem:[#allocation2 + $0xb8] sm:$0xff] %v1384_v32 }
  0x4b   : > { %435 = vst [vmem:[#allocation2 + $0x60] sm:$0xff] %v1384_v32 }
  0x4c   : > { %436 = vst [vmem:[#allocation2 + $0xf0] sm:$0xff] %v1384_v32 }
  0x4d   : > { %437 = vst [vmem:[#allocation2 + $0x8] sm:$0xff] %v1384_v32 }
  0x4e   : > { %438 = vst [vmem:[#allocation2 + $0x78] sm:$0xff] %v1384_v32 }
  0x4f   : > { %439 = vst [vmem:[#allocation2 + $0x38] sm:$0xff] %v1384_v32 }
  0x50   : > { %440 = vst [vmem:[#allocation2 + $0x58] sm:$0xff] %v1384_v32 }
  0x51   : > { %441 = vst [vmem:[#allocation2 + $0x40] sm:$0xff] %v1384_v32 }
  0x52   : > { %442 = vst [vmem:[#allocation2 + $0xc8] sm:$0xff] %v1384_v32 }
  0x53   : > { %443 = vst [vmem:[#allocation2 + $0xe0] sm:$0xff] %v1384_v32 }
  0x54   : > { %444 = vst [vmem:[#allocation2 + $0x90] sm:$0xff] %v1384_v32 }
  0x55   : > { %445 = vst [vmem:[#allocation2 + $0x70] sm:$0xff] %v1384_v32 }
  0x56   : > { %446 = vst [vmem:[#allocation2 + $0xc0] sm:$0xff] %v1384_v32 }
  0x57   : > { %447 = vst [vmem:[#allocation2 + $0xa8] sm:$0xff] %v1384_v32 }
  0x58   : > { %448 = vst [vmem:[#allocation2 + $0xd0] sm:$0xff] %v1384_v32 }
  0x59   : > { %449 = vst [vmem:[#allocation2 + $0x10] sm:$0xff] %v1384_v32 }
  0x5a   : > { %450 = vst [vmem:[#allocation2 + $0x28] sm:$0xff] %v1384_v32 }
  0x5b   : > { %451 = vst [vmem:[#allocation2 + $0xa0] sm:$0xff] %v1384_v32 }
  0x5c   : > { %452 = vst [vmem:[#allocation2 + $0xf8] sm:$0xff] %v1384_v32 }
  0x5d   : > { %453 = vst [vmem:[#allocation2 + $0x20] sm:$0xff] %v1384_v32 }
  0x5e   : > { %454 = vst [vmem:[#allocation2 + $0x98] sm:$0xff] %v1384_v32 }
  0x5f PF: > { %v1213_v33 = vld [vmem:[%s1523_s7 + $0x38] sm:$0xff]  ;;  %v1212_v34 = vld [vmem:[%s1523_s7 + $0x30] sm:$0xff]  ;;  %v1211_v35 = vld [vmem:[%s1523_s7 + $0x28] sm:$0xff]  ;;  %p1185_p11 = scmp.ne.s32.totalorder %s1374_s14, 3 }
  0x60   : > { %679 = vmatpush.bf16.msra.mxu0 %v1213_v33  ;;  %1214 = vmatpush.bf16.msra.mxu1 %v1213_v33  ;;  %v1210_v36 = vld [vmem:[%s1523_s7 + $0x20] sm:$0xff]  ;;  %v1209_v37 = vld [vmem:[%s1523_s7 + $0x18] sm:$0xff]  ;;  %v1208_v38 = vld [vmem:[%s1523_s7 + $0x10] sm:$0xff] }
  0x61   : > { %1215 = vmatpush.bf16.msra.mxu2 %v1213_v33  ;;  %1216 = vmatpush.bf16.msra.mxu3 %v1213_v33  ;;  %v1207_v39 = vld [vmem:[%s1523_s7 + $0x8] sm:$0xff]  ;;  %v1206_v40 = vld [vmem:[%s1523_s7] sm:$0xff]  ;;  %v1192_v49 = vld [vmem:[%s1525_s8 + $0x10] sm:$0xff] }
  0x62   : > { %v1190_v41 = vld [vmem:[%s1525_s8] sm:$0xff]  ;;  %v1191_v45 = vld [vmem:[%s1525_s8 + $0x8] sm:$0xff]  ;;  %v1196_v50 = vld [vmem:[%s1525_s8 + $0x30] sm:$0xff] }
  0x63   : > { %v1194_v42 = vld [vmem:[%s1525_s8 + $0x20] sm:$0xff]  ;;  %v1195_v46 = vld [vmem:[%s1525_s8 + $0x28] sm:$0xff]  ;;  %v1200_v51 = vld [vmem:[%s1525_s8 + $0x50] sm:$0xff] }
  0x64   : > { %680 = vmatpush.bf16.msra.mxu0 %v1212_v34  ;;  %1217 = vmatpush.bf16.msra.mxu1 %v1212_v34  ;;  %v1198_v43 = vld [vmem:[%s1525_s8 + $0x40] sm:$0xff]  ;;  %v1199_v47 = vld [vmem:[%s1525_s8 + $0x48] sm:$0xff]  ;;  %v1204_v52 = vld [vmem:[%s1525_s8 + $0x70] sm:$0xff] }
  0x65   : > { %1218 = vmatpush.bf16.msra.mxu2 %v1212_v34  ;;  %1219 = vmatpush.bf16.msra.mxu3 %v1212_v34  ;;  %v1202_v44 = vld [vmem:[%s1525_s8 + $0x60] sm:$0xff]  ;;  %v1203_v48 = vld [vmem:[%s1525_s8 + $0x68] sm:$0xff]  ;;  %v1193_v53 = vld [vmem:[%s1525_s8 + $0x18] sm:$0xff] }
  0x66   : > { %v1197_v54 = vld [vmem:[%s1525_s8 + $0x38] sm:$0xff]  ;;  %v455_v57 = vld [vmem:[#allocation2 + $0xb0] sm:$0xff]  ;;  %v463_v58 = vld [vmem:[#allocation2 + $0x80] sm:$0xff] }
  0x67   : > { %v1201_v55 = vld [vmem:[%s1525_s8 + $0x58] sm:$0xff]  ;;  %v479_v0 = vld [vmem:[#allocation2 + $0xa8] sm:$0xff]  ;;  %v456_v1 = vld [vmem:[#allocation2] sm:$0xff] }
  0x68   : > { %681 = vmatpush.bf16.msra.mxu0 %v1211_v35  ;;  %1220 = vmatpush.bf16.msra.mxu1 %v1211_v35  ;;  %v1205_v56 = vld [vmem:[%s1525_s8 + $0x78] sm:$0xff]  ;;  %v464_v2 = vld [vmem:[#allocation2 + $0x88] sm:$0xff]  ;;  %v480_v12 = vld [vmem:[#allocation2 + $0xd0] sm:$0xff] }
  0x69   : > { %1221 = vmatpush.bf16.msra.mxu2 %v1211_v35  ;;  %1222 = vmatpush.bf16.msra.mxu3 %v1211_v35  ;;  %v471_v63 = vld [vmem:[#allocation2 + $0x38] sm:$0xff]  ;;  %v465_v14 = vld [vmem:[#allocation2 + $0xe8] sm:$0xff]  ;;  %v473_v23 = vld [vmem:[#allocation2 + $0x40] sm:$0xff] }
  0x6a   : > { %v472_v11 = vld [vmem:[#allocation2 + $0x58] sm:$0xff]  ;;  %v481_v24 = vld [vmem:[#allocation2 + $0x10] sm:$0xff]  ;;  %v474_v35 = vld [vmem:[#allocation2 + $0xc8] sm:$0xff] }
  0x6b   : > { %v457_v13 = vld [vmem:[#allocation2 + $0xd8] sm:$0xff] }
  0x6c   : > { %682 = vmatpush.bf16.msra.mxu0 %v1210_v36  ;;  %1223 = vmatpush.bf16.msra.mxu1 %v1210_v36  ;;  %v458_v25 = vld [vmem:[#allocation2 + $0x18] sm:$0xff] }
  0x6d   : > { %1224 = vmatpush.bf16.msra.mxu2 %v1210_v36  ;;  %1225 = vmatpush.bf16.msra.mxu3 %v1210_v36  ;;  %v466_v26 = vld [vmem:[#allocation2 + $0xb8] sm:$0xff]  ;;  %v482_v36 = vld [vmem:[#allocation2 + $0x28] sm:$0xff] }
  0x70   : > { %683 = vmatpush.bf16.msra.mxu0 %v1209_v37  ;;  %1226 = vmatpush.bf16.msra.mxu1 %v1209_v37 }
  0x71   : > { %1227 = vmatpush.bf16.msra.mxu2 %v1209_v37  ;;  %1228 = vmatpush.bf16.msra.mxu3 %v1209_v37  ;;  %v459_v37 = vld [vmem:[#allocation2 + $0x50] sm:$0xff] }
  0x74   : > { %684 = vmatpush.bf16.msra.mxu0 %v1208_v38  ;;  %1229 = vmatpush.bf16.msra.mxu1 %v1208_v38 }
  0x75   : > { %1230 = vmatpush.bf16.msra.mxu2 %v1208_v38  ;;  %1231 = vmatpush.bf16.msra.mxu3 %v1208_v38  ;;  %v467_v38 = vld [vmem:[#allocation2 + $0x60] sm:$0xff] }
  0x78   : > { %685 = vmatpush.bf16.msra.mxu0 %v1207_v39  ;;  %1232 = vmatpush.bf16.msra.mxu1 %v1207_v39 }
  0x79   : > { %1233 = vmatpush.bf16.msra.mxu2 %v1207_v39  ;;  %1234 = vmatpush.bf16.msra.mxu3 %v1207_v39 }
  0x7c   : > { %686 = vmatpush.bf16.msra.mxu0 %v1206_v40  ;;  %1235 = vmatpush.bf16.msra.mxu1 %v1206_v40 }
  0x7d   : > { %1236 = vmatpush.bf16.msra.mxu2 %v1206_v40  ;;  %1237 = vmatpush.bf16.msra.mxu3 %v1206_v40 }
  0x7f   : > { %687 = vmatmul.bf16.vlgmr.msra.gmra.mxu0 %v1190_v41  ;;  %707 = vmatmul.bf16.vlgmr.msra.gmra.mxu1 %v1194_v42 }
  0x80   : > { %727 = vmatmul.bf16.vlgmr.msra.gmra.mxu2 %v1198_v43  ;;  %747 = vmatmul.bf16.vlgmr.msra.gmra.mxu3 %v1202_v44 }
  0x8f   : > { %692 = vmatmul.bf16.gmra.mxu0 %v1191_v45  ;;  %712 = vmatmul.bf16.gmra.mxu1 %v1195_v46 }
  0x90   : > { %732 = vmatmul.bf16.gmra.mxu2 %v1199_v47  ;;  %752 = vmatmul.bf16.gmra.mxu3 %v1203_v48  ;;  %v475_v47 = vld [vmem:[#allocation2 + $0xe0] sm:$0xff] }
  0x91   : > { %v483_v48 = vld [vmem:[#allocation2 + $0xa0] sm:$0xff] }
  0x9f   : > { %697 = vmatmul.bf16.gmra.mxu0 %v1192_v49  ;;  %717 = vmatmul.bf16.gmra.mxu1 %v1196_v50  ;;  %v460_v49 = vld [vmem:[#allocation2 + $0x68] sm:$0xff]  ;;  %v468_v50 = vld [vmem:[#allocation2 + $0xf0] sm:$0xff] }
  0xa0   : > { %737 = vmatmul.bf16.gmra.mxu2 %v1200_v51  ;;  %757 = vmatmul.bf16.gmra.mxu3 %v1204_v52 }
  0xaf   : > { %702 = vmatmul.bf16.gmra.mxu0 %v1193_v53  ;;  %722 = vmatmul.bf16.gmra.mxu1 %v1197_v54 }
  0xb0   : > { %742 = vmatmul.bf16.gmra.mxu2 %v1201_v55  ;;  %762 = vmatmul.bf16.gmra.mxu3 %v1205_v56 }
  0xfc   : > { %v688_v59 = vpop.f32.mrf.mxu0  ;;  %v708_v60 = vpop.f32.mrf.mxu1 }
  0xfd   : > { %v768_v61 = vadd.f32 %v688_v59, %v455_v57  ;;  %v776_v62 = vadd.f32 %v708_v60, %v463_v58  ;;  %v476_v59 = vld [vmem:[#allocation2 + $0x90] sm:$0xff]  ;;  %v484_v60 = vld [vmem:[#allocation2 + $0xf8] sm:$0xff] }
  0xff   : > { %800 = vst [vmem:[#allocation2 + $0xb0] sm:$0xff] %v768_v61  ;;  %v461_v61 = vld [vmem:[#allocation2 + $0x30] sm:$0xff] }
 0x100   : > { %808 = vst [vmem:[#allocation2 + $0x80] sm:$0xff] %v776_v62  ;;  %v469_v62 = vld [vmem:[#allocation2 + $0x8] sm:$0xff] }
 0x103   : > { %v728_v3 = vpop.f32.mrf.mxu2  ;;  %v748_v4 = vpop.f32.mrf.mxu3 }
 0x104   : > { %v784_v5 = vadd.f32 %v728_v3, %v471_v63  ;;  %v792_v6 = vadd.f32 %v748_v4, %v479_v0  ;;  %v690_v7 = vpop.f32.mrf.mxu0  ;;  %v710_v8 = vpop.f32.mrf.mxu1 }
 0x105   : > { %v769_v9 = vadd.f32 %v690_v7, %v456_v1  ;;  %v777_v10 = vadd.f32 %v710_v8, %v464_v2  ;;  %v477_v7 = vld [vmem:[#allocation2 + $0x70] sm:$0xff]  ;;  %v485_v8 = vld [vmem:[#allocation2 + $0x20] sm:$0xff] }
 0x106   : > { %816 = vst [vmem:[#allocation2 + $0x38] sm:$0xff] %v784_v5 }
 0x107   : > { %824 = vst [vmem:[#allocation2 + $0xa8] sm:$0xff] %v792_v6 }
 0x108   : > { %801 = vst [vmem:[#allocation2] sm:$0xff] %v769_v9  ;;  %v462_v9 = vld [vmem:[#allocation2 + $0x48] sm:$0xff] }
 0x109   : > { %809 = vst [vmem:[#allocation2 + $0x88] sm:$0xff] %v777_v10  ;;  %v470_v10 = vld [vmem:[#allocation2 + $0x78] sm:$0xff] }
 0x10b   : > { %v730_v15 = vpop.f32.mrf.mxu2  ;;  %v750_v16 = vpop.f32.mrf.mxu3 }
 0x10c   : > { %v785_v17 = vadd.f32 %v730_v15, %v472_v11  ;;  %v793_v18 = vadd.f32 %v750_v16, %v480_v12  ;;  %v693_v19 = vpop.f32.mrf.mxu0  ;;  %v713_v20 = vpop.f32.mrf.mxu1 }
 0x10d   : > { %v770_v21 = vadd.f32 %v693_v19, %v457_v13  ;;  %v778_v22 = vadd.f32 %v713_v20, %v465_v14  ;;  %v478_v19 = vld [vmem:[#allocation2 + $0xc0] sm:$0xff]  ;;  %v486_v20 = vld [vmem:[#allocation2 + $0x98] sm:$0xff] }
 0x10e   : > { %817 = vst [vmem:[#allocation2 + $0x58] sm:$0xff] %v785_v17 }
 0x10f   : > { %825 = vst [vmem:[#allocation2 + $0xd0] sm:$0xff] %v793_v18 }
 0x110   : > { %802 = vst [vmem:[#allocation2 + $0xd8] sm:$0xff] %v770_v21 }
 0x111   : > { %810 = vst [vmem:[#allocation2 + $0xe8] sm:$0xff] %v778_v22 }
 0x113   : > { %v733_v27 = vpop.f32.mrf.mxu2  ;;  %v753_v28 = vpop.f32.mrf.mxu3 }
 0x114   : > { %v786_v29 = vadd.f32 %v733_v27, %v473_v23  ;;  %v794_v30 = vadd.f32 %v753_v28, %v481_v24  ;;  %v695_v31 = vpop.f32.mrf.mxu0  ;;  %v715_v32 = vpop.f32.mrf.mxu1 }
 0x115   : > { %v771_v33 = vadd.f32 %v695_v31, %v458_v25  ;;  %v779_v34 = vadd.f32 %v715_v32, %v466_v26 }
 0x116   : > { %818 = vst [vmem:[#allocation2 + $0x40] sm:$0xff] %v786_v29 }
 0x117   : > { %826 = vst [vmem:[#allocation2 + $0x10] sm:$0xff] %v794_v30 }
 0x118   : > { %803 = vst [vmem:[#allocation2 + $0x18] sm:$0xff] %v771_v33 }
 0x119   : > { %811 = vst [vmem:[#allocation2 + $0xb8] sm:$0xff] %v779_v34 }
 0x11b   : > { %v735_v39 = vpop.f32.mrf.mxu2  ;;  %v755_v40 = vpop.f32.mrf.mxu3 }
 0x11c   : > { %v787_v41 = vadd.f32 %v735_v39, %v474_v35  ;;  %v795_v42 = vadd.f32 %v755_v40, %v482_v36  ;;  %v698_v43 = vpop.f32.mrf.mxu0  ;;  %v718_v44 = vpop.f32.mrf.mxu1 }
 0x11d   : > { %v772_v45 = vadd.f32 %v698_v43, %v459_v37  ;;  %v780_v46 = vadd.f32 %v718_v44, %v467_v38 }
 0x11e   : > { %819 = vst [vmem:[#allocation2 + $0xc8] sm:$0xff] %v787_v41 }
 0x11f   : > { %827 = vst [vmem:[#allocation2 + $0x28] sm:$0xff] %v795_v42 }
 0x120   : > { %804 = vst [vmem:[#allocation2 + $0x50] sm:$0xff] %v772_v45 }
 0x121   : > { %812 = vst [vmem:[#allocation2 + $0x60] sm:$0xff] %v780_v46 }
 0x123   : > { %v738_v51 = vpop.f32.mrf.mxu2  ;;  %v758_v52 = vpop.f32.mrf.mxu3 }
 0x124   : > { %v788_v53 = vadd.f32 %v738_v51, %v475_v47  ;;  %v796_v54 = vadd.f32 %v758_v52, %v483_v48  ;;  %v700_v55 = vpop.f32.mrf.mxu0  ;;  %v720_v56 = vpop.f32.mrf.mxu1 }
 0x125   : > { %v773_v57 = vadd.f32 %v700_v55, %v460_v49  ;;  %v781_v58 = vadd.f32 %v720_v56, %v468_v50 }
 0x126   : > { %820 = vst [vmem:[#allocation2 + $0xe0] sm:$0xff] %v788_v53 }
 0x127   : > { %828 = vst [vmem:[#allocation2 + $0xa0] sm:$0xff] %v796_v54 }
 0x128   : > { %805 = vst [vmem:[#allocation2 + $0x68] sm:$0xff] %v773_v57 }
 0x129   : > { %813 = vst [vmem:[#allocation2 + $0xf0] sm:$0xff] %v781_v58 }
 0x12b   : > { %v740_v63 = vpop.f32.mrf.mxu2  ;;  %v760_v0 = vpop.f32.mrf.mxu3 }
 0x12c   : > { %v789_v1 = vadd.f32 %v740_v63, %v476_v59  ;;  %v797_v2 = vadd.f32 %v760_v0, %v484_v60  ;;  %v703_v3 = vpop.f32.mrf.mxu0  ;;  %v723_v4 = vpop.f32.mrf.mxu1 }
 0x12d   : > { %v774_v5 = vadd.f32 %v703_v3, %v461_v61  ;;  %v782_v6 = vadd.f32 %v723_v4, %v469_v62 }
 0x12e   : > { %821 = vst [vmem:[#allocation2 + $0x90] sm:$0xff] %v789_v1 }
 0x12f   : > { %829 = vst [vmem:[#allocation2 + $0xf8] sm:$0xff] %v797_v2 }
 0x130   : > { %806 = vst [vmem:[#allocation2 + $0x30] sm:$0xff] %v774_v5 }
 0x131   : > { %814 = vst [vmem:[#allocation2 + $0x8] sm:$0xff] %v782_v6 }
 0x133   : > { %v743_v11 = vpop.f32.mrf.mxu2  ;;  %v763_v12 = vpop.f32.mrf.mxu3 }
 0x134   : > { %v790_v13 = vadd.f32 %v743_v11, %v477_v7  ;;  %v798_v14 = vadd.f32 %v763_v12, %v485_v8  ;;  %v705_v15 = vpop.f32.mrf.mxu0  ;;  %v725_v16 = vpop.f32.mrf.mxu1 }
 0x135   : > { %v775_v17 = vadd.f32 %v705_v15, %v462_v9  ;;  %v783_v18 = vadd.f32 %v725_v16, %v470_v10 }
 0x136   : > { %822 = vst [vmem:[#allocation2 + $0x70] sm:$0xff] %v790_v13 }
 0x137   : > { %830 = vst [vmem:[#allocation2 + $0x20] sm:$0xff] %v798_v14 }
 0x138   : > { %807 = vst [vmem:[#allocation2 + $0x48] sm:$0xff] %v775_v17 }
 0x139   : > { %815 = vst [vmem:[#allocation2 + $0x78] sm:$0xff] %v783_v18 }
 0x13b   : > { %v745_v21 = vpop.f32.mrf.mxu2  ;;  %v765_v22 = vpop.f32.mrf.mxu3  ;;  %835 = sbr.rel (%p1185_p11) target bundleno = 362 (0x16a), region = 81 }
 0x13c   : > { %v791_v23 = vadd.f32 %v745_v21, %v478_v19  ;;  %v799_v24 = vadd.f32 %v765_v22, %v486_v20 }
 0x13e   : > { %823 = vst [vmem:[#allocation2 + $0xc0] sm:$0xff] %v791_v23 }
 0x13f   : > { %831 = vst [vmem:[#allocation2 + $0x98] sm:$0xff] %v799_v24 }
 0x140   : > { %v836_v25 = vld [vmem:[#allocation2 + $0xb0] sm:$0xff]  ;;  %v1556_v26 = vld [vmem:[%s1703_s2] ss:$0 sm:$0xff]  ;;  %v838_v28 = vld [vmem:[#allocation2 + $0xd8] sm:$0xff] }
 0x141   : > { %v837_v27 = vld [vmem:[#allocation2] sm:$0xff]  ;;  %v839_v29 = vld [vmem:[#allocation2 + $0x18] sm:$0xff]  ;;  %v872_v30 = vadd.f32 %v1556_v26, %v836_v25  ;;  %v874_v32 = vadd.f32 %v1556_v26, %v838_v28  ;;  %v840_v33 = vld [vmem:[#allocation2 + $0x50] sm:$0xff] }
 0x142   : > { %v873_v31 = vadd.f32 %v1556_v26, %v837_v27  ;;  %v841_v34 = vld [vmem:[#allocation2 + $0x68] sm:$0xff]  ;;  %v875_v35 = vadd.f32 %v1556_v26, %v839_v29  ;;  %v842_v36 = vld [vmem:[#allocation2 + $0x30] sm:$0xff]  ;;  %v876_v37 = vadd.f32 %v1556_v26, %v840_v33  ;;  %v844_v40 = vld [vmem:[#allocation2 + $0x80] sm:$0xff] }
 0x143   : > { %1280 = vtanh.f32 %v872_v30  ;;  %v843_v38 = vld [vmem:[#allocation2 + $0x48] sm:$0xff]  ;;  %v877_v39 = vadd.f32 %v1556_v26, %v841_v34  ;;  %v878_v41 = vadd.f32 %v1556_v26, %v842_v36  ;;  %v880_v45 = vadd.f32 %v1556_v26, %v844_v40  ;;  %v847_v46 = vld [vmem:[#allocation2 + $0xb8] sm:$0xff]  ;;  %v848_v48 = vld [vmem:[#allocation2 + $0x60] sm:$0xff] }
 0x144   : > { %1282 = vtanh.f32 %v873_v31  ;;  %v845_v42 = vld [vmem:[#allocation2 + $0x88] sm:$0xff]  ;;  %v879_v43 = vadd.f32 %v1556_v26, %v843_v38  ;;  %v849_v51 = vld [vmem:[#allocation2 + $0xf0] sm:$0xff]  ;;  %v883_v53 = vadd.f32 %v1556_v26, %v847_v46  ;;  %v884_v56 = vadd.f32 %v1556_v26, %v848_v48  ;;  %v851_v57 = vld [vmem:[#allocation2 + $0x78] sm:$0xff] }
 0x145   : > { %1284 = vtanh.f32 %v874_v32  ;;  %v846_v44 = vld [vmem:[#allocation2 + $0xe8] sm:$0xff]  ;;  %v881_v47 = vadd.f32 %v1556_v26, %v845_v42  ;;  %v885_v59 = vadd.f32 %v1556_v26, %v849_v51  ;;  %v852_v60 = vld [vmem:[#allocation2 + $0x38] sm:$0xff]  ;;  %v887_v1 = vadd.f32 %v1556_v26, %v851_v57  ;;  %v854_v2 = vld [vmem:[#allocation2 + $0x40] sm:$0xff] }
 0x146   : > { %1286 = vtanh.f32 %v875_v35  ;;  %v882_v50 = vadd.f32 %v1556_v26, %v846_v44  ;;  %v850_v54 = vld [vmem:[#allocation2 + $0x8] sm:$0xff]  ;;  %v853_v63 = vld [vmem:[#allocation2 + $0x58] sm:$0xff]  ;;  %v888_v4 = vadd.f32 %v1556_v26, %v852_v60  ;;  %v856_v8 = vld [vmem:[#allocation2 + $0xe0] sm:$0xff]  ;;  %v890_v10 = vadd.f32 %v1556_v26, %v854_v2 }
 0x147   : > { %1288 = vtanh.f32 %v876_v37  ;;  %v886_v62 = vadd.f32 %v1556_v26, %v850_v54  ;;  %v855_v5 = vld [vmem:[#allocation2 + $0xc8] sm:$0xff]  ;;  %v889_v7 = vadd.f32 %v1556_v26, %v853_v63  ;;  %v857_v11 = vld [vmem:[#allocation2 + $0x90] sm:$0xff]  ;;  %v892_v16 = vadd.f32 %v1556_v26, %v856_v8  ;;  %v859_v17 = vld [vmem:[#allocation2 + $0xc0] sm:$0xff] }
 0x148   : > { %1290 = vtanh.f32 %v877_v39  ;;  %v891_v13 = vadd.f32 %v1556_v26, %v855_v5  ;;  %v858_v14 = vld [vmem:[#allocation2 + $0x70] sm:$0xff]  ;;  %v893_v19 = vadd.f32 %v1556_v26, %v857_v11  ;;  %v860_v20 = vld [vmem:[#allocation2 + $0xa8] sm:$0xff]  ;;  %v895_v25 = vadd.f32 %v1556_v26, %v859_v17  ;;  %v864_v33 = vld [vmem:[#allocation2 + $0xa0] sm:$0xff] }
 0x149   : > { %v1281_v49 = vpop.eup %1280  ;;  %1292 = vtanh.f32 %v878_v41  ;;  %v894_v22 = vadd.f32 %v1556_v26, %v858_v14  ;;  %v861_v23 = vld [vmem:[#allocation2 + $0xd0] sm:$0xff]  ;;  %v896_v29 = vadd.f32 %v1556_v26, %v860_v20  ;;  %v863_v30 = vld [vmem:[#allocation2 + $0x28] sm:$0xff]  ;;  %v865_v36 = vld [vmem:[#allocation2 + $0xf8] sm:$0xff]  ;;  %v900_v41 = vadd.f32 %v1556_v26, %v864_v33 }
 0x14a   : > { %v1283_v52 = vpop.eup %1282  ;;  %936 = vst [vmem:[%s1704_s3] sm:$0xff] %v1281_v49  ;;  %1294 = vtanh.f32 %v879_v43  ;;  %v862_v27 = vld [vmem:[#allocation2 + $0x10] sm:$0xff]  ;;  %v897_v32 = vadd.f32 %v1556_v26, %v861_v23  ;;  %v899_v38 = vadd.f32 %v1556_v26, %v863_v30  ;;  %v866_v39 = vld [vmem:[#allocation2 + $0x20] sm:$0xff]  ;;  %v867_v42 = vld [vmem:[#allocation2 + $0x98] sm:$0xff]  ;;  %v901_v44 = vadd.f32 %v1556_v26, %v865_v36 }
 0x14b   : > { %v1285_v55 = vpop.eup %1284  ;;  %937 = vst [vmem:[%s1704_s3 + $0x8] sm:$0xff] %v1283_v52  ;;  %1296 = vtanh.f32 %v880_v45  ;;  %v898_v35 = vadd.f32 %v1556_v26, %v862_v27  ;;  %v902_v46 = vadd.f32 %v1556_v26, %v866_v39  ;;  %v903_v48 = vadd.f32 %v1556_v26, %v867_v42 }
 0x14c   : > { %v1287_v58 = vpop.eup %1286  ;;  %938 = vst [vmem:[%s1704_s3 + $0x10] sm:$0xff] %v1285_v55  ;;  %1298 = vtanh.f32 %v881_v47 }
 0x14d   : > { %v1289_v61 = vpop.eup %1288  ;;  %939 = vst [vmem:[%s1704_s3 + $0x18] sm:$0xff] %v1287_v58  ;;  %1300 = vtanh.f32 %v882_v50 }
 0x14e   : > { %v1291_v0 = vpop.eup %1290  ;;  %940 = vst [vmem:[%s1704_s3 + $0x20] sm:$0xff] %v1289_v61  ;;  %1302 = vtanh.f32 %v883_v53 }
 0x14f   : > { %v1293_v3 = vpop.eup %1292  ;;  %941 = vst [vmem:[%s1704_s3 + $0x28] sm:$0xff] %v1291_v0  ;;  %1304 = vtanh.f32 %v884_v56 }
 0x150   : > { %v1295_v6 = vpop.eup %1294  ;;  %942 = vst [vmem:[%s1704_s3 + $0x30] sm:$0xff] %v1293_v3  ;;  %1306 = vtanh.f32 %v885_v59 }
 0x151   : > { %v1297_v9 = vpop.eup %1296  ;;  %943 = vst [vmem:[%s1704_s3 + $0x38] sm:$0xff] %v1295_v6  ;;  %1308 = vtanh.f32 %v886_v62 }
 0x152   : > { %v1299_v12 = vpop.eup %1298  ;;  %944 = vst [vmem:[%s1704_s3 + $0x40] sm:$0xff] %v1297_v9  ;;  %1310 = vtanh.f32 %v887_v1 }
 0x153   : > { %v1301_v15 = vpop.eup %1300  ;;  %945 = vst [vmem:[%s1704_s3 + $0x48] sm:$0xff] %v1299_v12  ;;  %1312 = vtanh.f32 %v888_v4 }
 0x154   : > { %v1303_v18 = vpop.eup %1302  ;;  %946 = vst [vmem:[%s1704_s3 + $0x50] sm:$0xff] %v1301_v15  ;;  %1314 = vtanh.f32 %v889_v7 }
 0x155   : > { %v1305_v21 = vpop.eup %1304  ;;  %947 = vst [vmem:[%s1704_s3 + $0x58] sm:$0xff] %v1303_v18  ;;  %1316 = vtanh.f32 %v890_v10 }
 0x156   : > { %v1307_v24 = vpop.eup %1306  ;;  %948 = vst [vmem:[%s1704_s3 + $0x60] sm:$0xff] %v1305_v21  ;;  %1318 = vtanh.f32 %v891_v13 }
 0x157   : > { %v1309_v28 = vpop.eup %1308  ;;  %949 = vst [vmem:[%s1704_s3 + $0x68] sm:$0xff] %v1307_v24  ;;  %1320 = vtanh.f32 %v892_v16 }
 0x158   : > { %v1311_v31 = vpop.eup %1310  ;;  %950 = vst [vmem:[%s1704_s3 + $0x70] sm:$0xff] %v1309_v28  ;;  %1322 = vtanh.f32 %v893_v19 }
 0x159   : > { %v1313_v34 = vpop.eup %1312  ;;  %951 = vst [vmem:[%s1704_s3 + $0x78] sm:$0xff] %v1311_v31  ;;  %1324 = vtanh.f32 %v894_v22 }
 0x15a   : > { %v1315_v37 = vpop.eup %1314  ;;  %952 = vst [vmem:[%s1704_s3 + $0x80] sm:$0xff] %v1313_v34  ;;  %1326 = vtanh.f32 %v895_v25 }
 0x15b   : > { %v1317_v40 = vpop.eup %1316  ;;  %953 = vst [vmem:[%s1704_s3 + $0x88] sm:$0xff] %v1315_v37  ;;  %1328 = vtanh.f32 %v896_v29 }
 0x15c   : > { %v1319_v43 = vpop.eup %1318  ;;  %954 = vst [vmem:[%s1704_s3 + $0x90] sm:$0xff] %v1317_v40  ;;  %1330 = vtanh.f32 %v897_v32 }
 0x15d   : > { %v1321_v45 = vpop.eup %1320  ;;  %955 = vst [vmem:[%s1704_s3 + $0x98] sm:$0xff] %v1319_v43  ;;  %1332 = vtanh.f32 %v898_v35 }
 0x15e   : > { %v1323_v47 = vpop.eup %1322  ;;  %956 = vst [vmem:[%s1704_s3 + $0xa0] sm:$0xff] %v1321_v45  ;;  %1334 = vtanh.f32 %v899_v38 }
 0x15f   : > { %v1325_v49 = vpop.eup %1324  ;;  %957 = vst [vmem:[%s1704_s3 + $0xa8] sm:$0xff] %v1323_v47  ;;  %1336 = vtanh.f32 %v900_v41 }
 0x160   : > { %v1327_v50 = vpop.eup %1326  ;;  %958 = vst [vmem:[%s1704_s3 + $0xb0] sm:$0xff] %v1325_v49  ;;  %1338 = vtanh.f32 %v901_v44 }
 0x161   : > { %v1329_v51 = vpop.eup %1328  ;;  %959 = vst [vmem:[%s1704_s3 + $0xb8] sm:$0xff] %v1327_v50  ;;  %1340 = vtanh.f32 %v902_v46 }
 0x162   : > { %v1331_v52 = vpop.eup %1330  ;;  %960 = vst [vmem:[%s1704_s3 + $0xc0] sm:$0xff] %v1329_v51  ;;  %1342 = vtanh.f32 %v903_v48 }
 0x163   : > { %v1333_v26 = vpop.eup %1332  ;;  %961 = vst [vmem:[%s1704_s3 + $0xc8] sm:$0xff] %v1331_v52 }
 0x164   : > { %v1335_v53 = vpop.eup %1334  ;;  %962 = vst [vmem:[%s1704_s3 + $0xd0] sm:$0xff] %v1333_v26 }
 0x165   : > { %v1337_v54 = vpop.eup %1336  ;;  %963 = vst [vmem:[%s1704_s3 + $0xd8] sm:$0xff] %v1335_v53 }
 0x166   : > { %v1339_v55 = vpop.eup %1338  ;;  %964 = vst [vmem:[%s1704_s3 + $0xe0] sm:$0xff] %v1337_v54 }
 0x167   : > { %v1341_v56 = vpop.eup %1340  ;;  %965 = vst [vmem:[%s1704_s3 + $0xe8] sm:$0xff] %v1339_v55 }
 0x168   : > { %v1343_v57 = vpop.eup %1342  ;;  %966 = vst [vmem:[%s1704_s3 + $0xf0] sm:$0xff] %v1341_v56 }
 0x169   : > { %967 = vst [vmem:[%s1704_s3 + $0xf8] sm:$0xff] %v1343_v57 }
 0x16a PF: > { %s13_s16 = sadd.s32 1, %s1382_s16   ;;  %s1705_s12 = smov %s1370_s13 }
 0x16b   : > { %p10_p12 = scmp.ge.s32.totalorder %s13_s16, 6   ;;  %s1706_s13 = smov %s1440_s20 }
 0x16c   : > { %s1707_s14 = smov %s1378_s15  ;;  %s1708_s15 = smov %s1710_s17 }
 0x16d   :  { %12 = sbr.rel (!%p10_p12) target bundleno = 3 (0x3), region = 122 }

</bundles_post_ra>
